<compile_context>
chip_gen: v7x
topology: tpu7x:2x2x1
jax: 0.10.0
libtpu: 0.0.40
codegen_flags: <defaults>
</compile_context>

<pallas_src>
import math

import numpy as np
import jax
import jax.numpy as jnp
from jax import lax
from jax.experimental import pallas as pl
from jax.experimental.pallas import tpu as pltpu

LANE = 128


def _round_up(n, m):
    return ((n + m - 1) // m) * m


def _pad2(a, rows, cols):
    r, c = a.shape
    return jnp.pad(a, ((0, rows - r), (0, cols - c)))


# ----------------------------------------------------------------------------
# Single fused kernel: tokens + UNet + BiLSTM recurrence + classifier head
# ----------------------------------------------------------------------------
def _make_fused_kernel(B, N, Hh):
    G4 = 4 * Hh

    def kernel(patches_bt_ref, patches_tb_ref, keep_ref, pew_ref, add_ref,
               mtok_ref, gxw_ref, gxadd_ref, whhf_ref, whhb_ref, wcls_ref,
               bcls_ref, sel_ref, m1_ref, b1_ref, m2_ref, b2_ref, m3_ref,
               b3_ref,
               snorm_ref, tnorm_ref, seg_ref, probs_ref,
               gxf_s, gxb_s, hf_s, hb_s):
        f32 = jnp.float32

        # ---- patch-embed (+CLS/pos) in batch-major row layout (row = b*N+t) --
        tok = jnp.dot(patches_bt_ref[...], pew_ref[...],
                      preferred_element_type=f32) + add_ref[...]        # (BNp, Dp)

        # teacher branch: L2 normalize (padded lanes/rows are zero).
        # rsqrt(sum + 1e-24) ~= F.normalize's x / max(||x||, 1e-12).
        t_inv = lax.rsqrt(jnp.sum(tok * tok, axis=-1, keepdims=True) + 1e-24)
        tnorm_ref[...] = tok * t_inv

        # student branch: mask-token substitution + L2 normalize
        keepb = jnp.broadcast_to(keep_ref[...], tok.shape)
        mtokb = jnp.broadcast_to(mtok_ref[...], tok.shape)
        masked = jnp.where(keepb > 0.5, tok, mtokb)
        s_inv = lax.rsqrt(jnp.sum(masked * masked, axis=-1, keepdims=True) + 1e-24)
        snorm = masked * s_inv
        snorm_ref[...] = snorm

        # ---- SimplifiedUNet stand-in on normalized student CLS rows ----------
        # CLS-row gather = matmul with a constant 0/1 selection matrix; each
        # 3x3 same-pad conv on the 6x6 map is a precomputed dense matrix.
        cls_n = jnp.dot(sel_ref[...], snorm, preferred_element_type=f32)  # (Bp, Dp)
        h1 = jnp.maximum(
            jnp.dot(cls_n, m1_ref[...], preferred_element_type=f32) + b1_ref[...], 0.0)
        h2 = jnp.maximum(
            jnp.dot(h1, m2_ref[...], preferred_element_type=f32) + b2_ref[...], 0.0)
        seg_ref[...] = jax.nn.sigmoid(
            jnp.dot(h2, m3_ref[...], preferred_element_type=f32) + b3_ref[...])

        # ---- BiLSTM input-gate pre-activations, time-major, VMEM-resident ----
        # gx[t*B+b] = raw_tok[b,t] @ [Wih_f | Wih_b] + (bih+bhh); the patch-embed
        # weight is folded host-side: gx = patches_tb @ (pe_w @ Wih) + gxadd.
        gx = jnp.dot(patches_tb_ref[...], gxw_ref[...],
                     preferred_element_type=f32) + gxadd_ref[...]        # (BNp, 8H)
        gxf_s[...] = gx[:, :G4]
        gxb_s[...] = gx[:, G4:]

        hf_s[...] = jnp.zeros_like(hf_s)
        hb_s[...] = jnp.zeros_like(hb_s)

        # ---- merged fwd/bwd recurrence (N steps instead of 2N), fully --------
        # unrolled (static trip count, tiny state), classifier hoisted out.
        hf = jnp.zeros((B, Hh), f32)
        cf = jnp.zeros((B, Hh), f32)
        hb = jnp.zeros((B, Hh), f32)
        cb = jnp.zeros((B, Hh), f32)

        for s in range(N):                      # static unroll: LLO sees it all
            mf = s * B                          # forward reads time s
            mb = (N - 1 - s) * B                # backward reads time N-1-s

            gf = gxf_s[pl.ds(mf, B), :] + jnp.dot(
                hf, whhf_ref[...], preferred_element_type=f32)           # (B, 4H)
            gb = gxb_s[pl.ds(mb, B), :] + jnp.dot(
                hb, whhb_ref[...], preferred_element_type=f32)

            i_f = jax.nn.sigmoid(gf[:, 0:Hh])
            f_f = jax.nn.sigmoid(gf[:, Hh:2 * Hh])
            g_f = jnp.tanh(gf[:, 2 * Hh:3 * Hh])
            o_f = jax.nn.sigmoid(gf[:, 3 * Hh:4 * Hh])
            cf = f_f * cf + i_f * g_f
            hf = o_f * jnp.tanh(cf)

            i_b = jax.nn.sigmoid(gb[:, 0:Hh])
            f_b = jax.nn.sigmoid(gb[:, Hh:2 * Hh])
            g_b = jnp.tanh(gb[:, 2 * Hh:3 * Hh])
            o_b = jax.nn.sigmoid(gb[:, 3 * Hh:4 * Hh])
            cb = f_b * cb + i_b * g_b
            hb = o_b * jnp.tanh(cb)

            hf_s[pl.ds(mf, B), :] = hf          # hidden history, time-major
            hb_s[pl.ds(mb, B), :] = hb

        # ---- classifier head: ONE batched matmul over all N*B steps ----------
        hcat = jnp.concatenate([hf_s[...], hb_s[...]], axis=-1)          # (BNp, 2H)
        logits = jnp.dot(hcat, wcls_ref[...],
                         preferred_element_type=f32) + bcls_ref[...]     # (BNp, 128)
        probs_ref[...] = jax.nn.sigmoid(logits)

    return kernel


def fused_forward_call(prep, patches_bt, patches_tb, keep_col, *, B, N, Hh):
    BNp = patches_bt.shape[0]
    Dp = prep["pe_w_pad"].shape[1]
    Bp = prep["sel_cls"].shape[0]
    U3 = prep["m3_pad"].shape[1]
    G4 = 4 * Hh

    ins = [patches_bt, patches_tb, keep_col,
           prep["pe_w_pad"], prep["add_bt_pad"], prep["mask_tok_pad"],
           prep["gxw_fold"], prep["gxadd_tb_pad"],
           prep["whhf_t"], prep["whhb_t"], prep["wcls_pad"], prep["bcls_pad"],
           prep["sel_cls"], prep["m1_pad"], prep["b1_pad"],
           prep["m2_pad"], prep["b2_pad"], prep["m3_pad"], prep["b3_pad"]]
    in_specs = [pl.BlockSpec(a.shape, lambda i: (0, 0)) for a in ins]

    out_shape = (
        jax.ShapeDtypeStruct((BNp, Dp), jnp.float32),    # student masked+normed
        jax.ShapeDtypeStruct((BNp, Dp), jnp.float32),    # teacher normed
        jax.ShapeDtypeStruct((Bp, U3), jnp.float32),     # UNet segmentation
        jax.ShapeDtypeStruct((BNp, LANE), jnp.float32),  # boundary probs (col 0)
    )
    out_specs = (
        pl.BlockSpec((BNp, Dp), lambda i: (0, 0)),
        pl.BlockSpec((BNp, Dp), lambda i: (0, 0)),
        pl.BlockSpec((Bp, U3), lambda i: (0, 0)),
        pl.BlockSpec((BNp, LANE), lambda i: (0, 0)),
    )
    return pl.pallas_call(
        _make_fused_kernel(B, N, Hh),
        out_shape=out_shape,
        grid=(1,),
        in_specs=in_specs,
        out_specs=out_specs,
        scratch_shapes=[pltpu.VMEM((BNp, G4), jnp.float32),   # fwd gate preacts
                        pltpu.VMEM((BNp, G4), jnp.float32),   # bwd gate preacts
                        pltpu.VMEM((BNp, Hh), jnp.float32),   # fwd hidden history
                        pltpu.VMEM((BNp, Hh), jnp.float32)],  # bwd hidden history
        compiler_params=pltpu.CompilerParams(dimension_semantics=("arbitrary",)),
    )(*ins)


# ----------------------------------------------------------------------------
# Parameter preparation (host-side, once): padding, fusing, conv-as-matrix
# ----------------------------------------------------------------------------
def conv3x3_to_matrix(w, side):
    """Dense M so that vec(out) = vec(x) @ M for a 3x3 same-padding conv on a
    (Cin, side, side) map."""
    cout, cin, kh, kw = w.shape
    s2 = side * side
    m = np.zeros((cin * s2, cout * s2), np.float32)
    for o in range(cout):
        for c in range(cin):
            for dy in range(kh):
                for dx in range(kw):
                    wv = float(w[o, c, dy, dx])
                    for y in range(side):
                        sy = y + dy - 1
                        if sy < 0 or sy >= side:
                            continue
                        for x in range(side):
                            sx = x + dx - 1
                            if sx < 0 or sx >= side:
                                continue
                            m[c * s2 + sy * side + sx, o * s2 + y * side + x] += wv
    return m


def prepare_params(params, cfg, image_shape):
    D = cfg["embed_dim"]
    Hh = cfg["lstm_hidden"]
    p = cfg["patch_size"]
    B, C, Hi, Wi = image_shape
    n_patches = (Hi // p) * (Wi // p)
    N = n_patches + 1
    BN = B * N
    BNp = _round_up(BN, 8)
    Bp = _round_up(B, 8)
    Dp = _round_up(D, LANE)
    K = C * p * p

    prep = {}
    prep["pe_w_pad"] = _pad2(params["pe_w"], K, Dp)

    # per-token additive term: (cls_token | conv_bias) + pos_embed, batch-tiled
    add = params["pos_embed"][0] + jnp.concatenate(
        [params["cls_token"][0],
         jnp.tile(params["pe_b"][None, :], (n_patches, 1))], axis=0)      # (N, D)
    prep["add_bt_pad"] = _pad2(jnp.tile(add, (B, 1)), BNp, Dp)            # row b*N+t
    prep["mask_tok_pad"] = _pad2(params["mask_token"], 1, Dp)

    # CLS-row gather as a constant selection matrix (matmul-friendly)
    sel = np.zeros((Bp, BNp), np.float32)
    for b in range(B):
        sel[b, b * N] = 1.0
    prep["sel_cls"] = jnp.asarray(sel)

    # BiLSTM: both input projections fused, pe_w folded in, biases folded,
    # constants in time-major row layout (row = t*B + b).
    wih = jnp.concatenate([params["lf_wih"].T, params["lb_wih"].T], axis=1)  # (D, 8H)
    bih = jnp.concatenate([params["lf_bih"] + params["lf_bhh"],
                           params["lb_bih"] + params["lb_bhh"]])[None, :]    # (1, 8H)
    prep["gxw_fold"] = params["pe_w"] @ wih                                  # (K, 8H)
    gxadd = add @ wih + bih                                                  # (N, 8H)
    prep["gxadd_tb_pad"] = _pad2(jnp.repeat(gxadd, B, axis=0), BNp, 8 * Hh)
    prep["whhf_t"] = params["lf_whh"].T                                      # (H, 4H)
    prep["whhb_t"] = params["lb_whh"].T
    prep["wcls_pad"] = jnp.zeros((2 * Hh, LANE), jnp.float32).at[:, 0].set(
        params["cls_w"][:, 0])
    prep["bcls_pad"] = jnp.zeros((1, LANE), jnp.float32).at[0, 0].set(
        params["cls_b"][0])

    # SimplifiedUNet stand-in as dense conv-matrices (padded lane-dense)
    side = int(math.isqrt(D))
    side += int(side * side != D)
    S2 = side * side
    m1 = conv3x3_to_matrix(np.asarray(params["u1_w"]), side)
    m2 = conv3x3_to_matrix(np.asarray(params["u2_w"]), side)
    m3 = conv3x3_to_matrix(np.asarray(params["u3_w"]), side)
    u1 = _round_up(m1.shape[1], LANE)
    u2 = _round_up(m2.shape[1], LANE)
    u3 = _round_up(m3.shape[1], LANE)
    prep["m1_pad"] = _pad2(jnp.asarray(m1), Dp, u1)
    prep["m2_pad"] = _pad2(jnp.asarray(m2), u1, u2)
    prep["m3_pad"] = _pad2(jnp.asarray(m3), u2, u3)
    prep["b1_pad"] = _pad2(jnp.repeat(params["u1_b"], S2)[None, :], 1, u1)
    prep["b2_pad"] = _pad2(jnp.repeat(params["u2_b"], S2)[None, :], 1, u2)
    prep["b3_pad"] = _pad2(jnp.repeat(params["u3_b"], S2)[None, :], 1, u3)

    return jax.tree_util.tree_map(lambda a: a.astype(jnp.float32), prep)


# ----------------------------------------------------------------------------
# AVIT_DINO forward (jitted; ONE Pallas kernel + tiny fused XLA glue)
# ----------------------------------------------------------------------------
def make_forward(cfg, image_shape):
    p = cfg["patch_size"]
    D = cfg["embed_dim"]
    Hh = cfg["lstm_hidden"]
    mask_ratio = cfg["mask_ratio"]
    B, C, Hi, Wi = image_shape
    hp, wp = Hi // p, Wi // p
    n_patches = hp * wp
    N = n_patches + 1
    BN = B * N
    BNp = _round_up(BN, 8)
    K = C * p * p
    side = int(math.isqrt(D))
    side += int(side * side != D)

    def fwd(matrix, params, prep, rng):
        x = matrix.astype(jnp.float32)

        # patchify (NCHW -> [B, N, C*p*p], CLS rows = zeros) -- cheap fused glue
        patches = x.reshape(B, C, hp, p, wp, p).transpose(0, 2, 4, 1, 3, 5)
        patches = patches.reshape(B, n_patches, K)
        pz = jnp.concatenate([jnp.zeros((B, 1, K), jnp.float32), patches], axis=1)
        patches_bt = jnp.pad(pz.reshape(BN, K), ((0, BNp - BN), (0, 0)))
        patches_tb = jnp.pad(pz.transpose(1, 0, 2).reshape(BN, K),
                             ((0, BNp - BN), (0, 0)))

        # random mask (True = keep); passed as a (BNp, 1) f32 column
        keep = jax.random.uniform(rng, (B, N)) > mask_ratio
        keep_col = jnp.pad(keep.reshape(BN, 1).astype(jnp.float32),
                           ((0, BNp - BN), (0, 0)), constant_values=1.0)

        # teacher weights == student weights at init -> embedding computed once
        # TODO(synk): with EMA-updated teacher weights a second embed pass is needed.
        snorm, tnorm, seg, probs = fused_forward_call(
            prep, patches_bt, patches_tb, keep_col, B=B, N=N, Hh=Hh)

        snorm3 = snorm[:BN, :D].reshape(B, N, D)
        student_cls = snorm3[:, 0]
        student_patches = snorm3[:, 1:]

        tnorm3 = tnorm[:BN, :D].reshape(B, N, D)
        teacher_cls = tnorm3[:, 0] - params["center"]
        teacher_patches = tnorm3[:, 1:]

        # matches the PyTorch reference (~mask expanded to (B, N, D))
        mask_indices = jnp.broadcast_to((~keep)[:, :, None], (B, N, D))

        student_segmentation = seg[:B, :side * side].reshape(B, 1, side, side)

        teacher_boundary_probs = probs[:BN, 0].reshape(N, B).T            # (B, N)
        # TODO(synk): EdgeAwareBiLSTM boundary-adjustment rule unavailable; threshold.
        teacher_boundary_adj = (teacher_boundary_probs > 0.5).astype(jnp.float32)

        # TODO(synk): _adjust_epsilon / _update_center are training-time buffer
        # side effects with no influence on the returned forward outputs; omitted.

        return {
            "student_cls": student_cls,
            "student_patches": student_patches,
            "teacher_cls": teacher_cls,
            "teacher_patches": teacher_patches,
            "mask_indices": mask_indices,
            "student_segmentation": student_segmentation,
            "teacher_boundary_probs": teacher_boundary_probs,
            "teacher_boundary_adj": teacher_boundary_adj,
        }

    return jax.jit(fwd)


# ----------------------------------------------------------------------------
# Deterministic synthetic parameter init
# ----------------------------------------------------------------------------
def init_params(key, *, embed_dim, patch_size, in_chans, lstm_hidden, unet_ch,
                num_tokens):
    D, H = embed_dim, lstm_hidden
    ks = jax.random.split(key, 20)

    def u(k, shape, fan):
        lim = 1.0 / math.sqrt(fan)
        return jax.random.uniform(k, shape, minval=-lim, maxval=lim)

    p = {
        # TODO(synk): AVIT source not provided; conv_embed stand-in = patch-embed
        # conv (as matmul) + CLS token + learned positional embedding.
        "pe_w": jax.random.normal(ks[0], (in_chans * patch_size * patch_size, D)) * 0.02,
        "pe_b": jnp.zeros((D,)),
        "cls_token": jax.random.normal(ks[1], (1, 1, D)) * 0.02,
        "pos_embed": jax.random.normal(ks[2], (1, num_tokens, D)) * 0.02,
        "mask_token": jax.random.normal(ks[3], (1, D)) * 0.02,
        "center": jnp.zeros((1, D)),
        # EdgeAwareBiLSTM stand-in (fwd + bwd LSTM directions + sigmoid head)
        "lf_wih": u(ks[4], (4 * H, D), H), "lf_whh": u(ks[5], (4 * H, H), H),
        "lf_bih": u(ks[6], (4 * H,), H), "lf_bhh": u(ks[7], (4 * H,), H),
        "lb_wih": u(ks[8], (4 * H, D), H), "lb_whh": u(ks[9], (4 * H, H), H),
        "lb_bih": u(ks[10], (4 * H,), H), "lb_bhh": u(ks[11], (4 * H,), H),
        "cls_w": u(ks[12], (2 * H, 1), 2 * H), "cls_b": jnp.zeros((1,)),
        # TODO(synk): SimplifiedUNet source not provided; stand-in = 3 conv3x3
        # layers (relu, relu, sigmoid), 1->8->8->1 channels, constant resolution.
        "u1_w": u(ks[13], (unet_ch, 1, 3, 3), 9), "u1_b": jnp.zeros((unet_ch,)),
        "u2_w": u(ks[14], (unet_ch, unet_ch, 3, 3), unet_ch * 9),
        "u2_b": jnp.zeros((unet_ch,)),
        "u3_w": u(ks[15], (1, unet_ch, 3, 3), unet_ch * 9), "u3_b": jnp.zeros((1,)),
    }
    return jax.tree_util.tree_map(lambda a: a.astype(jnp.float32), p)


# ----------------------------------------------------------------------------
if __name__ == "__main__":
    cfg = dict(embed_dim=32, patch_size=4, mask_ratio=0.3,
               epsilon_base=0.5, lstm_hidden=32)
    B, C, Himg, Wimg = 2, 1, 16, 16
    num_patches = (Himg // cfg["patch_size"]) * (Wimg // cfg["patch_size"])
    num_tokens = num_patches + 1

    root = jax.random.PRNGKey(0)
    k_data, k_param, k_mask = jax.random.split(root, 3)

    params = init_params(k_param, embed_dim=cfg["embed_dim"],
                         patch_size=cfg["patch_size"], in_chans=C,
                         lstm_hidden=cfg["lstm_hidden"], unet_ch=8,
                         num_tokens=num_tokens)
    prep = prepare_params(params, cfg, (B, C, Himg, Wimg))
    matrix = jax.random.normal(k_data, (B, C, Himg, Wimg), dtype=jnp.float32)

    forward = make_forward(cfg, (B, C, Himg, Wimg))
    outputs = forward(matrix, params, prep, k_mask)
    jax.block_until_ready(jax.tree_util.tree_leaves(outputs))

    # sanity on shapes implied by the reference forward
    D = cfg["embed_dim"]
    assert outputs["student_cls"].shape == (B, D)
    assert outputs["student_patches"].shape == (B, num_patches, D)
    assert outputs["teacher_cls"].shape == (B, D)
    assert outputs["teacher_patches"].shape == (B, num_patches, D)
    assert outputs["mask_indices"].shape == (B, num_tokens, D)
    assert outputs["student_segmentation"].shape == (B, 1, 6, 6)
    assert outputs["teacher_boundary_probs"].shape == (B, num_tokens)
    assert outputs["teacher_boundary_adj"].shape == (B, num_tokens)
    assert bool(jnp.all(jnp.isfinite(outputs["student_segmentation"])))
    assert bool(jnp.all(jnp.isfinite(outputs["teacher_boundary_probs"])))

    print("KERNEL_OK")
</pallas_src>

<mosaic_0001>
module attributes {stable_mosaic.version = 11 : i64} {
  func.func @kernel(%arg0: i32, %arg1: memref<40x16xf32, #tpu.memory_space<vmem>>, %arg2: memref<40x16xf32, #tpu.memory_space<vmem>>, %arg3: memref<40x1xf32, #tpu.memory_space<vmem>>, %arg4: memref<16x128xf32, #tpu.memory_space<vmem>>, %arg5: memref<40x128xf32, #tpu.memory_space<vmem>>, %arg6: memref<1x128xf32, #tpu.memory_space<vmem>>, %arg7: memref<16x256xf32, #tpu.memory_space<vmem>>, %arg8: memref<40x256xf32, #tpu.memory_space<vmem>>, %arg9: memref<32x128xf32, #tpu.memory_space<vmem>>, %arg10: memref<32x128xf32, #tpu.memory_space<vmem>>, %arg11: memref<64x128xf32, #tpu.memory_space<vmem>>, %arg12: memref<1x128xf32, #tpu.memory_space<vmem>>, %arg13: memref<8x40xf32, #tpu.memory_space<vmem>>, %arg14: memref<128x384xf32, #tpu.memory_space<vmem>>, %arg15: memref<1x384xf32, #tpu.memory_space<vmem>>, %arg16: memref<384x384xf32, #tpu.memory_space<vmem>>, %arg17: memref<1x384xf32, #tpu.memory_space<vmem>>, %arg18: memref<384x128xf32, #tpu.memory_space<vmem>>, %arg19: memref<1x128xf32, #tpu.memory_space<vmem>>, %arg20: memref<40x128xf32, #tpu.memory_space<vmem>>, %arg21: memref<40x128xf32, #tpu.memory_space<vmem>>, %arg22: memref<8x128xf32, #tpu.memory_space<vmem>>, %arg23: memref<40x128xf32, #tpu.memory_space<vmem>>, %arg24: memref<40x128xf32, #tpu.memory_space<vmem>>, %arg25: memref<40x128xf32, #tpu.memory_space<vmem>>, %arg26: memref<40x32xf32, #tpu.memory_space<vmem>>, %arg27: memref<40x32xf32, #tpu.memory_space<vmem>>) attributes {dimension_semantics = [#tpu.dimension_semantics<arbitrary>], iteration_bounds = array<i64: 1>, scalar_prefetch = 0 : i64, scratch_operands = 4 : i64, tpu.core_type = #tpu.core_type<tc>, window_params = [{pipeline_mode = #tpu.pipeline_mode<synchronous>, transform_indices = @transform_0, window_bounds = array<i64: 40, 16>}, {pipeline_mode = #tpu.pipeline_mode<synchronous>, transform_indices = @transform_1, window_bounds = array<i64: 40, 16>}, {pipeline_mode = #tpu.pipeline_mode<synchronous>, transform_indices = @transform_2, window_bounds = array<i64: 40, 1>}, {pipeline_mode = #tpu.pipeline_mode<synchronous>, transform_indices = @transform_3, window_bounds = array<i64: 16, 128>}, {pipeline_mode = #tpu.pipeline_mode<synchronous>, transform_indices = @transform_4, window_bounds = array<i64: 40, 128>}, {pipeline_mode = #tpu.pipeline_mode<synchronous>, transform_indices = @transform_5, window_bounds = array<i64: 1, 128>}, {pipeline_mode = #tpu.pipeline_mode<synchronous>, transform_indices = @transform_6, window_bounds = array<i64: 16, 256>}, {pipeline_mode = #tpu.pipeline_mode<synchronous>, transform_indices = @transform_7, window_bounds = array<i64: 40, 256>}, {pipeline_mode = #tpu.pipeline_mode<synchronous>, transform_indices = @transform_8, window_bounds = array<i64: 32, 128>}, {pipeline_mode = #tpu.pipeline_mode<synchronous>, transform_indices = @transform_9, window_bounds = array<i64: 32, 128>}, {pipeline_mode = #tpu.pipeline_mode<synchronous>, transform_indices = @transform_10, window_bounds = array<i64: 64, 128>}, {pipeline_mode = #tpu.pipeline_mode<synchronous>, transform_indices = @transform_11, window_bounds = array<i64: 1, 128>}, {pipeline_mode = #tpu.pipeline_mode<synchronous>, transform_indices = @transform_12, window_bounds = array<i64: 8, 40>}, {pipeline_mode = #tpu.pipeline_mode<synchronous>, transform_indices = @transform_13, window_bounds = array<i64: 128, 384>}, {pipeline_mode = #tpu.pipeline_mode<synchronous>, transform_indices = @transform_14, window_bounds = array<i64: 1, 384>}, {pipeline_mode = #tpu.pipeline_mode<synchronous>, transform_indices = @transform_15, window_bounds = array<i64: 384, 384>}, {pipeline_mode = #tpu.pipeline_mode<synchronous>, transform_indices = @transform_16, window_bounds = array<i64: 1, 384>}, {pipeline_mode = #tpu.pipeline_mode<synchronous>, transform_indices = @transform_17, window_bounds = array<i64: 384, 128>}, {pipeline_mode = #tpu.pipeline_mode<synchronous>, transform_indices = @transform_18, window_bounds = array<i64: 1, 128>}, {pipeline_mode = #tpu.pipeline_mode<synchronous>, transform_indices = @transform_19, window_bounds = array<i64: 40, 128>}, {pipeline_mode = #tpu.pipeline_mode<synchronous>, transform_indices = @transform_20, window_bounds = array<i64: 40, 128>}, {pipeline_mode = #tpu.pipeline_mode<synchronous>, transform_indices = @transform_21, window_bounds = array<i64: 8, 128>}, {pipeline_mode = #tpu.pipeline_mode<synchronous>, transform_indices = @transform_22, window_bounds = array<i64: 40, 128>}]} {
    %c0 = arith.constant 0 : index
    %c0_0 = arith.constant 0 : index
    %0 = vector.load %arg1[%c0, %c0_0] : memref<40x16xf32, #tpu.memory_space<vmem>>, vector<40x16xf32>
    %c0_1 = arith.constant 0 : index
    %c0_2 = arith.constant 0 : index
    %1 = vector.load %arg4[%c0_1, %c0_2] : memref<16x128xf32, #tpu.memory_space<vmem>>, vector<16x128xf32>
    %cst = arith.constant dense<0.000000e+00> : vector<40x128xf32>
    %2 = tpu.matmul %0, %1, %cst {dimension_numbers = #tpu.dot_dimension_numbers<[1], [0], [0], [1], [0, 0, 1, 1], [], []>} : vector<40x16xf32>, vector<16x128xf32>, vector<40x128xf32> -> vector<40x128xf32>
    %c0_3 = arith.constant 0 : index
    %c0_4 = arith.constant 0 : index
    %3 = vector.load %arg5[%c0_3, %c0_4] : memref<40x128xf32, #tpu.memory_space<vmem>>, vector<40x128xf32>
    %4 = arith.addf %2, %3 : vector<40x128xf32>
    %5 = arith.mulf %4, %4 : vector<40x128xf32>
    %cst_5 = arith.constant dense<0.000000e+00> : vector<40xf32>
    %6 = vector.multi_reduction <add>, %5, %cst_5 [1] : vector<40x128xf32> to vector<40xf32>
    %7 = vector.shape_cast %6 : vector<40xf32> to vector<40x1xf32>
    %cst_6 = arith.constant 1.000000e-24 : f32
    %8 = vector.broadcast %cst_6 : f32 to vector<40x1xf32>
    %9 = arith.addf %7, %8 : vector<40x1xf32>
    %10 = math.rsqrt %9 : vector<40x1xf32>
    %11 = vector.broadcast %10 : vector<40x1xf32> to vector<40x128xf32>
    %12 = arith.mulf %4, %11 : vector<40x128xf32>
    %c0_7 = arith.constant 0 : index
    %c0_8 = arith.constant 0 : index
    %13 = vector.load %arg21[%c0_7, %c0_8] : memref<40x128xf32, #tpu.memory_space<vmem>>, vector<40x128xf32>
    tpu.vector_store %arg21[%c0_7, %c0_8], %12 {strides = array<i32>} : memref<40x128xf32, #tpu.memory_space<vmem>>, vector<40x128xf32>,
    %c0_9 = arith.constant 0 : index
    %c0_10 = arith.constant 0 : index
    %14 = vector.load %arg3[%c0_9, %c0_10] : memref<40x1xf32, #tpu.memory_space<vmem>>, vector<40x1xf32>
    %15 = vector.shape_cast %14 : vector<40x1xf32> to vector<40x1xf32>
    %16 = vector.broadcast %15 : vector<40x1xf32> to vector<40x128xf32>
    %c0_11 = arith.constant 0 : index
    %c0_12 = arith.constant 0 : index
    %17 = vector.load %arg6[%c0_11, %c0_12] : memref<1x128xf32, #tpu.memory_space<vmem>>, vector<1x128xf32>
    %18 = vector.shape_cast %17 : vector<1x128xf32> to vector<1x128xf32>
    %19 = vector.broadcast %18 : vector<1x128xf32> to vector<40x128xf32>
    %cst_13 = arith.constant 5.000000e-01 : f32
    %20 = vector.broadcast %cst_13 : f32 to vector<40x128xf32>
    %21 = arith.cmpf ogt, %16, %20 : vector<40x128xf32>
    %22 = arith.select %21, %4, %19 : vector<40x128xi1>, vector<40x128xf32>
    %23 = arith.mulf %22, %22 : vector<40x128xf32>
    %cst_14 = arith.constant dense<0.000000e+00> : vector<40xf32>
    %24 = vector.multi_reduction <add>, %23, %cst_14 [1] : vector<40x128xf32> to vector<40xf32>
    %25 = vector.shape_cast %24 : vector<40xf32> to vector<40x1xf32>
    %cst_15 = arith.constant 1.000000e-24 : f32
    %26 = vector.broadcast %cst_15 : f32 to vector<40x1xf32>
    %27 = arith.addf %25, %26 : vector<40x1xf32>
    %28 = math.rsqrt %27 : vector<40x1xf32>
    %29 = vector.broadcast %28 : vector<40x1xf32> to vector<40x128xf32>
    %30 = arith.mulf %22, %29 : vector<40x128xf32>
    %c0_16 = arith.constant 0 : index
    %c0_17 = arith.constant 0 : index
    %31 = vector.load %arg20[%c0_16, %c0_17] : memref<40x128xf32, #tpu.memory_space<vmem>>, vector<40x128xf32>
    tpu.vector_store %arg20[%c0_16, %c0_17], %30 {strides = array<i32>} : memref<40x128xf32, #tpu.memory_space<vmem>>, vector<40x128xf32>,
    %c0_18 = arith.constant 0 : index
    %c0_19 = arith.constant 0 : index
    %32 = vector.load %arg13[%c0_18, %c0_19] : memref<8x40xf32, #tpu.memory_space<vmem>>, vector<8x40xf32>
    %cst_20 = arith.constant dense<0.000000e+00> : vector<8x128xf32>
    %33 = tpu.matmul %32, %30, %cst_20 {dimension_numbers = #tpu.dot_dimension_numbers<[1], [0], [0], [1], [0, 0, 1, 1], [], []>} : vector<8x40xf32>, vector<40x128xf32>, vector<8x128xf32> -> vector<8x128xf32>
    %c0_21 = arith.constant 0 : index
    %c0_22 = arith.constant 0 : index
    %34 = vector.load %arg14[%c0_21, %c0_22] : memref<128x384xf32, #tpu.memory_space<vmem>>, vector<128x384xf32>
    %cst_23 = arith.constant dense<0.000000e+00> : vector<8x384xf32>
    %35 = tpu.matmul %33, %34, %cst_23 {dimension_numbers = #tpu.dot_dimension_numbers<[1], [0], [0], [1], [0, 0, 1, 1], [], []>} : vector<8x128xf32>, vector<128x384xf32>, vector<8x384xf32> -> vector<8x384xf32>
    %c0_24 = arith.constant 0 : index
    %c0_25 = arith.constant 0 : index
    %36 = vector.load %arg15[%c0_24, %c0_25] : memref<1x384xf32, #tpu.memory_space<vmem>>, vector<1x384xf32>
    %37 = vector.broadcast %36 : vector<1x384xf32> to vector<8x384xf32>
    %38 = arith.addf %35, %37 : vector<8x384xf32>
    %cst_26 = arith.constant 0.000000e+00 : f32
    %39 = vector.broadcast %cst_26 : f32 to vector<8x384xf32>
    %40 = arith.maximumf %38, %39 : vector<8x384xf32>
    %c0_27 = arith.constant 0 : index
    %c0_28 = arith.constant 0 : index
    %41 = vector.load %arg16[%c0_27, %c0_28] : memref<384x384xf32, #tpu.memory_space<vmem>>, vector<384x384xf32>
    %cst_29 = arith.constant dense<0.000000e+00> : vector<8x384xf32>
    %42 = tpu.matmul %40, %41, %cst_29 {dimension_numbers = #tpu.dot_dimension_numbers<[1], [0], [0], [1], [0, 0, 1, 1], [], []>} : vector<8x384xf32>, vector<384x384xf32>, vector<8x384xf32> -> vector<8x384xf32>
    %c0_30 = arith.constant 0 : index
    %c0_31 = arith.constant 0 : index
    %43 = vector.load %arg17[%c0_30, %c0_31] : memref<1x384xf32, #tpu.memory_space<vmem>>, vector<1x384xf32>
    %44 = vector.broadcast %43 : vector<1x384xf32> to vector<8x384xf32>
    %45 = arith.addf %42, %44 : vector<8x384xf32>
    %cst_32 = arith.constant 0.000000e+00 : f32
    %46 = vector.broadcast %cst_32 : f32 to vector<8x384xf32>
    %47 = arith.maximumf %45, %46 : vector<8x384xf32>
    %c0_33 = arith.constant 0 : index
    %c0_34 = arith.constant 0 : index
    %48 = vector.load %arg18[%c0_33, %c0_34] : memref<384x128xf32, #tpu.memory_space<vmem>>, vector<384x128xf32>
    %cst_35 = arith.constant dense<0.000000e+00> : vector<8x128xf32>
    %49 = tpu.matmul %47, %48, %cst_35 {dimension_numbers = #tpu.dot_dimension_numbers<[1], [0], [0], [1], [0, 0, 1, 1], [], []>} : vector<8x384xf32>, vector<384x128xf32>, vector<8x128xf32> -> vector<8x128xf32>
    %c0_36 = arith.constant 0 : index
    %c0_37 = arith.constant 0 : index
    %50 = vector.load %arg19[%c0_36, %c0_37] : memref<1x128xf32, #tpu.memory_space<vmem>>, vector<1x128xf32>
    %51 = vector.broadcast %50 : vector<1x128xf32> to vector<8x128xf32>
    %52 = arith.addf %49, %51 : vector<8x128xf32>
    %53 = arith.negf %52 : vector<8x128xf32>
    %54 = math.exp %53 : vector<8x128xf32>
    %cst_38 = arith.constant 1.000000e+00 : f32
    %55 = vector.broadcast %cst_38 : f32 to vector<8x128xf32>
    %56 = arith.addf %55, %54 : vector<8x128xf32>
    %57 = arith.divf %55, %56 : vector<8x128xf32>
    %c0_39 = arith.constant 0 : index
    %c0_40 = arith.constant 0 : index
    %58 = vector.load %arg22[%c0_39, %c0_40] : memref<8x128xf32, #tpu.memory_space<vmem>>, vector<8x128xf32>
    tpu.vector_store %arg22[%c0_39, %c0_40], %57 {strides = array<i32>} : memref<8x128xf32, #tpu.memory_space<vmem>>, vector<8x128xf32>,
    %c0_41 = arith.constant 0 : index
    %c0_42 = arith.constant 0 : index
    %59 = vector.load %arg2[%c0_41, %c0_42] : memref<40x16xf32, #tpu.memory_space<vmem>>, vector<40x16xf32>
    %c0_43 = arith.constant 0 : index
    %c0_44 = arith.constant 0 : index
    %60 = vector.load %arg7[%c0_43, %c0_44] : memref<16x256xf32, #tpu.memory_space<vmem>>, vector<16x256xf32>
    %cst_45 = arith.constant dense<0.000000e+00> : vector<40x256xf32>
    %61 = tpu.matmul %59, %60, %cst_45 {dimension_numbers = #tpu.dot_dimension_numbers<[1], [0], [0], [1], [0, 0, 1, 1], [], []>} : vector<40x16xf32>, vector<16x256xf32>, vector<40x256xf32> -> vector<40x256xf32>
    %c0_46 = arith.constant 0 : index
    %c0_47 = arith.constant 0 : index
    %62 = vector.load %arg8[%c0_46, %c0_47] : memref<40x256xf32, #tpu.memory_space<vmem>>, vector<40x256xf32>
    %63 = arith.addf %61, %62 : vector<40x256xf32>
    %64 = vector.extract_strided_slice %63 {offsets = [0, 0], sizes = [40, 128], strides = [1, 1]} : vector<40x256xf32> to vector<40x128xf32>
    %c0_48 = arith.constant 0 : index
    %c0_49 = arith.constant 0 : index
    %65 = vector.load %arg24[%c0_48, %c0_49] : memref<40x128xf32, #tpu.memory_space<vmem>>, vector<40x128xf32>
    tpu.vector_store %arg24[%c0_48, %c0_49], %64 {strides = array<i32>} : memref<40x128xf32, #tpu.memory_space<vmem>>, vector<40x128xf32>,
    %66 = vector.extract_strided_slice %63 {offsets = [0, 128], sizes = [40, 128], strides = [1, 1]} : vector<40x256xf32> to vector<40x128xf32>
    %c0_50 = arith.constant 0 : index
    %c0_51 = arith.constant 0 : index
    %67 = vector.load %arg25[%c0_50, %c0_51] : memref<40x128xf32, #tpu.memory_space<vmem>>, vector<40x128xf32>
    tpu.vector_store %arg25[%c0_50, %c0_51], %66 {strides = array<i32>} : memref<40x128xf32, #tpu.memory_space<vmem>>, vector<40x128xf32>,
    %cst_52 = arith.constant 0.000000e+00 : f32
    %68 = vector.broadcast %cst_52 : f32 to vector<40x32xf32>
    %c0_53 = arith.constant 0 : index
    %c0_54 = arith.constant 0 : index
    %69 = vector.load %arg26[%c0_53, %c0_54] : memref<40x32xf32, #tpu.memory_space<vmem>>, vector<40x32xf32>
    tpu.vector_store %arg26[%c0_53, %c0_54], %68 {strides = array<i32>} : memref<40x32xf32, #tpu.memory_space<vmem>>, vector<40x32xf32>,
    %cst_55 = arith.constant 0.000000e+00 : f32
    %70 = vector.broadcast %cst_55 : f32 to vector<40x32xf32>
    %c0_56 = arith.constant 0 : index
    %c0_57 = arith.constant 0 : index
    %71 = vector.load %arg27[%c0_56, %c0_57] : memref<40x32xf32, #tpu.memory_space<vmem>>, vector<40x32xf32>
    tpu.vector_store %arg27[%c0_56, %c0_57], %70 {strides = array<i32>} : memref<40x32xf32, #tpu.memory_space<vmem>>, vector<40x32xf32>,
    %cst_58 = arith.constant 0.000000e+00 : f32
    %72 = vector.broadcast %cst_58 : f32 to vector<2x32xf32>
    %cst_59 = arith.constant 0.000000e+00 : f32
    %73 = vector.broadcast %cst_59 : f32 to vector<2x32xf32>
    %cst_60 = arith.constant 0.000000e+00 : f32
    %74 = vector.broadcast %cst_60 : f32 to vector<2x32xf32>
    %cst_61 = arith.constant 0.000000e+00 : f32
    %75 = vector.broadcast %cst_61 : f32 to vector<2x32xf32>
    %c0_62 = arith.constant 0 : index
    %c0_63 = arith.constant 0 : index
    %76 = vector.load %arg24[%c0_62, %c0_63] : memref<40x128xf32, #tpu.memory_space<vmem>>, vector<2x128xf32>
    %c0_64 = arith.constant 0 : index
    %c0_65 = arith.constant 0 : index
    %77 = vector.load %arg9[%c0_64, %c0_65] : memref<32x128xf32, #tpu.memory_space<vmem>>, vector<32x128xf32>
    %cst_66 = arith.constant dense<0.000000e+00> : vector<2x128xf32>
    %78 = tpu.matmul %72, %77, %cst_66 {dimension_numbers = #tpu.dot_dimension_numbers<[1], [0], [0], [1], [0, 0, 1, 1], [], []>} : vector<2x32xf32>, vector<32x128xf32>, vector<2x128xf32> -> vector<2x128xf32>
    %79 = arith.addf %76, %78 : vector<2x128xf32>
    %c32 = arith.constant 32 : index
    %c0_67 = arith.constant 0 : index
    %80 = vector.load %arg25[%c32, %c0_67] : memref<40x128xf32, #tpu.memory_space<vmem>>, vector<2x128xf32>
    %c0_68 = arith.constant 0 : index
    %c0_69 = arith.constant 0 : index
    %81 = vector.load %arg10[%c0_68, %c0_69] : memref<32x128xf32, #tpu.memory_space<vmem>>, vector<32x128xf32>
    %cst_70 = arith.constant dense<0.000000e+00> : vector<2x128xf32>
    %82 = tpu.matmul %74, %81, %cst_70 {dimension_numbers = #tpu.dot_dimension_numbers<[1], [0], [0], [1], [0, 0, 1, 1], [], []>} : vector<2x32xf32>, vector<32x128xf32>, vector<2x128xf32> -> vector<2x128xf32>
    %83 = arith.addf %80, %82 : vector<2x128xf32>
    %84 = vector.extract_strided_slice %79 {offsets = [0, 0], sizes = [2, 32], strides = [1, 1]} : vector<2x128xf32> to vector<2x32xf32>
    %85 = arith.negf %84 : vector<2x32xf32>
    %86 = math.exp %85 : vector<2x32xf32>
    %cst_71 = arith.constant 1.000000e+00 : f32
    %87 = vector.broadcast %cst_71 : f32 to vector<2x32xf32>
    %88 = arith.addf %87, %86 : vector<2x32xf32>
    %89 = arith.divf %87, %88 : vector<2x32xf32>
    %90 = vector.extract_strided_slice %79 {offsets = [0, 32], sizes = [2, 32], strides = [1, 1]} : vector<2x128xf32> to vector<2x32xf32>
    %91 = arith.negf %90 : vector<2x32xf32>
    %92 = math.exp %91 : vector<2x32xf32>
    %cst_72 = arith.constant 1.000000e+00 : f32
    %93 = vector.broadcast %cst_72 : f32 to vector<2x32xf32>
    %94 = arith.addf %93, %92 : vector<2x32xf32>
    %95 = arith.divf %93, %94 : vector<2x32xf32>
    %96 = vector.extract_strided_slice %79 {offsets = [0, 64], sizes = [2, 32], strides = [1, 1]} : vector<2x128xf32> to vector<2x32xf32>
    %97 = math.tanh %96 : vector<2x32xf32>
    %98 = vector.extract_strided_slice %79 {offsets = [0, 96], sizes = [2, 32], strides = [1, 1]} : vector<2x128xf32> to vector<2x32xf32>
    %99 = arith.negf %98 : vector<2x32xf32>
    %100 = math.exp %99 : vector<2x32xf32>
    %cst_73 = arith.constant 1.000000e+00 : f32
    %101 = vector.broadcast %cst_73 : f32 to vector<2x32xf32>
    %102 = arith.addf %101, %100 : vector<2x32xf32>
    %103 = arith.divf %101, %102 : vector<2x32xf32>
    %104 = arith.mulf %95, %73 : vector<2x32xf32>
    %105 = arith.mulf %89, %97 : vector<2x32xf32>
    %106 = arith.addf %104, %105 : vector<2x32xf32>
    %107 = math.tanh %106 : vector<2x32xf32>
    %108 = arith.mulf %103, %107 : vector<2x32xf32>
    %109 = vector.extract_strided_slice %83 {offsets = [0, 0], sizes = [2, 32], strides = [1, 1]} : vector<2x128xf32> to vector<2x32xf32>
    %110 = arith.negf %109 : vector<2x32xf32>
    %111 = math.exp %110 : vector<2x32xf32>
    %cst_74 = arith.constant 1.000000e+00 : f32
    %112 = vector.broadcast %cst_74 : f32 to vector<2x32xf32>
    %113 = arith.addf %112, %111 : vector<2x32xf32>
    %114 = arith.divf %112, %113 : vector<2x32xf32>
    %115 = vector.extract_strided_slice %83 {offsets = [0, 32], sizes = [2, 32], strides = [1, 1]} : vector<2x128xf32> to vector<2x32xf32>
    %116 = arith.negf %115 : vector<2x32xf32>
    %117 = math.exp %116 : vector<2x32xf32>
    %cst_75 = arith.constant 1.000000e+00 : f32
    %118 = vector.broadcast %cst_75 : f32 to vector<2x32xf32>
    %119 = arith.addf %118, %117 : vector<2x32xf32>
    %120 = arith.divf %118, %119 : vector<2x32xf32>
    %121 = vector.extract_strided_slice %83 {offsets = [0, 64], sizes = [2, 32], strides = [1, 1]} : vector<2x128xf32> to vector<2x32xf32>
    %122 = math.tanh %121 : vector<2x32xf32>
    %123 = vector.extract_strided_slice %83 {offsets = [0, 96], sizes = [2, 32], strides = [1, 1]} : vector<2x128xf32> to vector<2x32xf32>
    %124 = arith.negf %123 : vector<2x32xf32>
    %125 = math.exp %124 : vector<2x32xf32>
    %cst_76 = arith.constant 1.000000e+00 : f32
    %126 = vector.broadcast %cst_76 : f32 to vector<2x32xf32>
    %127 = arith.addf %126, %125 : vector<2x32xf32>
    %128 = arith.divf %126, %127 : vector<2x32xf32>
    %129 = arith.mulf %120, %75 : vector<2x32xf32>
    %130 = arith.mulf %114, %122 : vector<2x32xf32>
    %131 = arith.addf %129, %130 : vector<2x32xf32>
    %132 = math.tanh %131 : vector<2x32xf32>
    %133 = arith.mulf %128, %132 : vector<2x32xf32>
    %c0_77 = arith.constant 0 : index
    %c0_78 = arith.constant 0 : index
    %134 = vector.load %arg26[%c0_77, %c0_78] : memref<40x32xf32, #tpu.memory_space<vmem>>, vector<2x32xf32>
    tpu.vector_store %arg26[%c0_77, %c0_78], %108 {strides = array<i32>} : memref<40x32xf32, #tpu.memory_space<vmem>>, vector<2x32xf32>,
    %c32_79 = arith.constant 32 : index
    %c0_80 = arith.constant 0 : index
    %135 = vector.load %arg27[%c32_79, %c0_80] : memref<40x32xf32, #tpu.memory_space<vmem>>, vector<2x32xf32>
    tpu.vector_store %arg27[%c32_79, %c0_80], %133 {strides = array<i32>} : memref<40x32xf32, #tpu.memory_space<vmem>>, vector<2x32xf32>,
    %c2 = arith.constant 2 : index
    %c0_81 = arith.constant 0 : index
    %136 = vector.load %arg24[%c2, %c0_81] : memref<40x128xf32, #tpu.memory_space<vmem>>, vector<2x128xf32>
    %c0_82 = arith.constant 0 : index
    %c0_83 = arith.constant 0 : index
    %137 = vector.load %arg9[%c0_82, %c0_83] : memref<32x128xf32, #tpu.memory_space<vmem>>, vector<32x128xf32>
    %cst_84 = arith.constant dense<0.000000e+00> : vector<2x128xf32>
    %138 = tpu.matmul %108, %137, %cst_84 {dimension_numbers = #tpu.dot_dimension_numbers<[1], [0], [0], [1], [0, 0, 1, 1], [], []>} : vector<2x32xf32>, vector<32x128xf32>, vector<2x128xf32> -> vector<2x128xf32>
    %139 = arith.addf %136, %138 : vector<2x128xf32>
    %c30 = arith.constant 30 : index
    %c0_85 = arith.constant 0 : index
    %140 = vector.load %arg25[%c30, %c0_85] : memref<40x128xf32, #tpu.memory_space<vmem>>, vector<2x128xf32>
    %c0_86 = arith.constant 0 : index
    %c0_87 = arith.constant 0 : index
    %141 = vector.load %arg10[%c0_86, %c0_87] : memref<32x128xf32, #tpu.memory_space<vmem>>, vector<32x128xf32>
    %cst_88 = arith.constant dense<0.000000e+00> : vector<2x128xf32>
    %142 = tpu.matmul %133, %141, %cst_88 {dimension_numbers = #tpu.dot_dimension_numbers<[1], [0], [0], [1], [0, 0, 1, 1], [], []>} : vector<2x32xf32>, vector<32x128xf32>, vector<2x128xf32> -> vector<2x128xf32>
    %143 = arith.addf %140, %142 : vector<2x128xf32>
    %144 = vector.extract_strided_slice %139 {offsets = [0, 0], sizes = [2, 32], strides = [1, 1]} : vector<2x128xf32> to vector<2x32xf32>
    %145 = arith.negf %144 : vector<2x32xf32>
    %146 = math.exp %145 : vector<2x32xf32>
    %cst_89 = arith.constant 1.000000e+00 : f32
    %147 = vector.broadcast %cst_89 : f32 to vector<2x32xf32>
    %148 = arith.addf %147, %146 : vector<2x32xf32>
    %149 = arith.divf %147, %148 : vector<2x32xf32>
    %150 = vector.extract_strided_slice %139 {offsets = [0, 32], sizes = [2, 32], strides = [1, 1]} : vector<2x128xf32> to vector<2x32xf32>
    %151 = arith.negf %150 : vector<2x32xf32>
    %152 = math.exp %151 : vector<2x32xf32>
    %cst_90 = arith.constant 1.000000e+00 : f32
    %153 = vector.broadcast %cst_90 : f32 to vector<2x32xf32>
    %154 = arith.addf %153, %152 : vector<2x32xf32>
    %155 = arith.divf %153, %154 : vector<2x32xf32>
    %156 = vector.extract_strided_slice %139 {offsets = [0, 64], sizes = [2, 32], strides = [1, 1]} : vector<2x128xf32> to vector<2x32xf32>
    %157 = math.tanh %156 : vector<2x32xf32>
    %158 = vector.extract_strided_slice %139 {offsets = [0, 96], sizes = [2, 32], strides = [1, 1]} : vector<2x128xf32> to vector<2x32xf32>
    %159 = arith.negf %158 : vector<2x32xf32>
    %160 = math.exp %159 : vector<2x32xf32>
    %cst_91 = arith.constant 1.000000e+00 : f32
    %161 = vector.broadcast %cst_91 : f32 to vector<2x32xf32>
    %162 = arith.addf %161, %160 : vector<2x32xf32>
    %163 = arith.divf %161, %162 : vector<2x32xf32>
    %164 = arith.mulf %155, %106 : vector<2x32xf32>
    %165 = arith.mulf %149, %157 : vector<2x32xf32>
    %166 = arith.addf %164, %165 : vector<2x32xf32>
    %167 = math.tanh %166 : vector<2x32xf32>
    %168 = arith.mulf %163, %167 : vector<2x32xf32>
    %169 = vector.extract_strided_slice %143 {offsets = [0, 0], sizes = [2, 32], strides = [1, 1]} : vector<2x128xf32> to vector<2x32xf32>
    %170 = arith.negf %169 : vector<2x32xf32>
    %171 = math.exp %170 : vector<2x32xf32>
    %cst_92 = arith.constant 1.000000e+00 : f32
    %172 = vector.broadcast %cst_92 : f32 to vector<2x32xf32>
    %173 = arith.addf %172, %171 : vector<2x32xf32>
    %174 = arith.divf %172, %173 : vector<2x32xf32>
    %175 = vector.extract_strided_slice %143 {offsets = [0, 32], sizes = [2, 32], strides = [1, 1]} : vector<2x128xf32> to vector<2x32xf32>
    %176 = arith.negf %175 : vector<2x32xf32>
    %177 = math.exp %176 : vector<2x32xf32>
    %cst_93 = arith.constant 1.000000e+00 : f32
    %178 = vector.broadcast %cst_93 : f32 to vector<2x32xf32>
    %179 = arith.addf %178, %177 : vector<2x32xf32>
    %180 = arith.divf %178, %179 : vector<2x32xf32>
    %181 = vector.extract_strided_slice %143 {offsets = [0, 64], sizes = [2, 32], strides = [1, 1]} : vector<2x128xf32> to vector<2x32xf32>
    %182 = math.tanh %181 : vector<2x32xf32>
    %183 = vector.extract_strided_slice %143 {offsets = [0, 96], sizes = [2, 32], strides = [1, 1]} : vector<2x128xf32> to vector<2x32xf32>
    %184 = arith.negf %183 : vector<2x32xf32>
    %185 = math.exp %184 : vector<2x32xf32>
    %cst_94 = arith.constant 1.000000e+00 : f32
    %186 = vector.broadcast %cst_94 : f32 to vector<2x32xf32>
    %187 = arith.addf %186, %185 : vector<2x32xf32>
    %188 = arith.divf %186, %187 : vector<2x32xf32>
    %189 = arith.mulf %180, %131 : vector<2x32xf32>
    %190 = arith.mulf %174, %182 : vector<2x32xf32>
    %191 = arith.addf %189, %190 : vector<2x32xf32>
    %192 = math.tanh %191 : vector<2x32xf32>
    %193 = arith.mulf %188, %192 : vector<2x32xf32>
    %c2_95 = arith.constant 2 : index
    %c0_96 = arith.constant 0 : index
    %194 = vector.load %arg26[%c2_95, %c0_96] : memref<40x32xf32, #tpu.memory_space<vmem>>, vector<2x32xf32>
    tpu.vector_store %arg26[%c2_95, %c0_96], %168 {strides = array<i32>} : memref<40x32xf32, #tpu.memory_space<vmem>>, vector<2x32xf32>,
    %c30_97 = arith.constant 30 : index
    %c0_98 = arith.constant 0 : index
    %195 = vector.load %arg27[%c30_97, %c0_98] : memref<40x32xf32, #tpu.memory_space<vmem>>, vector<2x32xf32>
    tpu.vector_store %arg27[%c30_97, %c0_98], %193 {strides = array<i32>} : memref<40x32xf32, #tpu.memory_space<vmem>>, vector<2x32xf32>,
    %c4 = arith.constant 4 : index
    %c0_99 = arith.constant 0 : index
    %196 = vector.load %arg24[%c4, %c0_99] : memref<40x128xf32, #tpu.memory_space<vmem>>, vector<2x128xf32>
    %c0_100 = arith.constant 0 : index
    %c0_101 = arith.constant 0 : index
    %197 = vector.load %arg9[%c0_100, %c0_101] : memref<32x128xf32, #tpu.memory_space<vmem>>, vector<32x128xf32>
    %cst_102 = arith.constant dense<0.000000e+00> : vector<2x128xf32>
    %198 = tpu.matmul %168, %197, %cst_102 {dimension_numbers = #tpu.dot_dimension_numbers<[1], [0], [0], [1], [0, 0, 1, 1], [], []>} : vector<2x32xf32>, vector<32x128xf32>, vector<2x128xf32> -> vector<2x128xf32>
    %199 = arith.addf %196, %198 : vector<2x128xf32>
    %c28 = arith.constant 28 : index
    %c0_103 = arith.constant 0 : index
    %200 = vector.load %arg25[%c28, %c0_103] : memref<40x128xf32, #tpu.memory_space<vmem>>, vector<2x128xf32>
    %c0_104 = arith.constant 0 : index
    %c0_105 = arith.constant 0 : index
    %201 = vector.load %arg10[%c0_104, %c0_105] : memref<32x128xf32, #tpu.memory_space<vmem>>, vector<32x128xf32>
    %cst_106 = arith.constant dense<0.000000e+00> : vector<2x128xf32>
    %202 = tpu.matmul %193, %201, %cst_106 {dimension_numbers = #tpu.dot_dimension_numbers<[1], [0], [0], [1], [0, 0, 1, 1], [], []>} : vector<2x32xf32>, vector<32x128xf32>, vector<2x128xf32> -> vector<2x128xf32>
    %203 = arith.addf %200, %202 : vector<2x128xf32>
    %204 = vector.extract_strided_slice %199 {offsets = [0, 0], sizes = [2, 32], strides = [1, 1]} : vector<2x128xf32> to vector<2x32xf32>
    %205 = arith.negf %204 : vector<2x32xf32>
    %206 = math.exp %205 : vector<2x32xf32>
    %cst_107 = arith.constant 1.000000e+00 : f32
    %207 = vector.broadcast %cst_107 : f32 to vector<2x32xf32>
    %208 = arith.addf %207, %206 : vector<2x32xf32>
    %209 = arith.divf %207, %208 : vector<2x32xf32>
    %210 = vector.extract_strided_slice %199 {offsets = [0, 32], sizes = [2, 32], strides = [1, 1]} : vector<2x128xf32> to vector<2x32xf32>
    %211 = arith.negf %210 : vector<2x32xf32>
    %212 = math.exp %211 : vector<2x32xf32>
    %cst_108 = arith.constant 1.000000e+00 : f32
    %213 = vector.broadcast %cst_108 : f32 to vector<2x32xf32>
    %214 = arith.addf %213, %212 : vector<2x32xf32>
    %215 = arith.divf %213, %214 : vector<2x32xf32>
    %216 = vector.extract_strided_slice %199 {offsets = [0, 64], sizes = [2, 32], strides = [1, 1]} : vector<2x128xf32> to vector<2x32xf32>
    %217 = math.tanh %216 : vector<2x32xf32>
    %218 = vector.extract_strided_slice %199 {offsets = [0, 96], sizes = [2, 32], strides = [1, 1]} : vector<2x128xf32> to vector<2x32xf32>
    %219 = arith.negf %218 : vector<2x32xf32>
    %220 = math.exp %219 : vector<2x32xf32>
    %cst_109 = arith.constant 1.000000e+00 : f32
    %221 = vector.broadcast %cst_109 : f32 to vector<2x32xf32>
    %222 = arith.addf %221, %220 : vector<2x32xf32>
    %223 = arith.divf %221, %222 : vector<2x32xf32>
    %224 = arith.mulf %215, %166 : vector<2x32xf32>
    %225 = arith.mulf %209, %217 : vector<2x32xf32>
    %226 = arith.addf %224, %225 : vector<2x32xf32>
    %227 = math.tanh %226 : vector<2x32xf32>
    %228 = arith.mulf %223, %227 : vector<2x32xf32>
    %229 = vector.extract_strided_slice %203 {offsets = [0, 0], sizes = [2, 32], strides = [1, 1]} : vector<2x128xf32> to vector<2x32xf32>
    %230 = arith.negf %229 : vector<2x32xf32>
    %231 = math.exp %230 : vector<2x32xf32>
    %cst_110 = arith.constant 1.000000e+00 : f32
    %232 = vector.broadcast %cst_110 : f32 to vector<2x32xf32>
    %233 = arith.addf %232, %231 : vector<2x32xf32>
    %234 = arith.divf %232, %233 : vector<2x32xf32>
    %235 = vector.extract_strided_slice %203 {offsets = [0, 32], sizes = [2, 32], strides = [1, 1]} : vector<2x128xf32> to vector<2x32xf32>
    %236 = arith.negf %235 : vector<2x32xf32>
    %237 = math.exp %236 : vector<2x32xf32>
    %cst_111 = arith.constant 1.000000e+00 : f32
    %238 = vector.broadcast %cst_111 : f32 to vector<2x32xf32>
    %239 = arith.addf %238, %237 : vector<2x32xf32>
    %240 = arith.divf %238, %239 : vector<2x32xf32>
    %241 = vector.extract_strided_slice %203 {offsets = [0, 64], sizes = [2, 32], strides = [1, 1]} : vector<2x128xf32> to vector<2x32xf32>
    %242 = math.tanh %241 : vector<2x32xf32>
    %243 = vector.extract_strided_slice %203 {offsets = [0, 96], sizes = [2, 32], strides = [1, 1]} : vector<2x128xf32> to vector<2x32xf32>
    %244 = arith.negf %243 : vector<2x32xf32>
    %245 = math.exp %244 : vector<2x32xf32>
    %cst_112 = arith.constant 1.000000e+00 : f32
    %246 = vector.broadcast %cst_112 : f32 to vector<2x32xf32>
    %247 = arith.addf %246, %245 : vector<2x32xf32>
    %248 = arith.divf %246, %247 : vector<2x32xf32>
    %249 = arith.mulf %240, %191 : vector<2x32xf32>
    %250 = arith.mulf %234, %242 : vector<2x32xf32>
    %251 = arith.addf %249, %250 : vector<2x32xf32>
    %252 = math.tanh %251 : vector<2x32xf32>
    %253 = arith.mulf %248, %252 : vector<2x32xf32>
    %c4_113 = arith.constant 4 : index
    %c0_114 = arith.constant 0 : index
    %254 = vector.load %arg26[%c4_113, %c0_114] : memref<40x32xf32, #tpu.memory_space<vmem>>, vector<2x32xf32>
    tpu.vector_store %arg26[%c4_113, %c0_114], %228 {strides = array<i32>} : memref<40x32xf32, #tpu.memory_space<vmem>>, vector<2x32xf32>,
    %c28_115 = arith.constant 28 : index
    %c0_116 = arith.constant 0 : index
    %255 = vector.load %arg27[%c28_115, %c0_116] : memref<40x32xf32, #tpu.memory_space<vmem>>, vector<2x32xf32>
    tpu.vector_store %arg27[%c28_115, %c0_116], %253 {strides = array<i32>} : memref<40x32xf32, #tpu.memory_space<vmem>>, vector<2x32xf32>,
    %c6 = arith.constant 6 : index
    %c0_117 = arith.constant 0 : index
    %256 = vector.load %arg24[%c6, %c0_117] : memref<40x128xf32, #tpu.memory_space<vmem>>, vector<2x128xf32>
    %c0_118 = arith.constant 0 : index
    %c0_119 = arith.constant 0 : index
    %257 = vector.load %arg9[%c0_118, %c0_119] : memref<32x128xf32, #tpu.memory_space<vmem>>, vector<32x128xf32>
    %cst_120 = arith.constant dense<0.000000e+00> : vector<2x128xf32>
    %258 = tpu.matmul %228, %257, %cst_120 {dimension_numbers = #tpu.dot_dimension_numbers<[1], [0], [0], [1], [0, 0, 1, 1], [], []>} : vector<2x32xf32>, vector<32x128xf32>, vector<2x128xf32> -> vector<2x128xf32>
    %259 = arith.addf %256, %258 : vector<2x128xf32>
    %c26 = arith.constant 26 : index
    %c0_121 = arith.constant 0 : index
    %260 = vector.load %arg25[%c26, %c0_121] : memref<40x128xf32, #tpu.memory_space<vmem>>, vector<2x128xf32>
    %c0_122 = arith.constant 0 : index
    %c0_123 = arith.constant 0 : index
    %261 = vector.load %arg10[%c0_122, %c0_123] : memref<32x128xf32, #tpu.memory_space<vmem>>, vector<32x128xf32>
    %cst_124 = arith.constant dense<0.000000e+00> : vector<2x128xf32>
    %262 = tpu.matmul %253, %261, %cst_124 {dimension_numbers = #tpu.dot_dimension_numbers<[1], [0], [0], [1], [0, 0, 1, 1], [], []>} : vector<2x32xf32>, vector<32x128xf32>, vector<2x128xf32> -> vector<2x128xf32>
    %263 = arith.addf %260, %262 : vector<2x128xf32>
    %264 = vector.extract_strided_slice %259 {offsets = [0, 0], sizes = [2, 32], strides = [1, 1]} : vector<2x128xf32> to vector<2x32xf32>
    %265 = arith.negf %264 : vector<2x32xf32>
    %266 = math.exp %265 : vector<2x32xf32>
    %cst_125 = arith.constant 1.000000e+00 : f32
    %267 = vector.broadcast %cst_125 : f32 to vector<2x32xf32>
    %268 = arith.addf %267, %266 : vector<2x32xf32>
    %269 = arith.divf %267, %268 : vector<2x32xf32>
    %270 = vector.extract_strided_slice %259 {offsets = [0, 32], sizes = [2, 32], strides = [1, 1]} : vector<2x128xf32> to vector<2x32xf32>
    %271 = arith.negf %270 : vector<2x32xf32>
    %272 = math.exp %271 : vector<2x32xf32>
    %cst_126 = arith.constant 1.000000e+00 : f32
    %273 = vector.broadcast %cst_126 : f32 to vector<2x32xf32>
    %274 = arith.addf %273, %272 : vector<2x32xf32>
    %275 = arith.divf %273, %274 : vector<2x32xf32>
    %276 = vector.extract_strided_slice %259 {offsets = [0, 64], sizes = [2, 32], strides = [1, 1]} : vector<2x128xf32> to vector<2x32xf32>
    %277 = math.tanh %276 : vector<2x32xf32>
    %278 = vector.extract_strided_slice %259 {offsets = [0, 96], sizes = [2, 32], strides = [1, 1]} : vector<2x128xf32> to vector<2x32xf32>
    %279 = arith.negf %278 : vector<2x32xf32>
    %280 = math.exp %279 : vector<2x32xf32>
    %cst_127 = arith.constant 1.000000e+00 : f32
    %281 = vector.broadcast %cst_127 : f32 to vector<2x32xf32>
    %282 = arith.addf %281, %280 : vector<2x32xf32>
    %283 = arith.divf %281, %282 : vector<2x32xf32>
    %284 = arith.mulf %275, %226 : vector<2x32xf32>
    %285 = arith.mulf %269, %277 : vector<2x32xf32>
    %286 = arith.addf %284, %285 : vector<2x32xf32>
    %287 = math.tanh %286 : vector<2x32xf32>
    %288 = arith.mulf %283, %287 : vector<2x32xf32>
    %289 = vector.extract_strided_slice %263 {offsets = [0, 0], sizes = [2, 32], strides = [1, 1]} : vector<2x128xf32> to vector<2x32xf32>
    %290 = arith.negf %289 : vector<2x32xf32>
    %291 = math.exp %290 : vector<2x32xf32>
    %cst_128 = arith.constant 1.000000e+00 : f32
    %292 = vector.broadcast %cst_128 : f32 to vector<2x32xf32>
    %293 = arith.addf %292, %291 : vector<2x32xf32>
    %294 = arith.divf %292, %293 : vector<2x32xf32>
    %295 = vector.extract_strided_slice %263 {offsets = [0, 32], sizes = [2, 32], strides = [1, 1]} : vector<2x128xf32> to vector<2x32xf32>
    %296 = arith.negf %295 : vector<2x32xf32>
    %297 = math.exp %296 : vector<2x32xf32>
    %cst_129 = arith.constant 1.000000e+00 : f32
    %298 = vector.broadcast %cst_129 : f32 to vector<2x32xf32>
    %299 = arith.addf %298, %297 : vector<2x32xf32>
    %300 = arith.divf %298, %299 : vector<2x32xf32>
    %301 = vector.extract_strided_slice %263 {offsets = [0, 64], sizes = [2, 32], strides = [1, 1]} : vector<2x128xf32> to vector<2x32xf32>
    %302 = math.tanh %301 : vector<2x32xf32>
    %303 = vector.extract_strided_slice %263 {offsets = [0, 96], sizes = [2, 32], strides = [1, 1]} : vector<2x128xf32> to vector<2x32xf32>
    %304 = arith.negf %303 : vector<2x32xf32>
    %305 = math.exp %304 : vector<2x32xf32>
    %cst_130 = arith.constant 1.000000e+00 : f32
    %306 = vector.broadcast %cst_130 : f32 to vector<2x32xf32>
    %307 = arith.addf %306, %305 : vector<2x32xf32>
    %308 = arith.divf %306, %307 : vector<2x32xf32>
    %309 = arith.mulf %300, %251 : vector<2x32xf32>
    %310 = arith.mulf %294, %302 : vector<2x32xf32>
    %311 = arith.addf %309, %310 : vector<2x32xf32>
    %312 = math.tanh %311 : vector<2x32xf32>
    %313 = arith.mulf %308, %312 : vector<2x32xf32>
    %c6_131 = arith.constant 6 : index
    %c0_132 = arith.constant 0 : index
    %314 = vector.load %arg26[%c6_131, %c0_132] : memref<40x32xf32, #tpu.memory_space<vmem>>, vector<2x32xf32>
    tpu.vector_store %arg26[%c6_131, %c0_132], %288 {strides = array<i32>} : memref<40x32xf32, #tpu.memory_space<vmem>>, vector<2x32xf32>,
    %c26_133 = arith.constant 26 : index
    %c0_134 = arith.constant 0 : index
    %315 = vector.load %arg27[%c26_133, %c0_134] : memref<40x32xf32, #tpu.memory_space<vmem>>, vector<2x32xf32>
    tpu.vector_store %arg27[%c26_133, %c0_134], %313 {strides = array<i32>} : memref<40x32xf32, #tpu.memory_space<vmem>>, vector<2x32xf32>,
    %c8 = arith.constant 8 : index
    %c0_135 = arith.constant 0 : index
    %316 = vector.load %arg24[%c8, %c0_135] : memref<40x128xf32, #tpu.memory_space<vmem>>, vector<2x128xf32>
    %c0_136 = arith.constant 0 : index
    %c0_137 = arith.constant 0 : index
    %317 = vector.load %arg9[%c0_136, %c0_137] : memref<32x128xf32, #tpu.memory_space<vmem>>, vector<32x128xf32>
    %cst_138 = arith.constant dense<0.000000e+00> : vector<2x128xf32>
    %318 = tpu.matmul %288, %317, %cst_138 {dimension_numbers = #tpu.dot_dimension_numbers<[1], [0], [0], [1], [0, 0, 1, 1], [], []>} : vector<2x32xf32>, vector<32x128xf32>, vector<2x128xf32> -> vector<2x128xf32>
    %319 = arith.addf %316, %318 : vector<2x128xf32>
    %c24 = arith.constant 24 : index
    %c0_139 = arith.constant 0 : index
    %320 = vector.load %arg25[%c24, %c0_139] : memref<40x128xf32, #tpu.memory_space<vmem>>, vector<2x128xf32>
    %c0_140 = arith.constant 0 : index
    %c0_141 = arith.constant 0 : index
    %321 = vector.load %arg10[%c0_140, %c0_141] : memref<32x128xf32, #tpu.memory_space<vmem>>, vector<32x128xf32>
    %cst_142 = arith.constant dense<0.000000e+00> : vector<2x128xf32>
    %322 = tpu.matmul %313, %321, %cst_142 {dimension_numbers = #tpu.dot_dimension_numbers<[1], [0], [0], [1], [0, 0, 1, 1], [], []>} : vector<2x32xf32>, vector<32x128xf32>, vector<2x128xf32> -> vector<2x128xf32>
    %323 = arith.addf %320, %322 : vector<2x128xf32>
    %324 = vector.extract_strided_slice %319 {offsets = [0, 0], sizes = [2, 32], strides = [1, 1]} : vector<2x128xf32> to vector<2x32xf32>
    %325 = arith.negf %324 : vector<2x32xf32>
    %326 = math.exp %325 : vector<2x32xf32>
    %cst_143 = arith.constant 1.000000e+00 : f32
    %327 = vector.broadcast %cst_143 : f32 to vector<2x32xf32>
    %328 = arith.addf %327, %326 : vector<2x32xf32>
    %329 = arith.divf %327, %328 : vector<2x32xf32>
    %330 = vector.extract_strided_slice %319 {offsets = [0, 32], sizes = [2, 32], strides = [1, 1]} : vector<2x128xf32> to vector<2x32xf32>
    %331 = arith.negf %330 : vector<2x32xf32>
    %332 = math.exp %331 : vector<2x32xf32>
    %cst_144 = arith.constant 1.000000e+00 : f32
    %333 = vector.broadcast %cst_144 : f32 to vector<2x32xf32>
    %334 = arith.addf %333, %332 : vector<2x32xf32>
    %335 = arith.divf %333, %334 : vector<2x32xf32>
    %336 = vector.extract_strided_slice %319 {offsets = [0, 64], sizes = [2, 32], strides = [1, 1]} : vector<2x128xf32> to vector<2x32xf32>
    %337 = math.tanh %336 : vector<2x32xf32>
    %338 = vector.extract_strided_slice %319 {offsets = [0, 96], sizes = [2, 32], strides = [1, 1]} : vector<2x128xf32> to vector<2x32xf32>
    %339 = arith.negf %338 : vector<2x32xf32>
    %340 = math.exp %339 : vector<2x32xf32>
    %cst_145 = arith.constant 1.000000e+00 : f32
    %341 = vector.broadcast %cst_145 : f32 to vector<2x32xf32>
    %342 = arith.addf %341, %340 : vector<2x32xf32>
    %343 = arith.divf %341, %342 : vector<2x32xf32>
    %344 = arith.mulf %335, %286 : vector<2x32xf32>
    %345 = arith.mulf %329, %337 : vector<2x32xf32>
    %346 = arith.addf %344, %345 : vector<2x32xf32>
    %347 = math.tanh %346 : vector<2x32xf32>
    %348 = arith.mulf %343, %347 : vector<2x32xf32>
    %349 = vector.extract_strided_slice %323 {offsets = [0, 0], sizes = [2, 32], strides = [1, 1]} : vector<2x128xf32> to vector<2x32xf32>
    %350 = arith.negf %349 : vector<2x32xf32>
    %351 = math.exp %350 : vector<2x32xf32>
    %cst_146 = arith.constant 1.000000e+00 : f32
    %352 = vector.broadcast %cst_146 : f32 to vector<2x32xf32>
    %353 = arith.addf %352, %351 : vector<2x32xf32>
    %354 = arith.divf %352, %353 : vector<2x32xf32>
    %355 = vector.extract_strided_slice %323 {offsets = [0, 32], sizes = [2, 32], strides = [1, 1]} : vector<2x128xf32> to vector<2x32xf32>
    %356 = arith.negf %355 : vector<2x32xf32>
    %357 = math.exp %356 : vector<2x32xf32>
    %cst_147 = arith.constant 1.000000e+00 : f32
    %358 = vector.broadcast %cst_147 : f32 to vector<2x32xf32>
    %359 = arith.addf %358, %357 : vector<2x32xf32>
    %360 = arith.divf %358, %359 : vector<2x32xf32>
    %361 = vector.extract_strided_slice %323 {offsets = [0, 64], sizes = [2, 32], strides = [1, 1]} : vector<2x128xf32> to vector<2x32xf32>
    %362 = math.tanh %361 : vector<2x32xf32>
    %363 = vector.extract_strided_slice %323 {offsets = [0, 96], sizes = [2, 32], strides = [1, 1]} : vector<2x128xf32> to vector<2x32xf32>
    %364 = arith.negf %363 : vector<2x32xf32>
    %365 = math.exp %364 : vector<2x32xf32>
    %cst_148 = arith.constant 1.000000e+00 : f32
    %366 = vector.broadcast %cst_148 : f32 to vector<2x32xf32>
    %367 = arith.addf %366, %365 : vector<2x32xf32>
    %368 = arith.divf %366, %367 : vector<2x32xf32>
    %369 = arith.mulf %360, %311 : vector<2x32xf32>
    %370 = arith.mulf %354, %362 : vector<2x32xf32>
    %371 = arith.addf %369, %370 : vector<2x32xf32>
    %372 = math.tanh %371 : vector<2x32xf32>
    %373 = arith.mulf %368, %372 : vector<2x32xf32>
    %c8_149 = arith.constant 8 : index
    %c0_150 = arith.constant 0 : index
    %374 = vector.load %arg26[%c8_149, %c0_150] : memref<40x32xf32, #tpu.memory_space<vmem>>, vector<2x32xf32>
    tpu.vector_store %arg26[%c8_149, %c0_150], %348 {strides = array<i32>} : memref<40x32xf32, #tpu.memory_space<vmem>>, vector<2x32xf32>,
    %c24_151 = arith.constant 24 : index
    %c0_152 = arith.constant 0 : index
    %375 = vector.load %arg27[%c24_151, %c0_152] : memref<40x32xf32, #tpu.memory_space<vmem>>, vector<2x32xf32>
    tpu.vector_store %arg27[%c24_151, %c0_152], %373 {strides = array<i32>} : memref<40x32xf32, #tpu.memory_space<vmem>>, vector<2x32xf32>,
    %c10 = arith.constant 10 : index
    %c0_153 = arith.constant 0 : index
    %376 = vector.load %arg24[%c10, %c0_153] : memref<40x128xf32, #tpu.memory_space<vmem>>, vector<2x128xf32>
    %c0_154 = arith.constant 0 : index
    %c0_155 = arith.constant 0 : index
    %377 = vector.load %arg9[%c0_154, %c0_155] : memref<32x128xf32, #tpu.memory_space<vmem>>, vector<32x128xf32>
    %cst_156 = arith.constant dense<0.000000e+00> : vector<2x128xf32>
    %378 = tpu.matmul %348, %377, %cst_156 {dimension_numbers = #tpu.dot_dimension_numbers<[1], [0], [0], [1], [0, 0, 1, 1], [], []>} : vector<2x32xf32>, vector<32x128xf32>, vector<2x128xf32> -> vector<2x128xf32>
    %379 = arith.addf %376, %378 : vector<2x128xf32>
    %c22 = arith.constant 22 : index
    %c0_157 = arith.constant 0 : index
    %380 = vector.load %arg25[%c22, %c0_157] : memref<40x128xf32, #tpu.memory_space<vmem>>, vector<2x128xf32>
    %c0_158 = arith.constant 0 : index
    %c0_159 = arith.constant 0 : index
    %381 = vector.load %arg10[%c0_158, %c0_159] : memref<32x128xf32, #tpu.memory_space<vmem>>, vector<32x128xf32>
    %cst_160 = arith.constant dense<0.000000e+00> : vector<2x128xf32>
    %382 = tpu.matmul %373, %381, %cst_160 {dimension_numbers = #tpu.dot_dimension_numbers<[1], [0], [0], [1], [0, 0, 1, 1], [], []>} : vector<2x32xf32>, vector<32x128xf32>, vector<2x128xf32> -> vector<2x128xf32>
    %383 = arith.addf %380, %382 : vector<2x128xf32>
    %384 = vector.extract_strided_slice %379 {offsets = [0, 0], sizes = [2, 32], strides = [1, 1]} : vector<2x128xf32> to vector<2x32xf32>
    %385 = arith.negf %384 : vector<2x32xf32>
    %386 = math.exp %385 : vector<2x32xf32>
    %cst_161 = arith.constant 1.000000e+00 : f32
    %387 = vector.broadcast %cst_161 : f32 to vector<2x32xf32>
    %388 = arith.addf %387, %386 : vector<2x32xf32>
    %389 = arith.divf %387, %388 : vector<2x32xf32>
    %390 = vector.extract_strided_slice %379 {offsets = [0, 32], sizes = [2, 32], strides = [1, 1]} : vector<2x128xf32> to vector<2x32xf32>
    %391 = arith.negf %390 : vector<2x32xf32>
    %392 = math.exp %391 : vector<2x32xf32>
    %cst_162 = arith.constant 1.000000e+00 : f32
    %393 = vector.broadcast %cst_162 : f32 to vector<2x32xf32>
    %394 = arith.addf %393, %392 : vector<2x32xf32>
    %395 = arith.divf %393, %394 : vector<2x32xf32>
    %396 = vector.extract_strided_slice %379 {offsets = [0, 64], sizes = [2, 32], strides = [1, 1]} : vector<2x128xf32> to vector<2x32xf32>
    %397 = math.tanh %396 : vector<2x32xf32>
    %398 = vector.extract_strided_slice %379 {offsets = [0, 96], sizes = [2, 32], strides = [1, 1]} : vector<2x128xf32> to vector<2x32xf32>
    %399 = arith.negf %398 : vector<2x32xf32>
    %400 = math.exp %399 : vector<2x32xf32>
    %cst_163 = arith.constant 1.000000e+00 : f32
    %401 = vector.broadcast %cst_163 : f32 to vector<2x32xf32>
    %402 = arith.addf %401, %400 : vector<2x32xf32>
    %403 = arith.divf %401, %402 : vector<2x32xf32>
    %404 = arith.mulf %395, %346 : vector<2x32xf32>
    %405 = arith.mulf %389, %397 : vector<2x32xf32>
    %406 = arith.addf %404, %405 : vector<2x32xf32>
    %407 = math.tanh %406 : vector<2x32xf32>
    %408 = arith.mulf %403, %407 : vector<2x32xf32>
    %409 = vector.extract_strided_slice %383 {offsets = [0, 0], sizes = [2, 32], strides = [1, 1]} : vector<2x128xf32> to vector<2x32xf32>
    %410 = arith.negf %409 : vector<2x32xf32>
    %411 = math.exp %410 : vector<2x32xf32>
    %cst_164 = arith.constant 1.000000e+00 : f32
    %412 = vector.broadcast %cst_164 : f32 to vector<2x32xf32>
    %413 = arith.addf %412, %411 : vector<2x32xf32>
    %414 = arith.divf %412, %413 : vector<2x32xf32>
    %415 = vector.extract_strided_slice %383 {offsets = [0, 32], sizes = [2, 32], strides = [1, 1]} : vector<2x128xf32> to vector<2x32xf32>
    %416 = arith.negf %415 : vector<2x32xf32>
    %417 = math.exp %416 : vector<2x32xf32>
    %cst_165 = arith.constant 1.000000e+00 : f32
    %418 = vector.broadcast %cst_165 : f32 to vector<2x32xf32>
    %419 = arith.addf %418, %417 : vector<2x32xf32>
    %420 = arith.divf %418, %419 : vector<2x32xf32>
    %421 = vector.extract_strided_slice %383 {offsets = [0, 64], sizes = [2, 32], strides = [1, 1]} : vector<2x128xf32> to vector<2x32xf32>
    %422 = math.tanh %421 : vector<2x32xf32>
    %423 = vector.extract_strided_slice %383 {offsets = [0, 96], sizes = [2, 32], strides = [1, 1]} : vector<2x128xf32> to vector<2x32xf32>
    %424 = arith.negf %423 : vector<2x32xf32>
    %425 = math.exp %424 : vector<2x32xf32>
    %cst_166 = arith.constant 1.000000e+00 : f32
    %426 = vector.broadcast %cst_166 : f32 to vector<2x32xf32>
    %427 = arith.addf %426, %425 : vector<2x32xf32>
    %428 = arith.divf %426, %427 : vector<2x32xf32>
    %429 = arith.mulf %420, %371 : vector<2x32xf32>
    %430 = arith.mulf %414, %422 : vector<2x32xf32>
    %431 = arith.addf %429, %430 : vector<2x32xf32>
    %432 = math.tanh %431 : vector<2x32xf32>
    %433 = arith.mulf %428, %432 : vector<2x32xf32>
    %c10_167 = arith.constant 10 : index
    %c0_168 = arith.constant 0 : index
    %434 = vector.load %arg26[%c10_167, %c0_168] : memref<40x32xf32, #tpu.memory_space<vmem>>, vector<2x32xf32>
    tpu.vector_store %arg26[%c10_167, %c0_168], %408 {strides = array<i32>} : memref<40x32xf32, #tpu.memory_space<vmem>>, vector<2x32xf32>,
    %c22_169 = arith.constant 22 : index
    %c0_170 = arith.constant 0 : index
    %435 = vector.load %arg27[%c22_169, %c0_170] : memref<40x32xf32, #tpu.memory_space<vmem>>, vector<2x32xf32>
    tpu.vector_store %arg27[%c22_169, %c0_170], %433 {strides = array<i32>} : memref<40x32xf32, #tpu.memory_space<vmem>>, vector<2x32xf32>,
    %c12 = arith.constant 12 : index
    %c0_171 = arith.constant 0 : index
    %436 = vector.load %arg24[%c12, %c0_171] : memref<40x128xf32, #tpu.memory_space<vmem>>, vector<2x128xf32>
    %c0_172 = arith.constant 0 : index
    %c0_173 = arith.constant 0 : index
    %437 = vector.load %arg9[%c0_172, %c0_173] : memref<32x128xf32, #tpu.memory_space<vmem>>, vector<32x128xf32>
    %cst_174 = arith.constant dense<0.000000e+00> : vector<2x128xf32>
    %438 = tpu.matmul %408, %437, %cst_174 {dimension_numbers = #tpu.dot_dimension_numbers<[1], [0], [0], [1], [0, 0, 1, 1], [], []>} : vector<2x32xf32>, vector<32x128xf32>, vector<2x128xf32> -> vector<2x128xf32>
    %439 = arith.addf %436, %438 : vector<2x128xf32>
    %c20 = arith.constant 20 : index
    %c0_175 = arith.constant 0 : index
    %440 = vector.load %arg25[%c20, %c0_175] : memref<40x128xf32, #tpu.memory_space<vmem>>, vector<2x128xf32>
    %c0_176 = arith.constant 0 : index
    %c0_177 = arith.constant 0 : index
    %441 = vector.load %arg10[%c0_176, %c0_177] : memref<32x128xf32, #tpu.memory_space<vmem>>, vector<32x128xf32>
    %cst_178 = arith.constant dense<0.000000e+00> : vector<2x128xf32>
    %442 = tpu.matmul %433, %441, %cst_178 {dimension_numbers = #tpu.dot_dimension_numbers<[1], [0], [0], [1], [0, 0, 1, 1], [], []>} : vector<2x32xf32>, vector<32x128xf32>, vector<2x128xf32> -> vector<2x128xf32>
    %443 = arith.addf %440, %442 : vector<2x128xf32>
    %444 = vector.extract_strided_slice %439 {offsets = [0, 0], sizes = [2, 32], strides = [1, 1]} : vector<2x128xf32> to vector<2x32xf32>
    %445 = arith.negf %444 : vector<2x32xf32>
    %446 = math.exp %445 : vector<2x32xf32>
    %cst_179 = arith.constant 1.000000e+00 : f32
    %447 = vector.broadcast %cst_179 : f32 to vector<2x32xf32>
    %448 = arith.addf %447, %446 : vector<2x32xf32>
    %449 = arith.divf %447, %448 : vector<2x32xf32>
    %450 = vector.extract_strided_slice %439 {offsets = [0, 32], sizes = [2, 32], strides = [1, 1]} : vector<2x128xf32> to vector<2x32xf32>
    %451 = arith.negf %450 : vector<2x32xf32>
    %452 = math.exp %451 : vector<2x32xf32>
    %cst_180 = arith.constant 1.000000e+00 : f32
    %453 = vector.broadcast %cst_180 : f32 to vector<2x32xf32>
    %454 = arith.addf %453, %452 : vector<2x32xf32>
    %455 = arith.divf %453, %454 : vector<2x32xf32>
    %456 = vector.extract_strided_slice %439 {offsets = [0, 64], sizes = [2, 32], strides = [1, 1]} : vector<2x128xf32> to vector<2x32xf32>
    %457 = math.tanh %456 : vector<2x32xf32>
    %458 = vector.extract_strided_slice %439 {offsets = [0, 96], sizes = [2, 32], strides = [1, 1]} : vector<2x128xf32> to vector<2x32xf32>
    %459 = arith.negf %458 : vector<2x32xf32>
    %460 = math.exp %459 : vector<2x32xf32>
    %cst_181 = arith.constant 1.000000e+00 : f32
    %461 = vector.broadcast %cst_181 : f32 to vector<2x32xf32>
    %462 = arith.addf %461, %460 : vector<2x32xf32>
    %463 = arith.divf %461, %462 : vector<2x32xf32>
    %464 = arith.mulf %455, %406 : vector<2x32xf32>
    %465 = arith.mulf %449, %457 : vector<2x32xf32>
    %466 = arith.addf %464, %465 : vector<2x32xf32>
    %467 = math.tanh %466 : vector<2x32xf32>
    %468 = arith.mulf %463, %467 : vector<2x32xf32>
    %469 = vector.extract_strided_slice %443 {offsets = [0, 0], sizes = [2, 32], strides = [1, 1]} : vector<2x128xf32> to vector<2x32xf32>
    %470 = arith.negf %469 : vector<2x32xf32>
    %471 = math.exp %470 : vector<2x32xf32>
    %cst_182 = arith.constant 1.000000e+00 : f32
    %472 = vector.broadcast %cst_182 : f32 to vector<2x32xf32>
    %473 = arith.addf %472, %471 : vector<2x32xf32>
    %474 = arith.divf %472, %473 : vector<2x32xf32>
    %475 = vector.extract_strided_slice %443 {offsets = [0, 32], sizes = [2, 32], strides = [1, 1]} : vector<2x128xf32> to vector<2x32xf32>
    %476 = arith.negf %475 : vector<2x32xf32>
    %477 = math.exp %476 : vector<2x32xf32>
    %cst_183 = arith.constant 1.000000e+00 : f32
    %478 = vector.broadcast %cst_183 : f32 to vector<2x32xf32>
    %479 = arith.addf %478, %477 : vector<2x32xf32>
    %480 = arith.divf %478, %479 : vector<2x32xf32>
    %481 = vector.extract_strided_slice %443 {offsets = [0, 64], sizes = [2, 32], strides = [1, 1]} : vector<2x128xf32> to vector<2x32xf32>
    %482 = math.tanh %481 : vector<2x32xf32>
    %483 = vector.extract_strided_slice %443 {offsets = [0, 96], sizes = [2, 32], strides = [1, 1]} : vector<2x128xf32> to vector<2x32xf32>
    %484 = arith.negf %483 : vector<2x32xf32>
    %485 = math.exp %484 : vector<2x32xf32>
    %cst_184 = arith.constant 1.000000e+00 : f32
    %486 = vector.broadcast %cst_184 : f32 to vector<2x32xf32>
    %487 = arith.addf %486, %485 : vector<2x32xf32>
    %488 = arith.divf %486, %487 : vector<2x32xf32>
    %489 = arith.mulf %480, %431 : vector<2x32xf32>
    %490 = arith.mulf %474, %482 : vector<2x32xf32>
    %491 = arith.addf %489, %490 : vector<2x32xf32>
    %492 = math.tanh %491 : vector<2x32xf32>
    %493 = arith.mulf %488, %492 : vector<2x32xf32>
    %c12_185 = arith.constant 12 : index
    %c0_186 = arith.constant 0 : index
    %494 = vector.load %arg26[%c12_185, %c0_186] : memref<40x32xf32, #tpu.memory_space<vmem>>, vector<2x32xf32>
    tpu.vector_store %arg26[%c12_185, %c0_186], %468 {strides = array<i32>} : memref<40x32xf32, #tpu.memory_space<vmem>>, vector<2x32xf32>,
    %c20_187 = arith.constant 20 : index
    %c0_188 = arith.constant 0 : index
    %495 = vector.load %arg27[%c20_187, %c0_188] : memref<40x32xf32, #tpu.memory_space<vmem>>, vector<2x32xf32>
    tpu.vector_store %arg27[%c20_187, %c0_188], %493 {strides = array<i32>} : memref<40x32xf32, #tpu.memory_space<vmem>>, vector<2x32xf32>,
    %c14 = arith.constant 14 : index
    %c0_189 = arith.constant 0 : index
    %496 = vector.load %arg24[%c14, %c0_189] : memref<40x128xf32, #tpu.memory_space<vmem>>, vector<2x128xf32>
    %c0_190 = arith.constant 0 : index
    %c0_191 = arith.constant 0 : index
    %497 = vector.load %arg9[%c0_190, %c0_191] : memref<32x128xf32, #tpu.memory_space<vmem>>, vector<32x128xf32>
    %cst_192 = arith.constant dense<0.000000e+00> : vector<2x128xf32>
    %498 = tpu.matmul %468, %497, %cst_192 {dimension_numbers = #tpu.dot_dimension_numbers<[1], [0], [0], [1], [0, 0, 1, 1], [], []>} : vector<2x32xf32>, vector<32x128xf32>, vector<2x128xf32> -> vector<2x128xf32>
    %499 = arith.addf %496, %498 : vector<2x128xf32>
    %c18 = arith.constant 18 : index
    %c0_193 = arith.constant 0 : index
    %500 = vector.load %arg25[%c18, %c0_193] : memref<40x128xf32, #tpu.memory_space<vmem>>, vector<2x128xf32>
    %c0_194 = arith.constant 0 : index
    %c0_195 = arith.constant 0 : index
    %501 = vector.load %arg10[%c0_194, %c0_195] : memref<32x128xf32, #tpu.memory_space<vmem>>, vector<32x128xf32>
    %cst_196 = arith.constant dense<0.000000e+00> : vector<2x128xf32>
    %502 = tpu.matmul %493, %501, %cst_196 {dimension_numbers = #tpu.dot_dimension_numbers<[1], [0], [0], [1], [0, 0, 1, 1], [], []>} : vector<2x32xf32>, vector<32x128xf32>, vector<2x128xf32> -> vector<2x128xf32>
    %503 = arith.addf %500, %502 : vector<2x128xf32>
    %504 = vector.extract_strided_slice %499 {offsets = [0, 0], sizes = [2, 32], strides = [1, 1]} : vector<2x128xf32> to vector<2x32xf32>
    %505 = arith.negf %504 : vector<2x32xf32>
    %506 = math.exp %505 : vector<2x32xf32>
    %cst_197 = arith.constant 1.000000e+00 : f32
    %507 = vector.broadcast %cst_197 : f32 to vector<2x32xf32>
    %508 = arith.addf %507, %506 : vector<2x32xf32>
    %509 = arith.divf %507, %508 : vector<2x32xf32>
    %510 = vector.extract_strided_slice %499 {offsets = [0, 32], sizes = [2, 32], strides = [1, 1]} : vector<2x128xf32> to vector<2x32xf32>
    %511 = arith.negf %510 : vector<2x32xf32>
    %512 = math.exp %511 : vector<2x32xf32>
    %cst_198 = arith.constant 1.000000e+00 : f32
    %513 = vector.broadcast %cst_198 : f32 to vector<2x32xf32>
    %514 = arith.addf %513, %512 : vector<2x32xf32>
    %515 = arith.divf %513, %514 : vector<2x32xf32>
    %516 = vector.extract_strided_slice %499 {offsets = [0, 64], sizes = [2, 32], strides = [1, 1]} : vector<2x128xf32> to vector<2x32xf32>
    %517 = math.tanh %516 : vector<2x32xf32>
    %518 = vector.extract_strided_slice %499 {offsets = [0, 96], sizes = [2, 32], strides = [1, 1]} : vector<2x128xf32> to vector<2x32xf32>
    %519 = arith.negf %518 : vector<2x32xf32>
    %520 = math.exp %519 : vector<2x32xf32>
    %cst_199 = arith.constant 1.000000e+00 : f32
    %521 = vector.broadcast %cst_199 : f32 to vector<2x32xf32>
    %522 = arith.addf %521, %520 : vector<2x32xf32>
    %523 = arith.divf %521, %522 : vector<2x32xf32>
    %524 = arith.mulf %515, %466 : vector<2x32xf32>
    %525 = arith.mulf %509, %517 : vector<2x32xf32>
    %526 = arith.addf %524, %525 : vector<2x32xf32>
    %527 = math.tanh %526 : vector<2x32xf32>
    %528 = arith.mulf %523, %527 : vector<2x32xf32>
    %529 = vector.extract_strided_slice %503 {offsets = [0, 0], sizes = [2, 32], strides = [1, 1]} : vector<2x128xf32> to vector<2x32xf32>
    %530 = arith.negf %529 : vector<2x32xf32>
    %531 = math.exp %530 : vector<2x32xf32>
    %cst_200 = arith.constant 1.000000e+00 : f32
    %532 = vector.broadcast %cst_200 : f32 to vector<2x32xf32>
    %533 = arith.addf %532, %531 : vector<2x32xf32>
    %534 = arith.divf %532, %533 : vector<2x32xf32>
    %535 = vector.extract_strided_slice %503 {offsets = [0, 32], sizes = [2, 32], strides = [1, 1]} : vector<2x128xf32> to vector<2x32xf32>
    %536 = arith.negf %535 : vector<2x32xf32>
    %537 = math.exp %536 : vector<2x32xf32>
    %cst_201 = arith.constant 1.000000e+00 : f32
    %538 = vector.broadcast %cst_201 : f32 to vector<2x32xf32>
    %539 = arith.addf %538, %537 : vector<2x32xf32>
    %540 = arith.divf %538, %539 : vector<2x32xf32>
    %541 = vector.extract_strided_slice %503 {offsets = [0, 64], sizes = [2, 32], strides = [1, 1]} : vector<2x128xf32> to vector<2x32xf32>
    %542 = math.tanh %541 : vector<2x32xf32>
    %543 = vector.extract_strided_slice %503 {offsets = [0, 96], sizes = [2, 32], strides = [1, 1]} : vector<2x128xf32> to vector<2x32xf32>
    %544 = arith.negf %543 : vector<2x32xf32>
    %545 = math.exp %544 : vector<2x32xf32>
    %cst_202 = arith.constant 1.000000e+00 : f32
    %546 = vector.broadcast %cst_202 : f32 to vector<2x32xf32>
    %547 = arith.addf %546, %545 : vector<2x32xf32>
    %548 = arith.divf %546, %547 : vector<2x32xf32>
    %549 = arith.mulf %540, %491 : vector<2x32xf32>
    %550 = arith.mulf %534, %542 : vector<2x32xf32>
    %551 = arith.addf %549, %550 : vector<2x32xf32>
    %552 = math.tanh %551 : vector<2x32xf32>
    %553 = arith.mulf %548, %552 : vector<2x32xf32>
    %c14_203 = arith.constant 14 : index
    %c0_204 = arith.constant 0 : index
    %554 = vector.load %arg26[%c14_203, %c0_204] : memref<40x32xf32, #tpu.memory_space<vmem>>, vector<2x32xf32>
    tpu.vector_store %arg26[%c14_203, %c0_204], %528 {strides = array<i32>} : memref<40x32xf32, #tpu.memory_space<vmem>>, vector<2x32xf32>,
    %c18_205 = arith.constant 18 : index
    %c0_206 = arith.constant 0 : index
    %555 = vector.load %arg27[%c18_205, %c0_206] : memref<40x32xf32, #tpu.memory_space<vmem>>, vector<2x32xf32>
    tpu.vector_store %arg27[%c18_205, %c0_206], %553 {strides = array<i32>} : memref<40x32xf32, #tpu.memory_space<vmem>>, vector<2x32xf32>,
    %c16 = arith.constant 16 : index
    %c0_207 = arith.constant 0 : index
    %556 = vector.load %arg24[%c16, %c0_207] : memref<40x128xf32, #tpu.memory_space<vmem>>, vector<2x128xf32>
    %c0_208 = arith.constant 0 : index
    %c0_209 = arith.constant 0 : index
    %557 = vector.load %arg9[%c0_208, %c0_209] : memref<32x128xf32, #tpu.memory_space<vmem>>, vector<32x128xf32>
    %cst_210 = arith.constant dense<0.000000e+00> : vector<2x128xf32>
    %558 = tpu.matmul %528, %557, %cst_210 {dimension_numbers = #tpu.dot_dimension_numbers<[1], [0], [0], [1], [0, 0, 1, 1], [], []>} : vector<2x32xf32>, vector<32x128xf32>, vector<2x128xf32> -> vector<2x128xf32>
    %559 = arith.addf %556, %558 : vector<2x128xf32>
    %c16_211 = arith.constant 16 : index
    %c0_212 = arith.constant 0 : index
    %560 = vector.load %arg25[%c16_211, %c0_212] : memref<40x128xf32, #tpu.memory_space<vmem>>, vector<2x128xf32>
    %c0_213 = arith.constant 0 : index
    %c0_214 = arith.constant 0 : index
    %561 = vector.load %arg10[%c0_213, %c0_214] : memref<32x128xf32, #tpu.memory_space<vmem>>, vector<32x128xf32>
    %cst_215 = arith.constant dense<0.000000e+00> : vector<2x128xf32>
    %562 = tpu.matmul %553, %561, %cst_215 {dimension_numbers = #tpu.dot_dimension_numbers<[1], [0], [0], [1], [0, 0, 1, 1], [], []>} : vector<2x32xf32>, vector<32x128xf32>, vector<2x128xf32> -> vector<2x128xf32>
    %563 = arith.addf %560, %562 : vector<2x128xf32>
    %564 = vector.extract_strided_slice %559 {offsets = [0, 0], sizes = [2, 32], strides = [1, 1]} : vector<2x128xf32> to vector<2x32xf32>
    %565 = arith.negf %564 : vector<2x32xf32>
    %566 = math.exp %565 : vector<2x32xf32>
    %cst_216 = arith.constant 1.000000e+00 : f32
    %567 = vector.broadcast %cst_216 : f32 to vector<2x32xf32>
    %568 = arith.addf %567, %566 : vector<2x32xf32>
    %569 = arith.divf %567, %568 : vector<2x32xf32>
    %570 = vector.extract_strided_slice %559 {offsets = [0, 32], sizes = [2, 32], strides = [1, 1]} : vector<2x128xf32> to vector<2x32xf32>
    %571 = arith.negf %570 : vector<2x32xf32>
    %572 = math.exp %571 : vector<2x32xf32>
    %cst_217 = arith.constant 1.000000e+00 : f32
    %573 = vector.broadcast %cst_217 : f32 to vector<2x32xf32>
    %574 = arith.addf %573, %572 : vector<2x32xf32>
    %575 = arith.divf %573, %574 : vector<2x32xf32>
    %576 = vector.extract_strided_slice %559 {offsets = [0, 64], sizes = [2, 32], strides = [1, 1]} : vector<2x128xf32> to vector<2x32xf32>
    %577 = math.tanh %576 : vector<2x32xf32>
    %578 = vector.extract_strided_slice %559 {offsets = [0, 96], sizes = [2, 32], strides = [1, 1]} : vector<2x128xf32> to vector<2x32xf32>
    %579 = arith.negf %578 : vector<2x32xf32>
    %580 = math.exp %579 : vector<2x32xf32>
    %cst_218 = arith.constant 1.000000e+00 : f32
    %581 = vector.broadcast %cst_218 : f32 to vector<2x32xf32>
    %582 = arith.addf %581, %580 : vector<2x32xf32>
    %583 = arith.divf %581, %582 : vector<2x32xf32>
    %584 = arith.mulf %575, %526 : vector<2x32xf32>
    %585 = arith.mulf %569, %577 : vector<2x32xf32>
    %586 = arith.addf %584, %585 : vector<2x32xf32>
    %587 = math.tanh %586 : vector<2x32xf32>
    %588 = arith.mulf %583, %587 : vector<2x32xf32>
    %589 = vector.extract_strided_slice %563 {offsets = [0, 0], sizes = [2, 32], strides = [1, 1]} : vector<2x128xf32> to vector<2x32xf32>
    %590 = arith.negf %589 : vector<2x32xf32>
    %591 = math.exp %590 : vector<2x32xf32>
    %cst_219 = arith.constant 1.000000e+00 : f32
    %592 = vector.broadcast %cst_219 : f32 to vector<2x32xf32>
    %593 = arith.addf %592, %591 : vector<2x32xf32>
    %594 = arith.divf %592, %593 : vector<2x32xf32>
    %595 = vector.extract_strided_slice %563 {offsets = [0, 32], sizes = [2, 32], strides = [1, 1]} : vector<2x128xf32> to vector<2x32xf32>
    %596 = arith.negf %595 : vector<2x32xf32>
    %597 = math.exp %596 : vector<2x32xf32>
    %cst_220 = arith.constant 1.000000e+00 : f32
    %598 = vector.broadcast %cst_220 : f32 to vector<2x32xf32>
    %599 = arith.addf %598, %597 : vector<2x32xf32>
    %600 = arith.divf %598, %599 : vector<2x32xf32>
    %601 = vector.extract_strided_slice %563 {offsets = [0, 64], sizes = [2, 32], strides = [1, 1]} : vector<2x128xf32> to vector<2x32xf32>
    %602 = math.tanh %601 : vector<2x32xf32>
    %603 = vector.extract_strided_slice %563 {offsets = [0, 96], sizes = [2, 32], strides = [1, 1]} : vector<2x128xf32> to vector<2x32xf32>
    %604 = arith.negf %603 : vector<2x32xf32>
    %605 = math.exp %604 : vector<2x32xf32>
    %cst_221 = arith.constant 1.000000e+00 : f32
    %606 = vector.broadcast %cst_221 : f32 to vector<2x32xf32>
    %607 = arith.addf %606, %605 : vector<2x32xf32>
    %608 = arith.divf %606, %607 : vector<2x32xf32>
    %609 = arith.mulf %600, %551 : vector<2x32xf32>
    %610 = arith.mulf %594, %602 : vector<2x32xf32>
    %611 = arith.addf %609, %610 : vector<2x32xf32>
    %612 = math.tanh %611 : vector<2x32xf32>
    %613 = arith.mulf %608, %612 : vector<2x32xf32>
    %c16_222 = arith.constant 16 : index
    %c0_223 = arith.constant 0 : index
    %614 = vector.load %arg26[%c16_222, %c0_223] : memref<40x32xf32, #tpu.memory_space<vmem>>, vector<2x32xf32>
    tpu.vector_store %arg26[%c16_222, %c0_223], %588 {strides = array<i32>} : memref<40x32xf32, #tpu.memory_space<vmem>>, vector<2x32xf32>,
    %c16_224 = arith.constant 16 : index
    %c0_225 = arith.constant 0 : index
    %615 = vector.load %arg27[%c16_224, %c0_225] : memref<40x32xf32, #tpu.memory_space<vmem>>, vector<2x32xf32>
    tpu.vector_store %arg27[%c16_224, %c0_225], %613 {strides = array<i32>} : memref<40x32xf32, #tpu.memory_space<vmem>>, vector<2x32xf32>,
    %c18_226 = arith.constant 18 : index
    %c0_227 = arith.constant 0 : index
    %616 = vector.load %arg24[%c18_226, %c0_227] : memref<40x128xf32, #tpu.memory_space<vmem>>, vector<2x128xf32>
    %c0_228 = arith.constant 0 : index
    %c0_229 = arith.constant 0 : index
    %617 = vector.load %arg9[%c0_228, %c0_229] : memref<32x128xf32, #tpu.memory_space<vmem>>, vector<32x128xf32>
    %cst_230 = arith.constant dense<0.000000e+00> : vector<2x128xf32>
    %618 = tpu.matmul %588, %617, %cst_230 {dimension_numbers = #tpu.dot_dimension_numbers<[1], [0], [0], [1], [0, 0, 1, 1], [], []>} : vector<2x32xf32>, vector<32x128xf32>, vector<2x128xf32> -> vector<2x128xf32>
    %619 = arith.addf %616, %618 : vector<2x128xf32>
    %c14_231 = arith.constant 14 : index
    %c0_232 = arith.constant 0 : index
    %620 = vector.load %arg25[%c14_231, %c0_232] : memref<40x128xf32, #tpu.memory_space<vmem>>, vector<2x128xf32>
    %c0_233 = arith.constant 0 : index
    %c0_234 = arith.constant 0 : index
    %621 = vector.load %arg10[%c0_233, %c0_234] : memref<32x128xf32, #tpu.memory_space<vmem>>, vector<32x128xf32>
    %cst_235 = arith.constant dense<0.000000e+00> : vector<2x128xf32>
    %622 = tpu.matmul %613, %621, %cst_235 {dimension_numbers = #tpu.dot_dimension_numbers<[1], [0], [0], [1], [0, 0, 1, 1], [], []>} : vector<2x32xf32>, vector<32x128xf32>, vector<2x128xf32> -> vector<2x128xf32>
    %623 = arith.addf %620, %622 : vector<2x128xf32>
    %624 = vector.extract_strided_slice %619 {offsets = [0, 0], sizes = [2, 32], strides = [1, 1]} : vector<2x128xf32> to vector<2x32xf32>
    %625 = arith.negf %624 : vector<2x32xf32>
    %626 = math.exp %625 : vector<2x32xf32>
    %cst_236 = arith.constant 1.000000e+00 : f32
    %627 = vector.broadcast %cst_236 : f32 to vector<2x32xf32>
    %628 = arith.addf %627, %626 : vector<2x32xf32>
    %629 = arith.divf %627, %628 : vector<2x32xf32>
    %630 = vector.extract_strided_slice %619 {offsets = [0, 32], sizes = [2, 32], strides = [1, 1]} : vector<2x128xf32> to vector<2x32xf32>
    %631 = arith.negf %630 : vector<2x32xf32>
    %632 = math.exp %631 : vector<2x32xf32>
    %cst_237 = arith.constant 1.000000e+00 : f32
    %633 = vector.broadcast %cst_237 : f32 to vector<2x32xf32>
    %634 = arith.addf %633, %632 : vector<2x32xf32>
    %635 = arith.divf %633, %634 : vector<2x32xf32>
    %636 = vector.extract_strided_slice %619 {offsets = [0, 64], sizes = [2, 32], strides = [1, 1]} : vector<2x128xf32> to vector<2x32xf32>
    %637 = math.tanh %636 : vector<2x32xf32>
    %638 = vector.extract_strided_slice %619 {offsets = [0, 96], sizes = [2, 32], strides = [1, 1]} : vector<2x128xf32> to vector<2x32xf32>
    %639 = arith.negf %638 : vector<2x32xf32>
    %640 = math.exp %639 : vector<2x32xf32>
    %cst_238 = arith.constant 1.000000e+00 : f32
    %641 = vector.broadcast %cst_238 : f32 to vector<2x32xf32>
    %642 = arith.addf %641, %640 : vector<2x32xf32>
    %643 = arith.divf %641, %642 : vector<2x32xf32>
    %644 = arith.mulf %635, %586 : vector<2x32xf32>
    %645 = arith.mulf %629, %637 : vector<2x32xf32>
    %646 = arith.addf %644, %645 : vector<2x32xf32>
    %647 = math.tanh %646 : vector<2x32xf32>
    %648 = arith.mulf %643, %647 : vector<2x32xf32>
    %649 = vector.extract_strided_slice %623 {offsets = [0, 0], sizes = [2, 32], strides = [1, 1]} : vector<2x128xf32> to vector<2x32xf32>
    %650 = arith.negf %649 : vector<2x32xf32>
    %651 = math.exp %650 : vector<2x32xf32>
    %cst_239 = arith.constant 1.000000e+00 : f32
    %652 = vector.broadcast %cst_239 : f32 to vector<2x32xf32>
    %653 = arith.addf %652, %651 : vector<2x32xf32>
    %654 = arith.divf %652, %653 : vector<2x32xf32>
    %655 = vector.extract_strided_slice %623 {offsets = [0, 32], sizes = [2, 32], strides = [1, 1]} : vector<2x128xf32> to vector<2x32xf32>
    %656 = arith.negf %655 : vector<2x32xf32>
    %657 = math.exp %656 : vector<2x32xf32>
    %cst_240 = arith.constant 1.000000e+00 : f32
    %658 = vector.broadcast %cst_240 : f32 to vector<2x32xf32>
    %659 = arith.addf %658, %657 : vector<2x32xf32>
    %660 = arith.divf %658, %659 : vector<2x32xf32>
    %661 = vector.extract_strided_slice %623 {offsets = [0, 64], sizes = [2, 32], strides = [1, 1]} : vector<2x128xf32> to vector<2x32xf32>
    %662 = math.tanh %661 : vector<2x32xf32>
    %663 = vector.extract_strided_slice %623 {offsets = [0, 96], sizes = [2, 32], strides = [1, 1]} : vector<2x128xf32> to vector<2x32xf32>
    %664 = arith.negf %663 : vector<2x32xf32>
    %665 = math.exp %664 : vector<2x32xf32>
    %cst_241 = arith.constant 1.000000e+00 : f32
    %666 = vector.broadcast %cst_241 : f32 to vector<2x32xf32>
    %667 = arith.addf %666, %665 : vector<2x32xf32>
    %668 = arith.divf %666, %667 : vector<2x32xf32>
    %669 = arith.mulf %660, %611 : vector<2x32xf32>
    %670 = arith.mulf %654, %662 : vector<2x32xf32>
    %671 = arith.addf %669, %670 : vector<2x32xf32>
    %672 = math.tanh %671 : vector<2x32xf32>
    %673 = arith.mulf %668, %672 : vector<2x32xf32>
    %c18_242 = arith.constant 18 : index
    %c0_243 = arith.constant 0 : index
    %674 = vector.load %arg26[%c18_242, %c0_243] : memref<40x32xf32, #tpu.memory_space<vmem>>, vector<2x32xf32>
    tpu.vector_store %arg26[%c18_242, %c0_243], %648 {strides = array<i32>} : memref<40x32xf32, #tpu.memory_space<vmem>>, vector<2x32xf32>,
    %c14_244 = arith.constant 14 : index
    %c0_245 = arith.constant 0 : index
    %675 = vector.load %arg27[%c14_244, %c0_245] : memref<40x32xf32, #tpu.memory_space<vmem>>, vector<2x32xf32>
    tpu.vector_store %arg27[%c14_244, %c0_245], %673 {strides = array<i32>} : memref<40x32xf32, #tpu.memory_space<vmem>>, vector<2x32xf32>,
    %c20_246 = arith.constant 20 : index
    %c0_247 = arith.constant 0 : index
    %676 = vector.load %arg24[%c20_246, %c0_247] : memref<40x128xf32, #tpu.memory_space<vmem>>, vector<2x128xf32>
    %c0_248 = arith.constant 0 : index
    %c0_249 = arith.constant 0 : index
    %677 = vector.load %arg9[%c0_248, %c0_249] : memref<32x128xf32, #tpu.memory_space<vmem>>, vector<32x128xf32>
    %cst_250 = arith.constant dense<0.000000e+00> : vector<2x128xf32>
    %678 = tpu.matmul %648, %677, %cst_250 {dimension_numbers = #tpu.dot_dimension_numbers<[1], [0], [0], [1], [0, 0, 1, 1], [], []>} : vector<2x32xf32>, vector<32x128xf32>, vector<2x128xf32> -> vector<2x128xf32>
    %679 = arith.addf %676, %678 : vector<2x128xf32>
    %c12_251 = arith.constant 12 : index
    %c0_252 = arith.constant 0 : index
    %680 = vector.load %arg25[%c12_251, %c0_252] : memref<40x128xf32, #tpu.memory_space<vmem>>, vector<2x128xf32>
    %c0_253 = arith.constant 0 : index
    %c0_254 = arith.constant 0 : index
    %681 = vector.load %arg10[%c0_253, %c0_254] : memref<32x128xf32, #tpu.memory_space<vmem>>, vector<32x128xf32>
    %cst_255 = arith.constant dense<0.000000e+00> : vector<2x128xf32>
    %682 = tpu.matmul %673, %681, %cst_255 {dimension_numbers = #tpu.dot_dimension_numbers<[1], [0], [0], [1], [0, 0, 1, 1], [], []>} : vector<2x32xf32>, vector<32x128xf32>, vector<2x128xf32> -> vector<2x128xf32>
    %683 = arith.addf %680, %682 : vector<2x128xf32>
    %684 = vector.extract_strided_slice %679 {offsets = [0, 0], sizes = [2, 32], strides = [1, 1]} : vector<2x128xf32> to vector<2x32xf32>
    %685 = arith.negf %684 : vector<2x32xf32>
    %686 = math.exp %685 : vector<2x32xf32>
    %cst_256 = arith.constant 1.000000e+00 : f32
    %687 = vector.broadcast %cst_256 : f32 to vector<2x32xf32>
    %688 = arith.addf %687, %686 : vector<2x32xf32>
    %689 = arith.divf %687, %688 : vector<2x32xf32>
    %690 = vector.extract_strided_slice %679 {offsets = [0, 32], sizes = [2, 32], strides = [1, 1]} : vector<2x128xf32> to vector<2x32xf32>
    %691 = arith.negf %690 : vector<2x32xf32>
    %692 = math.exp %691 : vector<2x32xf32>
    %cst_257 = arith.constant 1.000000e+00 : f32
    %693 = vector.broadcast %cst_257 : f32 to vector<2x32xf32>
    %694 = arith.addf %693, %692 : vector<2x32xf32>
    %695 = arith.divf %693, %694 : vector<2x32xf32>
    %696 = vector.extract_strided_slice %679 {offsets = [0, 64], sizes = [2, 32], strides = [1, 1]} : vector<2x128xf32> to vector<2x32xf32>
    %697 = math.tanh %696 : vector<2x32xf32>
    %698 = vector.extract_strided_slice %679 {offsets = [0, 96], sizes = [2, 32], strides = [1, 1]} : vector<2x128xf32> to vector<2x32xf32>
    %699 = arith.negf %698 : vector<2x32xf32>
    %700 = math.exp %699 : vector<2x32xf32>
    %cst_258 = arith.constant 1.000000e+00 : f32
    %701 = vector.broadcast %cst_258 : f32 to vector<2x32xf32>
    %702 = arith.addf %701, %700 : vector<2x32xf32>
    %703 = arith.divf %701, %702 : vector<2x32xf32>
    %704 = arith.mulf %695, %646 : vector<2x32xf32>
    %705 = arith.mulf %689, %697 : vector<2x32xf32>
    %706 = arith.addf %704, %705 : vector<2x32xf32>
    %707 = math.tanh %706 : vector<2x32xf32>
    %708 = arith.mulf %703, %707 : vector<2x32xf32>
    %709 = vector.extract_strided_slice %683 {offsets = [0, 0], sizes = [2, 32], strides = [1, 1]} : vector<2x128xf32> to vector<2x32xf32>
    %710 = arith.negf %709 : vector<2x32xf32>
    %711 = math.exp %710 : vector<2x32xf32>
    %cst_259 = arith.constant 1.000000e+00 : f32
    %712 = vector.broadcast %cst_259 : f32 to vector<2x32xf32>
    %713 = arith.addf %712, %711 : vector<2x32xf32>
    %714 = arith.divf %712, %713 : vector<2x32xf32>
    %715 = vector.extract_strided_slice %683 {offsets = [0, 32], sizes = [2, 32], strides = [1, 1]} : vector<2x128xf32> to vector<2x32xf32>
    %716 = arith.negf %715 : vector<2x32xf32>
    %717 = math.exp %716 : vector<2x32xf32>
    %cst_260 = arith.constant 1.000000e+00 : f32
    %718 = vector.broadcast %cst_260 : f32 to vector<2x32xf32>
    %719 = arith.addf %718, %717 : vector<2x32xf32>
    %720 = arith.divf %718, %719 : vector<2x32xf32>
    %721 = vector.extract_strided_slice %683 {offsets = [0, 64], sizes = [2, 32], strides = [1, 1]} : vector<2x128xf32> to vector<2x32xf32>
    %722 = math.tanh %721 : vector<2x32xf32>
    %723 = vector.extract_strided_slice %683 {offsets = [0, 96], sizes = [2, 32], strides = [1, 1]} : vector<2x128xf32> to vector<2x32xf32>
    %724 = arith.negf %723 : vector<2x32xf32>
    %725 = math.exp %724 : vector<2x32xf32>
    %cst_261 = arith.constant 1.000000e+00 : f32
    %726 = vector.broadcast %cst_261 : f32 to vector<2x32xf32>
    %727 = arith.addf %726, %725 : vector<2x32xf32>
    %728 = arith.divf %726, %727 : vector<2x32xf32>
    %729 = arith.mulf %720, %671 : vector<2x32xf32>
    %730 = arith.mulf %714, %722 : vector<2x32xf32>
    %731 = arith.addf %729, %730 : vector<2x32xf32>
    %732 = math.tanh %731 : vector<2x32xf32>
    %733 = arith.mulf %728, %732 : vector<2x32xf32>
    %c20_262 = arith.constant 20 : index
    %c0_263 = arith.constant 0 : index
    %734 = vector.load %arg26[%c20_262, %c0_263] : memref<40x32xf32, #tpu.memory_space<vmem>>, vector<2x32xf32>
    tpu.vector_store %arg26[%c20_262, %c0_263], %708 {strides = array<i32>} : memref<40x32xf32, #tpu.memory_space<vmem>>, vector<2x32xf32>,
    %c12_264 = arith.constant 12 : index
    %c0_265 = arith.constant 0 : index
    %735 = vector.load %arg27[%c12_264, %c0_265] : memref<40x32xf32, #tpu.memory_space<vmem>>, vector<2x32xf32>
    tpu.vector_store %arg27[%c12_264, %c0_265], %733 {strides = array<i32>} : memref<40x32xf32, #tpu.memory_space<vmem>>, vector<2x32xf32>,
    %c22_266 = arith.constant 22 : index
    %c0_267 = arith.constant 0 : index
    %736 = vector.load %arg24[%c22_266, %c0_267] : memref<40x128xf32, #tpu.memory_space<vmem>>, vector<2x128xf32>
    %c0_268 = arith.constant 0 : index
    %c0_269 = arith.constant 0 : index
    %737 = vector.load %arg9[%c0_268, %c0_269] : memref<32x128xf32, #tpu.memory_space<vmem>>, vector<32x128xf32>
    %cst_270 = arith.constant dense<0.000000e+00> : vector<2x128xf32>
    %738 = tpu.matmul %708, %737, %cst_270 {dimension_numbers = #tpu.dot_dimension_numbers<[1], [0], [0], [1], [0, 0, 1, 1], [], []>} : vector<2x32xf32>, vector<32x128xf32>, vector<2x128xf32> -> vector<2x128xf32>
    %739 = arith.addf %736, %738 : vector<2x128xf32>
    %c10_271 = arith.constant 10 : index
    %c0_272 = arith.constant 0 : index
    %740 = vector.load %arg25[%c10_271, %c0_272] : memref<40x128xf32, #tpu.memory_space<vmem>>, vector<2x128xf32>
    %c0_273 = arith.constant 0 : index
    %c0_274 = arith.constant 0 : index
    %741 = vector.load %arg10[%c0_273, %c0_274] : memref<32x128xf32, #tpu.memory_space<vmem>>, vector<32x128xf32>
    %cst_275 = arith.constant dense<0.000000e+00> : vector<2x128xf32>
    %742 = tpu.matmul %733, %741, %cst_275 {dimension_numbers = #tpu.dot_dimension_numbers<[1], [0], [0], [1], [0, 0, 1, 1], [], []>} : vector<2x32xf32>, vector<32x128xf32>, vector<2x128xf32> -> vector<2x128xf32>
    %743 = arith.addf %740, %742 : vector<2x128xf32>
    %744 = vector.extract_strided_slice %739 {offsets = [0, 0], sizes = [2, 32], strides = [1, 1]} : vector<2x128xf32> to vector<2x32xf32>
    %745 = arith.negf %744 : vector<2x32xf32>
    %746 = math.exp %745 : vector<2x32xf32>
    %cst_276 = arith.constant 1.000000e+00 : f32
    %747 = vector.broadcast %cst_276 : f32 to vector<2x32xf32>
    %748 = arith.addf %747, %746 : vector<2x32xf32>
    %749 = arith.divf %747, %748 : vector<2x32xf32>
    %750 = vector.extract_strided_slice %739 {offsets = [0, 32], sizes = [2, 32], strides = [1, 1]} : vector<2x128xf32> to vector<2x32xf32>
    %751 = arith.negf %750 : vector<2x32xf32>
    %752 = math.exp %751 : vector<2x32xf32>
    %cst_277 = arith.constant 1.000000e+00 : f32
    %753 = vector.broadcast %cst_277 : f32 to vector<2x32xf32>
    %754 = arith.addf %753, %752 : vector<2x32xf32>
    %755 = arith.divf %753, %754 : vector<2x32xf32>
    %756 = vector.extract_strided_slice %739 {offsets = [0, 64], sizes = [2, 32], strides = [1, 1]} : vector<2x128xf32> to vector<2x32xf32>
    %757 = math.tanh %756 : vector<2x32xf32>
    %758 = vector.extract_strided_slice %739 {offsets = [0, 96], sizes = [2, 32], strides = [1, 1]} : vector<2x128xf32> to vector<2x32xf32>
    %759 = arith.negf %758 : vector<2x32xf32>
    %760 = math.exp %759 : vector<2x32xf32>
    %cst_278 = arith.constant 1.000000e+00 : f32
    %761 = vector.broadcast %cst_278 : f32 to vector<2x32xf32>
    %762 = arith.addf %761, %760 : vector<2x32xf32>
    %763 = arith.divf %761, %762 : vector<2x32xf32>
    %764 = arith.mulf %755, %706 : vector<2x32xf32>
    %765 = arith.mulf %749, %757 : vector<2x32xf32>
    %766 = arith.addf %764, %765 : vector<2x32xf32>
    %767 = math.tanh %766 : vector<2x32xf32>
    %768 = arith.mulf %763, %767 : vector<2x32xf32>
    %769 = vector.extract_strided_slice %743 {offsets = [0, 0], sizes = [2, 32], strides = [1, 1]} : vector<2x128xf32> to vector<2x32xf32>
    %770 = arith.negf %769 : vector<2x32xf32>
    %771 = math.exp %770 : vector<2x32xf32>
    %cst_279 = arith.constant 1.000000e+00 : f32
    %772 = vector.broadcast %cst_279 : f32 to vector<2x32xf32>
    %773 = arith.addf %772, %771 : vector<2x32xf32>
    %774 = arith.divf %772, %773 : vector<2x32xf32>
    %775 = vector.extract_strided_slice %743 {offsets = [0, 32], sizes = [2, 32], strides = [1, 1]} : vector<2x128xf32> to vector<2x32xf32>
    %776 = arith.negf %775 : vector<2x32xf32>
    %777 = math.exp %776 : vector<2x32xf32>
    %cst_280 = arith.constant 1.000000e+00 : f32
    %778 = vector.broadcast %cst_280 : f32 to vector<2x32xf32>
    %779 = arith.addf %778, %777 : vector<2x32xf32>
    %780 = arith.divf %778, %779 : vector<2x32xf32>
    %781 = vector.extract_strided_slice %743 {offsets = [0, 64], sizes = [2, 32], strides = [1, 1]} : vector<2x128xf32> to vector<2x32xf32>
    %782 = math.tanh %781 : vector<2x32xf32>
    %783 = vector.extract_strided_slice %743 {offsets = [0, 96], sizes = [2, 32], strides = [1, 1]} : vector<2x128xf32> to vector<2x32xf32>
    %784 = arith.negf %783 : vector<2x32xf32>
    %785 = math.exp %784 : vector<2x32xf32>
    %cst_281 = arith.constant 1.000000e+00 : f32
    %786 = vector.broadcast %cst_281 : f32 to vector<2x32xf32>
    %787 = arith.addf %786, %785 : vector<2x32xf32>
    %788 = arith.divf %786, %787 : vector<2x32xf32>
    %789 = arith.mulf %780, %731 : vector<2x32xf32>
    %790 = arith.mulf %774, %782 : vector<2x32xf32>
    %791 = arith.addf %789, %790 : vector<2x32xf32>
    %792 = math.tanh %791 : vector<2x32xf32>
    %793 = arith.mulf %788, %792 : vector<2x32xf32>
    %c22_282 = arith.constant 22 : index
    %c0_283 = arith.constant 0 : index
    %794 = vector.load %arg26[%c22_282, %c0_283] : memref<40x32xf32, #tpu.memory_space<vmem>>, vector<2x32xf32>
    tpu.vector_store %arg26[%c22_282, %c0_283], %768 {strides = array<i32>} : memref<40x32xf32, #tpu.memory_space<vmem>>, vector<2x32xf32>,
    %c10_284 = arith.constant 10 : index
    %c0_285 = arith.constant 0 : index
    %795 = vector.load %arg27[%c10_284, %c0_285] : memref<40x32xf32, #tpu.memory_space<vmem>>, vector<2x32xf32>
    tpu.vector_store %arg27[%c10_284, %c0_285], %793 {strides = array<i32>} : memref<40x32xf32, #tpu.memory_space<vmem>>, vector<2x32xf32>,
    %c24_286 = arith.constant 24 : index
    %c0_287 = arith.constant 0 : index
    %796 = vector.load %arg24[%c24_286, %c0_287] : memref<40x128xf32, #tpu.memory_space<vmem>>, vector<2x128xf32>
    %c0_288 = arith.constant 0 : index
    %c0_289 = arith.constant 0 : index
    %797 = vector.load %arg9[%c0_288, %c0_289] : memref<32x128xf32, #tpu.memory_space<vmem>>, vector<32x128xf32>
    %cst_290 = arith.constant dense<0.000000e+00> : vector<2x128xf32>
    %798 = tpu.matmul %768, %797, %cst_290 {dimension_numbers = #tpu.dot_dimension_numbers<[1], [0], [0], [1], [0, 0, 1, 1], [], []>} : vector<2x32xf32>, vector<32x128xf32>, vector<2x128xf32> -> vector<2x128xf32>
    %799 = arith.addf %796, %798 : vector<2x128xf32>
    %c8_291 = arith.constant 8 : index
    %c0_292 = arith.constant 0 : index
    %800 = vector.load %arg25[%c8_291, %c0_292] : memref<40x128xf32, #tpu.memory_space<vmem>>, vector<2x128xf32>
    %c0_293 = arith.constant 0 : index
    %c0_294 = arith.constant 0 : index
    %801 = vector.load %arg10[%c0_293, %c0_294] : memref<32x128xf32, #tpu.memory_space<vmem>>, vector<32x128xf32>
    %cst_295 = arith.constant dense<0.000000e+00> : vector<2x128xf32>
    %802 = tpu.matmul %793, %801, %cst_295 {dimension_numbers = #tpu.dot_dimension_numbers<[1], [0], [0], [1], [0, 0, 1, 1], [], []>} : vector<2x32xf32>, vector<32x128xf32>, vector<2x128xf32> -> vector<2x128xf32>
    %803 = arith.addf %800, %802 : vector<2x128xf32>
    %804 = vector.extract_strided_slice %799 {offsets = [0, 0], sizes = [2, 32], strides = [1, 1]} : vector<2x128xf32> to vector<2x32xf32>
    %805 = arith.negf %804 : vector<2x32xf32>
    %806 = math.exp %805 : vector<2x32xf32>
    %cst_296 = arith.constant 1.000000e+00 : f32
    %807 = vector.broadcast %cst_296 : f32 to vector<2x32xf32>
    %808 = arith.addf %807, %806 : vector<2x32xf32>
    %809 = arith.divf %807, %808 : vector<2x32xf32>
    %810 = vector.extract_strided_slice %799 {offsets = [0, 32], sizes = [2, 32], strides = [1, 1]} : vector<2x128xf32> to vector<2x32xf32>
    %811 = arith.negf %810 : vector<2x32xf32>
    %812 = math.exp %811 : vector<2x32xf32>
    %cst_297 = arith.constant 1.000000e+00 : f32
    %813 = vector.broadcast %cst_297 : f32 to vector<2x32xf32>
    %814 = arith.addf %813, %812 : vector<2x32xf32>
    %815 = arith.divf %813, %814 : vector<2x32xf32>
    %816 = vector.extract_strided_slice %799 {offsets = [0, 64], sizes = [2, 32], strides = [1, 1]} : vector<2x128xf32> to vector<2x32xf32>
    %817 = math.tanh %816 : vector<2x32xf32>
    %818 = vector.extract_strided_slice %799 {offsets = [0, 96], sizes = [2, 32], strides = [1, 1]} : vector<2x128xf32> to vector<2x32xf32>
    %819 = arith.negf %818 : vector<2x32xf32>
    %820 = math.exp %819 : vector<2x32xf32>
    %cst_298 = arith.constant 1.000000e+00 : f32
    %821 = vector.broadcast %cst_298 : f32 to vector<2x32xf32>
    %822 = arith.addf %821, %820 : vector<2x32xf32>
    %823 = arith.divf %821, %822 : vector<2x32xf32>
    %824 = arith.mulf %815, %766 : vector<2x32xf32>
    %825 = arith.mulf %809, %817 : vector<2x32xf32>
    %826 = arith.addf %824, %825 : vector<2x32xf32>
    %827 = math.tanh %826 : vector<2x32xf32>
    %828 = arith.mulf %823, %827 : vector<2x32xf32>
    %829 = vector.extract_strided_slice %803 {offsets = [0, 0], sizes = [2, 32], strides = [1, 1]} : vector<2x128xf32> to vector<2x32xf32>
    %830 = arith.negf %829 : vector<2x32xf32>
    %831 = math.exp %830 : vector<2x32xf32>
    %cst_299 = arith.constant 1.000000e+00 : f32
    %832 = vector.broadcast %cst_299 : f32 to vector<2x32xf32>
    %833 = arith.addf %832, %831 : vector<2x32xf32>
    %834 = arith.divf %832, %833 : vector<2x32xf32>
    %835 = vector.extract_strided_slice %803 {offsets = [0, 32], sizes = [2, 32], strides = [1, 1]} : vector<2x128xf32> to vector<2x32xf32>
    %836 = arith.negf %835 : vector<2x32xf32>
    %837 = math.exp %836 : vector<2x32xf32>
    %cst_300 = arith.constant 1.000000e+00 : f32
    %838 = vector.broadcast %cst_300 : f32 to vector<2x32xf32>
    %839 = arith.addf %838, %837 : vector<2x32xf32>
    %840 = arith.divf %838, %839 : vector<2x32xf32>
    %841 = vector.extract_strided_slice %803 {offsets = [0, 64], sizes = [2, 32], strides = [1, 1]} : vector<2x128xf32> to vector<2x32xf32>
    %842 = math.tanh %841 : vector<2x32xf32>
    %843 = vector.extract_strided_slice %803 {offsets = [0, 96], sizes = [2, 32], strides = [1, 1]} : vector<2x128xf32> to vector<2x32xf32>
    %844 = arith.negf %843 : vector<2x32xf32>
    %845 = math.exp %844 : vector<2x32xf32>
    %cst_301 = arith.constant 1.000000e+00 : f32
    %846 = vector.broadcast %cst_301 : f32 to vector<2x32xf32>
    %847 = arith.addf %846, %845 : vector<2x32xf32>
    %848 = arith.divf %846, %847 : vector<2x32xf32>
    %849 = arith.mulf %840, %791 : vector<2x32xf32>
    %850 = arith.mulf %834, %842 : vector<2x32xf32>
    %851 = arith.addf %849, %850 : vector<2x32xf32>
    %852 = math.tanh %851 : vector<2x32xf32>
    %853 = arith.mulf %848, %852 : vector<2x32xf32>
    %c24_302 = arith.constant 24 : index
    %c0_303 = arith.constant 0 : index
    %854 = vector.load %arg26[%c24_302, %c0_303] : memref<40x32xf32, #tpu.memory_space<vmem>>, vector<2x32xf32>
    tpu.vector_store %arg26[%c24_302, %c0_303], %828 {strides = array<i32>} : memref<40x32xf32, #tpu.memory_space<vmem>>, vector<2x32xf32>,
    %c8_304 = arith.constant 8 : index
    %c0_305 = arith.constant 0 : index
    %855 = vector.load %arg27[%c8_304, %c0_305] : memref<40x32xf32, #tpu.memory_space<vmem>>, vector<2x32xf32>
    tpu.vector_store %arg27[%c8_304, %c0_305], %853 {strides = array<i32>} : memref<40x32xf32, #tpu.memory_space<vmem>>, vector<2x32xf32>,
    %c26_306 = arith.constant 26 : index
    %c0_307 = arith.constant 0 : index
    %856 = vector.load %arg24[%c26_306, %c0_307] : memref<40x128xf32, #tpu.memory_space<vmem>>, vector<2x128xf32>
    %c0_308 = arith.constant 0 : index
    %c0_309 = arith.constant 0 : index
    %857 = vector.load %arg9[%c0_308, %c0_309] : memref<32x128xf32, #tpu.memory_space<vmem>>, vector<32x128xf32>
    %cst_310 = arith.constant dense<0.000000e+00> : vector<2x128xf32>
    %858 = tpu.matmul %828, %857, %cst_310 {dimension_numbers = #tpu.dot_dimension_numbers<[1], [0], [0], [1], [0, 0, 1, 1], [], []>} : vector<2x32xf32>, vector<32x128xf32>, vector<2x128xf32> -> vector<2x128xf32>
    %859 = arith.addf %856, %858 : vector<2x128xf32>
    %c6_311 = arith.constant 6 : index
    %c0_312 = arith.constant 0 : index
    %860 = vector.load %arg25[%c6_311, %c0_312] : memref<40x128xf32, #tpu.memory_space<vmem>>, vector<2x128xf32>
    %c0_313 = arith.constant 0 : index
    %c0_314 = arith.constant 0 : index
    %861 = vector.load %arg10[%c0_313, %c0_314] : memref<32x128xf32, #tpu.memory_space<vmem>>, vector<32x128xf32>
    %cst_315 = arith.constant dense<0.000000e+00> : vector<2x128xf32>
    %862 = tpu.matmul %853, %861, %cst_315 {dimension_numbers = #tpu.dot_dimension_numbers<[1], [0], [0], [1], [0, 0, 1, 1], [], []>} : vector<2x32xf32>, vector<32x128xf32>, vector<2x128xf32> -> vector<2x128xf32>
    %863 = arith.addf %860, %862 : vector<2x128xf32>
    %864 = vector.extract_strided_slice %859 {offsets = [0, 0], sizes = [2, 32], strides = [1, 1]} : vector<2x128xf32> to vector<2x32xf32>
    %865 = arith.negf %864 : vector<2x32xf32>
    %866 = math.exp %865 : vector<2x32xf32>
    %cst_316 = arith.constant 1.000000e+00 : f32
    %867 = vector.broadcast %cst_316 : f32 to vector<2x32xf32>
    %868 = arith.addf %867, %866 : vector<2x32xf32>
    %869 = arith.divf %867, %868 : vector<2x32xf32>
    %870 = vector.extract_strided_slice %859 {offsets = [0, 32], sizes = [2, 32], strides = [1, 1]} : vector<2x128xf32> to vector<2x32xf32>
    %871 = arith.negf %870 : vector<2x32xf32>
    %872 = math.exp %871 : vector<2x32xf32>
    %cst_317 = arith.constant 1.000000e+00 : f32
    %873 = vector.broadcast %cst_317 : f32 to vector<2x32xf32>
    %874 = arith.addf %873, %872 : vector<2x32xf32>
    %875 = arith.divf %873, %874 : vector<2x32xf32>
    %876 = vector.extract_strided_slice %859 {offsets = [0, 64], sizes = [2, 32], strides = [1, 1]} : vector<2x128xf32> to vector<2x32xf32>
    %877 = math.tanh %876 : vector<2x32xf32>
    %878 = vector.extract_strided_slice %859 {offsets = [0, 96], sizes = [2, 32], strides = [1, 1]} : vector<2x128xf32> to vector<2x32xf32>
    %879 = arith.negf %878 : vector<2x32xf32>
    %880 = math.exp %879 : vector<2x32xf32>
    %cst_318 = arith.constant 1.000000e+00 : f32
    %881 = vector.broadcast %cst_318 : f32 to vector<2x32xf32>
    %882 = arith.addf %881, %880 : vector<2x32xf32>
    %883 = arith.divf %881, %882 : vector<2x32xf32>
    %884 = arith.mulf %875, %826 : vector<2x32xf32>
    %885 = arith.mulf %869, %877 : vector<2x32xf32>
    %886 = arith.addf %884, %885 : vector<2x32xf32>
    %887 = math.tanh %886 : vector<2x32xf32>
    %888 = arith.mulf %883, %887 : vector<2x32xf32>
    %889 = vector.extract_strided_slice %863 {offsets = [0, 0], sizes = [2, 32], strides = [1, 1]} : vector<2x128xf32> to vector<2x32xf32>
    %890 = arith.negf %889 : vector<2x32xf32>
    %891 = math.exp %890 : vector<2x32xf32>
    %cst_319 = arith.constant 1.000000e+00 : f32
    %892 = vector.broadcast %cst_319 : f32 to vector<2x32xf32>
    %893 = arith.addf %892, %891 : vector<2x32xf32>
    %894 = arith.divf %892, %893 : vector<2x32xf32>
    %895 = vector.extract_strided_slice %863 {offsets = [0, 32], sizes = [2, 32], strides = [1, 1]} : vector<2x128xf32> to vector<2x32xf32>
    %896 = arith.negf %895 : vector<2x32xf32>
    %897 = math.exp %896 : vector<2x32xf32>
    %cst_320 = arith.constant 1.000000e+00 : f32
    %898 = vector.broadcast %cst_320 : f32 to vector<2x32xf32>
    %899 = arith.addf %898, %897 : vector<2x32xf32>
    %900 = arith.divf %898, %899 : vector<2x32xf32>
    %901 = vector.extract_strided_slice %863 {offsets = [0, 64], sizes = [2, 32], strides = [1, 1]} : vector<2x128xf32> to vector<2x32xf32>
    %902 = math.tanh %901 : vector<2x32xf32>
    %903 = vector.extract_strided_slice %863 {offsets = [0, 96], sizes = [2, 32], strides = [1, 1]} : vector<2x128xf32> to vector<2x32xf32>
    %904 = arith.negf %903 : vector<2x32xf32>
    %905 = math.exp %904 : vector<2x32xf32>
    %cst_321 = arith.constant 1.000000e+00 : f32
    %906 = vector.broadcast %cst_321 : f32 to vector<2x32xf32>
    %907 = arith.addf %906, %905 : vector<2x32xf32>
    %908 = arith.divf %906, %907 : vector<2x32xf32>
    %909 = arith.mulf %900, %851 : vector<2x32xf32>
    %910 = arith.mulf %894, %902 : vector<2x32xf32>
    %911 = arith.addf %909, %910 : vector<2x32xf32>
    %912 = math.tanh %911 : vector<2x32xf32>
    %913 = arith.mulf %908, %912 : vector<2x32xf32>
    %c26_322 = arith.constant 26 : index
    %c0_323 = arith.constant 0 : index
    %914 = vector.load %arg26[%c26_322, %c0_323] : memref<40x32xf32, #tpu.memory_space<vmem>>, vector<2x32xf32>
    tpu.vector_store %arg26[%c26_322, %c0_323], %888 {strides = array<i32>} : memref<40x32xf32, #tpu.memory_space<vmem>>, vector<2x32xf32>,
    %c6_324 = arith.constant 6 : index
    %c0_325 = arith.constant 0 : index
    %915 = vector.load %arg27[%c6_324, %c0_325] : memref<40x32xf32, #tpu.memory_space<vmem>>, vector<2x32xf32>
    tpu.vector_store %arg27[%c6_324, %c0_325], %913 {strides = array<i32>} : memref<40x32xf32, #tpu.memory_space<vmem>>, vector<2x32xf32>,
    %c28_326 = arith.constant 28 : index
    %c0_327 = arith.constant 0 : index
    %916 = vector.load %arg24[%c28_326, %c0_327] : memref<40x128xf32, #tpu.memory_space<vmem>>, vector<2x128xf32>
    %c0_328 = arith.constant 0 : index
    %c0_329 = arith.constant 0 : index
    %917 = vector.load %arg9[%c0_328, %c0_329] : memref<32x128xf32, #tpu.memory_space<vmem>>, vector<32x128xf32>
    %cst_330 = arith.constant dense<0.000000e+00> : vector<2x128xf32>
    %918 = tpu.matmul %888, %917, %cst_330 {dimension_numbers = #tpu.dot_dimension_numbers<[1], [0], [0], [1], [0, 0, 1, 1], [], []>} : vector<2x32xf32>, vector<32x128xf32>, vector<2x128xf32> -> vector<2x128xf32>
    %919 = arith.addf %916, %918 : vector<2x128xf32>
    %c4_331 = arith.constant 4 : index
    %c0_332 = arith.constant 0 : index
    %920 = vector.load %arg25[%c4_331, %c0_332] : memref<40x128xf32, #tpu.memory_space<vmem>>, vector<2x128xf32>
    %c0_333 = arith.constant 0 : index
    %c0_334 = arith.constant 0 : index
    %921 = vector.load %arg10[%c0_333, %c0_334] : memref<32x128xf32, #tpu.memory_space<vmem>>, vector<32x128xf32>
    %cst_335 = arith.constant dense<0.000000e+00> : vector<2x128xf32>
    %922 = tpu.matmul %913, %921, %cst_335 {dimension_numbers = #tpu.dot_dimension_numbers<[1], [0], [0], [1], [0, 0, 1, 1], [], []>} : vector<2x32xf32>, vector<32x128xf32>, vector<2x128xf32> -> vector<2x128xf32>
    %923 = arith.addf %920, %922 : vector<2x128xf32>
    %924 = vector.extract_strided_slice %919 {offsets = [0, 0], sizes = [2, 32], strides = [1, 1]} : vector<2x128xf32> to vector<2x32xf32>
    %925 = arith.negf %924 : vector<2x32xf32>
    %926 = math.exp %925 : vector<2x32xf32>
    %cst_336 = arith.constant 1.000000e+00 : f32
    %927 = vector.broadcast %cst_336 : f32 to vector<2x32xf32>
    %928 = arith.addf %927, %926 : vector<2x32xf32>
    %929 = arith.divf %927, %928 : vector<2x32xf32>
    %930 = vector.extract_strided_slice %919 {offsets = [0, 32], sizes = [2, 32], strides = [1, 1]} : vector<2x128xf32> to vector<2x32xf32>
    %931 = arith.negf %930 : vector<2x32xf32>
    %932 = math.exp %931 : vector<2x32xf32>
    %cst_337 = arith.constant 1.000000e+00 : f32
    %933 = vector.broadcast %cst_337 : f32 to vector<2x32xf32>
    %934 = arith.addf %933, %932 : vector<2x32xf32>
    %935 = arith.divf %933, %934 : vector<2x32xf32>
    %936 = vector.extract_strided_slice %919 {offsets = [0, 64], sizes = [2, 32], strides = [1, 1]} : vector<2x128xf32> to vector<2x32xf32>
    %937 = math.tanh %936 : vector<2x32xf32>
    %938 = vector.extract_strided_slice %919 {offsets = [0, 96], sizes = [2, 32], strides = [1, 1]} : vector<2x128xf32> to vector<2x32xf32>
    %939 = arith.negf %938 : vector<2x32xf32>
    %940 = math.exp %939 : vector<2x32xf32>
    %cst_338 = arith.constant 1.000000e+00 : f32
    %941 = vector.broadcast %cst_338 : f32 to vector<2x32xf32>
    %942 = arith.addf %941, %940 : vector<2x32xf32>
    %943 = arith.divf %941, %942 : vector<2x32xf32>
    %944 = arith.mulf %935, %886 : vector<2x32xf32>
    %945 = arith.mulf %929, %937 : vector<2x32xf32>
    %946 = arith.addf %944, %945 : vector<2x32xf32>
    %947 = math.tanh %946 : vector<2x32xf32>
    %948 = arith.mulf %943, %947 : vector<2x32xf32>
    %949 = vector.extract_strided_slice %923 {offsets = [0, 0], sizes = [2, 32], strides = [1, 1]} : vector<2x128xf32> to vector<2x32xf32>
    %950 = arith.negf %949 : vector<2x32xf32>
    %951 = math.exp %950 : vector<2x32xf32>
    %cst_339 = arith.constant 1.000000e+00 : f32
    %952 = vector.broadcast %cst_339 : f32 to vector<2x32xf32>
    %953 = arith.addf %952, %951 : vector<2x32xf32>
    %954 = arith.divf %952, %953 : vector<2x32xf32>
    %955 = vector.extract_strided_slice %923 {offsets = [0, 32], sizes = [2, 32], strides = [1, 1]} : vector<2x128xf32> to vector<2x32xf32>
    %956 = arith.negf %955 : vector<2x32xf32>
    %957 = math.exp %956 : vector<2x32xf32>
    %cst_340 = arith.constant 1.000000e+00 : f32
    %958 = vector.broadcast %cst_340 : f32 to vector<2x32xf32>
    %959 = arith.addf %958, %957 : vector<2x32xf32>
    %960 = arith.divf %958, %959 : vector<2x32xf32>
    %961 = vector.extract_strided_slice %923 {offsets = [0, 64], sizes = [2, 32], strides = [1, 1]} : vector<2x128xf32> to vector<2x32xf32>
    %962 = math.tanh %961 : vector<2x32xf32>
    %963 = vector.extract_strided_slice %923 {offsets = [0, 96], sizes = [2, 32], strides = [1, 1]} : vector<2x128xf32> to vector<2x32xf32>
    %964 = arith.negf %963 : vector<2x32xf32>
    %965 = math.exp %964 : vector<2x32xf32>
    %cst_341 = arith.constant 1.000000e+00 : f32
    %966 = vector.broadcast %cst_341 : f32 to vector<2x32xf32>
    %967 = arith.addf %966, %965 : vector<2x32xf32>
    %968 = arith.divf %966, %967 : vector<2x32xf32>
    %969 = arith.mulf %960, %911 : vector<2x32xf32>
    %970 = arith.mulf %954, %962 : vector<2x32xf32>
    %971 = arith.addf %969, %970 : vector<2x32xf32>
    %972 = math.tanh %971 : vector<2x32xf32>
    %973 = arith.mulf %968, %972 : vector<2x32xf32>
    %c28_342 = arith.constant 28 : index
    %c0_343 = arith.constant 0 : index
    %974 = vector.load %arg26[%c28_342, %c0_343] : memref<40x32xf32, #tpu.memory_space<vmem>>, vector<2x32xf32>
    tpu.vector_store %arg26[%c28_342, %c0_343], %948 {strides = array<i32>} : memref<40x32xf32, #tpu.memory_space<vmem>>, vector<2x32xf32>,
    %c4_344 = arith.constant 4 : index
    %c0_345 = arith.constant 0 : index
    %975 = vector.load %arg27[%c4_344, %c0_345] : memref<40x32xf32, #tpu.memory_space<vmem>>, vector<2x32xf32>
    tpu.vector_store %arg27[%c4_344, %c0_345], %973 {strides = array<i32>} : memref<40x32xf32, #tpu.memory_space<vmem>>, vector<2x32xf32>,
    %c30_346 = arith.constant 30 : index
    %c0_347 = arith.constant 0 : index
    %976 = vector.load %arg24[%c30_346, %c0_347] : memref<40x128xf32, #tpu.memory_space<vmem>>, vector<2x128xf32>
    %c0_348 = arith.constant 0 : index
    %c0_349 = arith.constant 0 : index
    %977 = vector.load %arg9[%c0_348, %c0_349] : memref<32x128xf32, #tpu.memory_space<vmem>>, vector<32x128xf32>
    %cst_350 = arith.constant dense<0.000000e+00> : vector<2x128xf32>
    %978 = tpu.matmul %948, %977, %cst_350 {dimension_numbers = #tpu.dot_dimension_numbers<[1], [0], [0], [1], [0, 0, 1, 1], [], []>} : vector<2x32xf32>, vector<32x128xf32>, vector<2x128xf32> -> vector<2x128xf32>
    %979 = arith.addf %976, %978 : vector<2x128xf32>
    %c2_351 = arith.constant 2 : index
    %c0_352 = arith.constant 0 : index
    %980 = vector.load %arg25[%c2_351, %c0_352] : memref<40x128xf32, #tpu.memory_space<vmem>>, vector<2x128xf32>
    %c0_353 = arith.constant 0 : index
    %c0_354 = arith.constant 0 : index
    %981 = vector.load %arg10[%c0_353, %c0_354] : memref<32x128xf32, #tpu.memory_space<vmem>>, vector<32x128xf32>
    %cst_355 = arith.constant dense<0.000000e+00> : vector<2x128xf32>
    %982 = tpu.matmul %973, %981, %cst_355 {dimension_numbers = #tpu.dot_dimension_numbers<[1], [0], [0], [1], [0, 0, 1, 1], [], []>} : vector<2x32xf32>, vector<32x128xf32>, vector<2x128xf32> -> vector<2x128xf32>
    %983 = arith.addf %980, %982 : vector<2x128xf32>
    %984 = vector.extract_strided_slice %979 {offsets = [0, 0], sizes = [2, 32], strides = [1, 1]} : vector<2x128xf32> to vector<2x32xf32>
    %985 = arith.negf %984 : vector<2x32xf32>
    %986 = math.exp %985 : vector<2x32xf32>
    %cst_356 = arith.constant 1.000000e+00 : f32
    %987 = vector.broadcast %cst_356 : f32 to vector<2x32xf32>
    %988 = arith.addf %987, %986 : vector<2x32xf32>
    %989 = arith.divf %987, %988 : vector<2x32xf32>
    %990 = vector.extract_strided_slice %979 {offsets = [0, 32], sizes = [2, 32], strides = [1, 1]} : vector<2x128xf32> to vector<2x32xf32>
    %991 = arith.negf %990 : vector<2x32xf32>
    %992 = math.exp %991 : vector<2x32xf32>
    %cst_357 = arith.constant 1.000000e+00 : f32
    %993 = vector.broadcast %cst_357 : f32 to vector<2x32xf32>
    %994 = arith.addf %993, %992 : vector<2x32xf32>
    %995 = arith.divf %993, %994 : vector<2x32xf32>
    %996 = vector.extract_strided_slice %979 {offsets = [0, 64], sizes = [2, 32], strides = [1, 1]} : vector<2x128xf32> to vector<2x32xf32>
    %997 = math.tanh %996 : vector<2x32xf32>
    %998 = vector.extract_strided_slice %979 {offsets = [0, 96], sizes = [2, 32], strides = [1, 1]} : vector<2x128xf32> to vector<2x32xf32>
    %999 = arith.negf %998 : vector<2x32xf32>
    %1000 = math.exp %999 : vector<2x32xf32>
    %cst_358 = arith.constant 1.000000e+00 : f32
    %1001 = vector.broadcast %cst_358 : f32 to vector<2x32xf32>
    %1002 = arith.addf %1001, %1000 : vector<2x32xf32>
    %1003 = arith.divf %1001, %1002 : vector<2x32xf32>
    %1004 = arith.mulf %995, %946 : vector<2x32xf32>
    %1005 = arith.mulf %989, %997 : vector<2x32xf32>
    %1006 = arith.addf %1004, %1005 : vector<2x32xf32>
    %1007 = math.tanh %1006 : vector<2x32xf32>
    %1008 = arith.mulf %1003, %1007 : vector<2x32xf32>
    %1009 = vector.extract_strided_slice %983 {offsets = [0, 0], sizes = [2, 32], strides = [1, 1]} : vector<2x128xf32> to vector<2x32xf32>
    %1010 = arith.negf %1009 : vector<2x32xf32>
    %1011 = math.exp %1010 : vector<2x32xf32>
    %cst_359 = arith.constant 1.000000e+00 : f32
    %1012 = vector.broadcast %cst_359 : f32 to vector<2x32xf32>
    %1013 = arith.addf %1012, %1011 : vector<2x32xf32>
    %1014 = arith.divf %1012, %1013 : vector<2x32xf32>
    %1015 = vector.extract_strided_slice %983 {offsets = [0, 32], sizes = [2, 32], strides = [1, 1]} : vector<2x128xf32> to vector<2x32xf32>
    %1016 = arith.negf %1015 : vector<2x32xf32>
    %1017 = math.exp %1016 : vector<2x32xf32>
    %cst_360 = arith.constant 1.000000e+00 : f32
    %1018 = vector.broadcast %cst_360 : f32 to vector<2x32xf32>
    %1019 = arith.addf %1018, %1017 : vector<2x32xf32>
    %1020 = arith.divf %1018, %1019 : vector<2x32xf32>
    %1021 = vector.extract_strided_slice %983 {offsets = [0, 64], sizes = [2, 32], strides = [1, 1]} : vector<2x128xf32> to vector<2x32xf32>
    %1022 = math.tanh %1021 : vector<2x32xf32>
    %1023 = vector.extract_strided_slice %983 {offsets = [0, 96], sizes = [2, 32], strides = [1, 1]} : vector<2x128xf32> to vector<2x32xf32>
    %1024 = arith.negf %1023 : vector<2x32xf32>
    %1025 = math.exp %1024 : vector<2x32xf32>
    %cst_361 = arith.constant 1.000000e+00 : f32
    %1026 = vector.broadcast %cst_361 : f32 to vector<2x32xf32>
    %1027 = arith.addf %1026, %1025 : vector<2x32xf32>
    %1028 = arith.divf %1026, %1027 : vector<2x32xf32>
    %1029 = arith.mulf %1020, %971 : vector<2x32xf32>
    %1030 = arith.mulf %1014, %1022 : vector<2x32xf32>
    %1031 = arith.addf %1029, %1030 : vector<2x32xf32>
    %1032 = math.tanh %1031 : vector<2x32xf32>
    %1033 = arith.mulf %1028, %1032 : vector<2x32xf32>
    %c30_362 = arith.constant 30 : index
    %c0_363 = arith.constant 0 : index
    %1034 = vector.load %arg26[%c30_362, %c0_363] : memref<40x32xf32, #tpu.memory_space<vmem>>, vector<2x32xf32>
    tpu.vector_store %arg26[%c30_362, %c0_363], %1008 {strides = array<i32>} : memref<40x32xf32, #tpu.memory_space<vmem>>, vector<2x32xf32>,
    %c2_364 = arith.constant 2 : index
    %c0_365 = arith.constant 0 : index
    %1035 = vector.load %arg27[%c2_364, %c0_365] : memref<40x32xf32, #tpu.memory_space<vmem>>, vector<2x32xf32>
    tpu.vector_store %arg27[%c2_364, %c0_365], %1033 {strides = array<i32>} : memref<40x32xf32, #tpu.memory_space<vmem>>, vector<2x32xf32>,
    %c32_366 = arith.constant 32 : index
    %c0_367 = arith.constant 0 : index
    %1036 = vector.load %arg24[%c32_366, %c0_367] : memref<40x128xf32, #tpu.memory_space<vmem>>, vector<2x128xf32>
    %c0_368 = arith.constant 0 : index
    %c0_369 = arith.constant 0 : index
    %1037 = vector.load %arg9[%c0_368, %c0_369] : memref<32x128xf32, #tpu.memory_space<vmem>>, vector<32x128xf32>
    %cst_370 = arith.constant dense<0.000000e+00> : vector<2x128xf32>
    %1038 = tpu.matmul %1008, %1037, %cst_370 {dimension_numbers = #tpu.dot_dimension_numbers<[1], [0], [0], [1], [0, 0, 1, 1], [], []>} : vector<2x32xf32>, vector<32x128xf32>, vector<2x128xf32> -> vector<2x128xf32>
    %1039 = arith.addf %1036, %1038 : vector<2x128xf32>
    %c0_371 = arith.constant 0 : index
    %c0_372 = arith.constant 0 : index
    %1040 = vector.load %arg25[%c0_371, %c0_372] : memref<40x128xf32, #tpu.memory_space<vmem>>, vector<2x128xf32>
    %c0_373 = arith.constant 0 : index
    %c0_374 = arith.constant 0 : index
    %1041 = vector.load %arg10[%c0_373, %c0_374] : memref<32x128xf32, #tpu.memory_space<vmem>>, vector<32x128xf32>
    %cst_375 = arith.constant dense<0.000000e+00> : vector<2x128xf32>
    %1042 = tpu.matmul %1033, %1041, %cst_375 {dimension_numbers = #tpu.dot_dimension_numbers<[1], [0], [0], [1], [0, 0, 1, 1], [], []>} : vector<2x32xf32>, vector<32x128xf32>, vector<2x128xf32> -> vector<2x128xf32>
    %1043 = arith.addf %1040, %1042 : vector<2x128xf32>
    %1044 = vector.extract_strided_slice %1039 {offsets = [0, 0], sizes = [2, 32], strides = [1, 1]} : vector<2x128xf32> to vector<2x32xf32>
    %1045 = arith.negf %1044 : vector<2x32xf32>
    %1046 = math.exp %1045 : vector<2x32xf32>
    %cst_376 = arith.constant 1.000000e+00 : f32
    %1047 = vector.broadcast %cst_376 : f32 to vector<2x32xf32>
    %1048 = arith.addf %1047, %1046 : vector<2x32xf32>
    %1049 = arith.divf %1047, %1048 : vector<2x32xf32>
    %1050 = vector.extract_strided_slice %1039 {offsets = [0, 32], sizes = [2, 32], strides = [1, 1]} : vector<2x128xf32> to vector<2x32xf32>
    %1051 = arith.negf %1050 : vector<2x32xf32>
    %1052 = math.exp %1051 : vector<2x32xf32>
    %cst_377 = arith.constant 1.000000e+00 : f32
    %1053 = vector.broadcast %cst_377 : f32 to vector<2x32xf32>
    %1054 = arith.addf %1053, %1052 : vector<2x32xf32>
    %1055 = arith.divf %1053, %1054 : vector<2x32xf32>
    %1056 = vector.extract_strided_slice %1039 {offsets = [0, 64], sizes = [2, 32], strides = [1, 1]} : vector<2x128xf32> to vector<2x32xf32>
    %1057 = math.tanh %1056 : vector<2x32xf32>
    %1058 = vector.extract_strided_slice %1039 {offsets = [0, 96], sizes = [2, 32], strides = [1, 1]} : vector<2x128xf32> to vector<2x32xf32>
    %1059 = arith.negf %1058 : vector<2x32xf32>
    %1060 = math.exp %1059 : vector<2x32xf32>
    %cst_378 = arith.constant 1.000000e+00 : f32
    %1061 = vector.broadcast %cst_378 : f32 to vector<2x32xf32>
    %1062 = arith.addf %1061, %1060 : vector<2x32xf32>
    %1063 = arith.divf %1061, %1062 : vector<2x32xf32>
    %1064 = arith.mulf %1055, %1006 : vector<2x32xf32>
    %1065 = arith.mulf %1049, %1057 : vector<2x32xf32>
    %1066 = arith.addf %1064, %1065 : vector<2x32xf32>
    %1067 = math.tanh %1066 : vector<2x32xf32>
    %1068 = arith.mulf %1063, %1067 : vector<2x32xf32>
    %1069 = vector.extract_strided_slice %1043 {offsets = [0, 0], sizes = [2, 32], strides = [1, 1]} : vector<2x128xf32> to vector<2x32xf32>
    %1070 = arith.negf %1069 : vector<2x32xf32>
    %1071 = math.exp %1070 : vector<2x32xf32>
    %cst_379 = arith.constant 1.000000e+00 : f32
    %1072 = vector.broadcast %cst_379 : f32 to vector<2x32xf32>
    %1073 = arith.addf %1072, %1071 : vector<2x32xf32>
    %1074 = arith.divf %1072, %1073 : vector<2x32xf32>
    %1075 = vector.extract_strided_slice %1043 {offsets = [0, 32], sizes = [2, 32], strides = [1, 1]} : vector<2x128xf32> to vector<2x32xf32>
    %1076 = arith.negf %1075 : vector<2x32xf32>
    %1077 = math.exp %1076 : vector<2x32xf32>
    %cst_380 = arith.constant 1.000000e+00 : f32
    %1078 = vector.broadcast %cst_380 : f32 to vector<2x32xf32>
    %1079 = arith.addf %1078, %1077 : vector<2x32xf32>
    %1080 = arith.divf %1078, %1079 : vector<2x32xf32>
    %1081 = vector.extract_strided_slice %1043 {offsets = [0, 64], sizes = [2, 32], strides = [1, 1]} : vector<2x128xf32> to vector<2x32xf32>
    %1082 = math.tanh %1081 : vector<2x32xf32>
    %1083 = vector.extract_strided_slice %1043 {offsets = [0, 96], sizes = [2, 32], strides = [1, 1]} : vector<2x128xf32> to vector<2x32xf32>
    %1084 = arith.negf %1083 : vector<2x32xf32>
    %1085 = math.exp %1084 : vector<2x32xf32>
    %cst_381 = arith.constant 1.000000e+00 : f32
    %1086 = vector.broadcast %cst_381 : f32 to vector<2x32xf32>
    %1087 = arith.addf %1086, %1085 : vector<2x32xf32>
    %1088 = arith.divf %1086, %1087 : vector<2x32xf32>
    %1089 = arith.mulf %1080, %1031 : vector<2x32xf32>
    %1090 = arith.mulf %1074, %1082 : vector<2x32xf32>
    %1091 = arith.addf %1089, %1090 : vector<2x32xf32>
    %1092 = math.tanh %1091 : vector<2x32xf32>
    %1093 = arith.mulf %1088, %1092 : vector<2x32xf32>
    %c32_382 = arith.constant 32 : index
    %c0_383 = arith.constant 0 : index
    %1094 = vector.load %arg26[%c32_382, %c0_383] : memref<40x32xf32, #tpu.memory_space<vmem>>, vector<2x32xf32>
    tpu.vector_store %arg26[%c32_382, %c0_383], %1068 {strides = array<i32>} : memref<40x32xf32, #tpu.memory_space<vmem>>, vector<2x32xf32>,
    %c0_384 = arith.constant 0 : index
    %c0_385 = arith.constant 0 : index
    %1095 = vector.load %arg27[%c0_384, %c0_385] : memref<40x32xf32, #tpu.memory_space<vmem>>, vector<2x32xf32>
    tpu.vector_store %arg27[%c0_384, %c0_385], %1093 {strides = array<i32>} : memref<40x32xf32, #tpu.memory_space<vmem>>, vector<2x32xf32>,
    %c0_386 = arith.constant 0 : index
    %c0_387 = arith.constant 0 : index
    %1096 = vector.load %arg26[%c0_386, %c0_387] : memref<40x32xf32, #tpu.memory_space<vmem>>, vector<40x32xf32>
    %c0_388 = arith.constant 0 : index
    %c0_389 = arith.constant 0 : index
    %1097 = vector.load %arg27[%c0_388, %c0_389] : memref<40x32xf32, #tpu.memory_space<vmem>>, vector<40x32xf32>
    %1098 = tpu.concatenate %1096, %1097 in 1 : vector<40x32xf32>, vector<40x32xf32> -> vector<40x64xf32>
    %c0_390 = arith.constant 0 : index
    %c0_391 = arith.constant 0 : index
    %1099 = vector.load %arg11[%c0_390, %c0_391] : memref<64x128xf32, #tpu.memory_space<vmem>>, vector<64x128xf32>
    %cst_392 = arith.constant dense<0.000000e+00> : vector<40x128xf32>
    %1100 = tpu.matmul %1098, %1099, %cst_392 {dimension_numbers = #tpu.dot_dimension_numbers<[1], [0], [0], [1], [0, 0, 1, 1], [], []>} : vector<40x64xf32>, vector<64x128xf32>, vector<40x128xf32> -> vector<40x128xf32>
    %c0_393 = arith.constant 0 : index
    %c0_394 = arith.constant 0 : index
    %1101 = vector.load %arg12[%c0_393, %c0_394] : memref<1x128xf32, #tpu.memory_space<vmem>>, vector<1x128xf32>
    %1102 = vector.broadcast %1101 : vector<1x128xf32> to vector<40x128xf32>
    %1103 = arith.addf %1100, %1102 : vector<40x128xf32>
    %1104 = arith.negf %1103 : vector<40x128xf32>
    %1105 = math.exp %1104 : vector<40x128xf32>
    %cst_395 = arith.constant 1.000000e+00 : f32
    %1106 = vector.broadcast %cst_395 : f32 to vector<40x128xf32>
    %1107 = arith.addf %1106, %1105 : vector<40x128xf32>
    %1108 = arith.divf %1106, %1107 : vector<40x128xf32>
    %c0_396 = arith.constant 0 : index
    %c0_397 = arith.constant 0 : index
    %1109 = vector.load %arg23[%c0_396, %c0_397] : memref<40x128xf32, #tpu.memory_space<vmem>>, vector<40x128xf32>
    tpu.vector_store %arg23[%c0_396, %c0_397], %1108 {strides = array<i32>} : memref<40x128xf32, #tpu.memory_space<vmem>>, vector<40x128xf32>,
    return
  }
  func.func @transform_0(%arg0: i32) -> (i32, i32) {
    %c0_i32 = arith.constant 0 : i32
    %c0_i32_0 = arith.constant 0 : i32
    %c0_i32_1 = arith.constant 0 : i32
    return %c0_i32, %c0_i32_0 : i32, i32
  }
  func.func @transform_1(%arg0: i32) -> (i32, i32) {
    %c0_i32 = arith.constant 0 : i32
    %c0_i32_0 = arith.constant 0 : i32
    %c0_i32_1 = arith.constant 0 : i32
    return %c0_i32, %c0_i32_0 : i32, i32
  }
  func.func @transform_2(%arg0: i32) -> (i32, i32) {
    %c0_i32 = arith.constant 0 : i32
    %c0_i32_0 = arith.constant 0 : i32
    %c0_i32_1 = arith.constant 0 : i32
    return %c0_i32, %c0_i32_0 : i32, i32
  }
  func.func @transform_3(%arg0: i32) -> (i32, i32) {
    %c0_i32 = arith.constant 0 : i32
    %c0_i32_0 = arith.constant 0 : i32
    %c0_i32_1 = arith.constant 0 : i32
    return %c0_i32, %c0_i32_0 : i32, i32
  }
  func.func @transform_4(%arg0: i32) -> (i32, i32) {
    %c0_i32 = arith.constant 0 : i32
    %c0_i32_0 = arith.constant 0 : i32
    %c0_i32_1 = arith.constant 0 : i32
    return %c0_i32, %c0_i32_0 : i32, i32
  }
  func.func @transform_5(%arg0: i32) -> (i32, i32) {
    %c0_i32 = arith.constant 0 : i32
    %c0_i32_0 = arith.constant 0 : i32
    %c0_i32_1 = arith.constant 0 : i32
    return %c0_i32, %c0_i32_0 : i32, i32
  }
  func.func @transform_6(%arg0: i32) -> (i32, i32) {
    %c0_i32 = arith.constant 0 : i32
    %c0_i32_0 = arith.constant 0 : i32
    %c0_i32_1 = arith.constant 0 : i32
    return %c0_i32, %c0_i32_0 : i32, i32
  }
  func.func @transform_7(%arg0: i32) -> (i32, i32) {
    %c0_i32 = arith.constant 0 : i32
    %c0_i32_0 = arith.constant 0 : i32
    %c0_i32_1 = arith.constant 0 : i32
    return %c0_i32, %c0_i32_0 : i32, i32
  }
  func.func @transform_8(%arg0: i32) -> (i32, i32) {
    %c0_i32 = arith.constant 0 : i32
    %c0_i32_0 = arith.constant 0 : i32
    %c0_i32_1 = arith.constant 0 : i32
    return %c0_i32, %c0_i32_0 : i32, i32
  }
  func.func @transform_9(%arg0: i32) -> (i32, i32) {
    %c0_i32 = arith.constant 0 : i32
    %c0_i32_0 = arith.constant 0 : i32
    %c0_i32_1 = arith.constant 0 : i32
    return %c0_i32, %c0_i32_0 : i32, i32
  }
  func.func @transform_10(%arg0: i32) -> (i32, i32) {
    %c0_i32 = arith.constant 0 : i32
    %c0_i32_0 = arith.constant 0 : i32
    %c0_i32_1 = arith.constant 0 : i32
    return %c0_i32, %c0_i32_0 : i32, i32
  }
  func.func @transform_11(%arg0: i32) -> (i32, i32) {
    %c0_i32 = arith.constant 0 : i32
    %c0_i32_0 = arith.constant 0 : i32
    %c0_i32_1 = arith.constant 0 : i32
    return %c0_i32, %c0_i32_0 : i32, i32
  }
  func.func @transform_12(%arg0: i32) -> (i32, i32) {
    %c0_i32 = arith.constant 0 : i32
    %c0_i32_0 = arith.constant 0 : i32
    %c0_i32_1 = arith.constant 0 : i32
    return %c0_i32, %c0_i32_0 : i32, i32
  }
  func.func @transform_13(%arg0: i32) -> (i32, i32) {
    %c0_i32 = arith.constant 0 : i32
    %c0_i32_0 = arith.constant 0 : i32
    %c0_i32_1 = arith.constant 0 : i32
    return %c0_i32, %c0_i32_0 : i32, i32
  }
  func.func @transform_14(%arg0: i32) -> (i32, i32) {
    %c0_i32 = arith.constant 0 : i32
    %c0_i32_0 = arith.constant 0 : i32
    %c0_i32_1 = arith.constant 0 : i32
    return %c0_i32, %c0_i32_0 : i32, i32
  }
  func.func @transform_15(%arg0: i32) -> (i32, i32) {
    %c0_i32 = arith.constant 0 : i32
    %c0_i32_0 = arith.constant 0 : i32
    %c0_i32_1 = arith.constant 0 : i32
    return %c0_i32, %c0_i32_0 : i32, i32
  }
  func.func @transform_16(%arg0: i32) -> (i32, i32) {
    %c0_i32 = arith.constant 0 : i32
    %c0_i32_0 = arith.constant 0 : i32
    %c0_i32_1 = arith.constant 0 : i32
    return %c0_i32, %c0_i32_0 : i32, i32
  }
  func.func @transform_17(%arg0: i32) -> (i32, i32) {
    %c0_i32 = arith.constant 0 : i32
    %c0_i32_0 = arith.constant 0 : i32
    %c0_i32_1 = arith.constant 0 : i32
    return %c0_i32, %c0_i32_0 : i32, i32
  }
  func.func @transform_18(%arg0: i32) -> (i32, i32) {
    %c0_i32 = arith.constant 0 : i32
    %c0_i32_0 = arith.constant 0 : i32
    %c0_i32_1 = arith.constant 0 : i32
    return %c0_i32, %c0_i32_0 : i32, i32
  }
  func.func @transform_19(%arg0: i32) -> (i32, i32) {
    %c0_i32 = arith.constant 0 : i32
    %c0_i32_0 = arith.constant 0 : i32
    %c0_i32_1 = arith.constant 0 : i32
    return %c0_i32, %c0_i32_0 : i32, i32
  }
  func.func @transform_20(%arg0: i32) -> (i32, i32) {
    %c0_i32 = arith.constant 0 : i32
    %c0_i32_0 = arith.constant 0 : i32
    %c0_i32_1 = arith.constant 0 : i32
    return %c0_i32, %c0_i32_0 : i32, i32
  }
  func.func @transform_21(%arg0: i32) -> (i32, i32) {
    %c0_i32 = arith.constant 0 : i32
    %c0_i32_0 = arith.constant 0 : i32
    %c0_i32_1 = arith.constant 0 : i32
    return %c0_i32, %c0_i32_0 : i32, i32
  }
  func.func @transform_22(%arg0: i32) -> (i32, i32) {
    %c0_i32 = arith.constant 0 : i32
    %c0_i32_0 = arith.constant 0 : i32
    %c0_i32_1 = arith.constant 0 : i32
    return %c0_i32, %c0_i32_0 : i32, i32
  }
}

</mosaic_0001>

<bundles_post_ra>
// kernel: squeeze.9
= control target key start
LH: loop header
LB: loop body
LE: loop exit
PB: predicated region body
PF: predicated region fallthrough
CT: control target
= control target key end

     0   :  { %s138_s8 = smov 126   ;;  %s139_s9 = smov 120   ;;  %vm7_vm0 = vcmask 15360   ;;  %s234_s0 = inlined_call_operand.vmem [shape: f32[34], index: 0, kind: input, shape index: {}]   ;;  %s235_s1 = inlined_call_operand.vmem [shape: f32[17,2], index: 1, kind: output, shape index: {}]  }
   0x1   :  { %v4_v0 = vld [vmem:[%s234_s0] sm:$0x1]  ;;  %s137_s0 = smov 122   ;;  %s140_s10 = smov 124  }
   0x2   :  { %5 = vst [vmem:[#allocation0] sm:$0x1] %v4_v0  ;;  %s141_s11 = smov 116   ;;  %s142_s12 = smov 118  }
   0x3   :  { %s143_s13 = smov 112   ;;  %s144_s14 = smov 114  }
   0x4   :  { %s145_s17 = smov 108   ;;  %s146_s18 = smov 110  }
   0x5   :  { %s147_s19 = smov 104   ;;  %s148_s20 = smov 106  }
   0x6   :  { %s149_s21 = smov 100   ;;  %s150_s22 = smov 102  }
   0x7   :  { %s151_s23 = smov 96   ;;  %s152_s24 = smov 98  }
   0x9   :  { %v21_v1 = vld [vmem:[#allocation0] sm:$0x1]  }
   0xa   :  { %v9_v2 = vld [vmem:[#allocation0] sm:$0x1]   ;;  %22 = vrot.lane.b32.xlu1 %v21_v1, %s137_s0 }
   0xb   :  { %10 = vrot.lane.b32.xlu0 %v9_v2, %s138_s8  ;;  %v27_v3 = vld [vmem:[#allocation0] sm:$0x1]  }
   0xc   :  { %v15_v4 = vld [vmem:[#allocation0] sm:$0x1]  }
   0xd   :  { %v39_v5 = vld [vmem:[#allocation0] sm:$0x1]  }
   0xe   :  { %28 = vrot.lane.b32.xlu1 %v27_v3, %s139_s9  ;;  %v33_v6 = vld [vmem:[#allocation0] sm:$0x1]  }
   0xf   :  { %16 = vrot.lane.b32.xlu0 %v15_v4, %s140_s10  ;;  %v51_v7 = vld [vmem:[#allocation0] sm:$0x1]  }
  0x10   :  { %v45_v8 = vld [vmem:[#allocation0] sm:$0x1]  }
  0x11   :  { %v63_v9 = vld [vmem:[#allocation0] sm:$0x1]  }
  0x12   :  { %40 = vrot.lane.b32.xlu1 %v39_v5, %s141_s11  ;;  %v57_v10 = vld [vmem:[#allocation0] sm:$0x1]  }
  0x13   :  { %34 = vrot.lane.b32.xlu0 %v33_v6, %s142_s12  ;;  %v6_v11 = vld [vmem:[#allocation0] sm:$0x1]  }
  0x14   :  { %8 = vst.msk [vmem:[%s235_s1] sm:$0x1] %vm7_vm0, %v6_v11   ;;  %v75_v12 = vld [vmem:[#allocation0] sm:$0x1]  }
  0x15   :  { %v69_v13 = vld [vmem:[#allocation0] sm:$0x1]  }
  0x16   :  { %52 = vrot.lane.b32.xlu1 %v51_v7, %s143_s13  ;;  %v87_v14 = vld [vmem:[#allocation0] sm:$0x1]  }
  0x17   :  { %46 = vrot.lane.b32.xlu0 %v45_v8, %s144_s14  ;;  %v81_v15 = vld [vmem:[#allocation0] sm:$0x1]  }
  0x18   :  { %v99_v16 = vld [vmem:[#allocation0] sm:$0x1]  }
  0x19   :  { %v93_v17 = vld [vmem:[#allocation0] sm:$0x1]  }
  0x1a   :  { %64 = vrot.lane.b32.xlu1 %v63_v9, %s145_s17 }
  0x1b   :  { %58 = vrot.lane.b32.xlu0 %v57_v10, %s146_s18 }
  0x1e   :  { %76 = vrot.lane.b32.xlu1 %v75_v12, %s147_s19 }
  0x1f   :  { %70 = vrot.lane.b32.xlu0 %v69_v13, %s148_s20 }
  0x22   :  { %88 = vrot.lane.b32.xlu1 %v87_v14, %s149_s21 }
  0x23   :  { %82 = vrot.lane.b32.xlu0 %v81_v15, %s150_s22 }
  0x26   :  { %100 = vrot.lane.b32.xlu1 %v99_v16, %s151_s23 }
  0x27   :  { %94 = vrot.lane.b32.xlu0 %v93_v17, %s152_s24 }
  0x7c   :  { %v23_v18 = vpop.permute.xlu1 %22  }
  0x7d   :  { %v11_v19 = vpop.permute.xlu0 %10   ;;  %107 = vst.msk [vmem:[%s235_s1 + $0x3] sm:$0x1] %vm7_vm0, %v23_v18  }
  0x7e   :  { %105 = vst.msk [vmem:[%s235_s1 + $0x1] sm:$0x1] %vm7_vm0, %v11_v19  }
  0x80   :  { %v29_v20 = vpop.permute.xlu1 %28  }
  0x81   :  { %v17_v21 = vpop.permute.xlu0 %16   ;;  %108 = vst.msk [vmem:[%s235_s1 + $0x4] sm:$0x1] %vm7_vm0, %v29_v20  }
  0x82   :  { %106 = vst.msk [vmem:[%s235_s1 + $0x2] sm:$0x1] %vm7_vm0, %v17_v21  }
  0x84   :  { %v41_v22 = vpop.permute.xlu1 %40  }
  0x85   :  { %v35_v23 = vpop.permute.xlu0 %34   ;;  %110 = vst.msk [vmem:[%s235_s1 + $0x6] sm:$0x1] %vm7_vm0, %v41_v22  }
  0x86   :  { %109 = vst.msk [vmem:[%s235_s1 + $0x5] sm:$0x1] %vm7_vm0, %v35_v23  }
  0x88   :  { %v53_v24 = vpop.permute.xlu1 %52  }
  0x89   :  { %v47_v25 = vpop.permute.xlu0 %46   ;;  %112 = vst.msk [vmem:[%s235_s1 + $0x8] sm:$0x1] %vm7_vm0, %v53_v24  }
  0x8a   :  { %111 = vst.msk [vmem:[%s235_s1 + $0x7] sm:$0x1] %vm7_vm0, %v47_v25  }
  0x8c   :  { %v65_v26 = vpop.permute.xlu1 %64  }
  0x8d   :  { %v59_v27 = vpop.permute.xlu0 %58   ;;  %114 = vst.msk [vmem:[%s235_s1 + $0xa] sm:$0x1] %vm7_vm0, %v65_v26  }
  0x8e   :  { %113 = vst.msk [vmem:[%s235_s1 + $0x9] sm:$0x1] %vm7_vm0, %v59_v27  }
  0x90   :  { %v77_v28 = vpop.permute.xlu1 %76  }
  0x91   :  { %v71_v29 = vpop.permute.xlu0 %70   ;;  %116 = vst.msk [vmem:[%s235_s1 + $0xc] sm:$0x1] %vm7_vm0, %v77_v28  }
  0x92   :  { %115 = vst.msk [vmem:[%s235_s1 + $0xb] sm:$0x1] %vm7_vm0, %v71_v29  }
  0x94   :  { %v89_v30 = vpop.permute.xlu1 %88  }
  0x95   :  { %v83_v31 = vpop.permute.xlu0 %82   ;;  %118 = vst.msk [vmem:[%s235_s1 + $0xe] sm:$0x1] %vm7_vm0, %v89_v30  }
  0x96   :  { %117 = vst.msk [vmem:[%s235_s1 + $0xd] sm:$0x1] %vm7_vm0, %v83_v31  }
  0x98   :  { %v101_v32 = vpop.permute.xlu1 %100  }
  0x99   :  { %v95_v33 = vpop.permute.xlu0 %94   ;;  %120 = vst.msk [vmem:[%s235_s1 + $0x10] sm:$0x1] %vm7_vm0, %v101_v32  }
  0x9a   :  { %119 = vst.msk [vmem:[%s235_s1 + $0xf] sm:$0x1] %vm7_vm0, %v95_v33  }

// kernel: fwd.1
= control target key start
LH: loop header
LB: loop body
LE: loop exit
PB: predicated region body
PF: predicated region fallthrough
CT: control target
= control target key end

     0   :  { %s8649_s0 = inlined_call_operand.vmem [shape: f32[40,16], index: 0, kind: input, shape index: {}]   ;;  %s8650_s1 = inlined_call_operand.vmem [shape: f32[40,16], index: 1, kind: input, shape index: {}]   ;;  %s8651_s2 = inlined_call_operand.vmem [shape: f32[40,1], index: 2, kind: input, shape index: {}]   ;;  %s8652_s3 = inlined_call_operand.vmem [shape: f32[16,128], index: 3, kind: input, shape index: {}]   ;;  %s8653_s4 = inlined_call_operand.vmem [shape: f32[40,128], index: 4, kind: input, shape index: {}]   ;;  %s8654_s5 = inlined_call_operand.vmem [shape: f32[1,128], index: 5, kind: input, shape index: {}]   ;;  %s8655_s6 = inlined_call_operand.vmem [shape: f32[16,256], index: 6, kind: input, shape index: {}]   ;;  %s8656_s7 = inlined_call_operand.vmem [shape: f32[40,256], index: 7, kind: input, shape index: {}]   ;;  %s8657_s8 = inlined_call_operand.vmem [shape: f32[32,128], index: 8, kind: input, shape index: {}]   ;;  %s8658_s9 = inlined_call_operand.vmem [shape: f32[32,128], index: 9, kind: input, shape index: {}]   ;;  %s8659_s10 = inlined_call_operand.vmem [shape: f32[64,128], index: 10, kind: input, shape index: {}]   ;;  %s8660_s11 = inlined_call_operand.vmem [shape: f32[1,128], index: 11, kind: input, shape index: {}]   ;;  %s8661_s12 = inlined_call_operand.vmem [shape: f32[8,40], index: 12, kind: input, shape index: {}]   ;;  %s8662_s13 = inlined_call_operand.hbm [shape: f32[128,384], index: 13, kind: input, shape index: {}]   ;;  %s8663_s14 = inlined_call_operand.vmem [shape: f32[1,384], index: 14, kind: input, shape index: {}]   ;;  %s8664_s15 = inlined_call_operand.vmem [shape: f32[384,384], index: 15, kind: input, shape index: {}]   ;;  %s8665_s16 = inlined_call_operand.vmem [shape: f32[1,384], index: 16, kind: input, shape index: {}]   ;;  %s8666_s17 = inlined_call_operand.hbm [shape: f32[384,128], index: 17, kind: input, shape index: {}]   ;;  %s8667_s18 = inlined_call_operand.vmem [shape: f32[1,128], index: 18, kind: input, shape index: {}]   ;;  %s8668_s19 = inlined_call_operand.vmem [shape: f32[40,128], index: 19, kind: output, shape index: {0}]   ;;  %s8669_s20 = inlined_call_operand.vmem [shape: f32[40,128], index: 20, kind: output, shape index: {1}]   ;;  %s8670_s21 = inlined_call_operand.vmem [shape: f32[8,128], index: 21, kind: output, shape index: {2}]   ;;  %s8671_s22 = inlined_call_operand.vmem [shape: f32[40,128], index: 22, kind: output, shape index: {3}]  }
   0x1   :  { %8678 = sst [smem:[#allocation12_spill]] %s8649_s0 }
   0x2   :  { %8679 = sst [smem:[#allocation13_spill]] %s8650_s1 }
   0x3   :  { %8680 = sst [smem:[#allocation14_spill]] %s8651_s2 }
   0x4   :  { %8681 = sst [smem:[#allocation15_spill]] %s8652_s3 }
   0x5   :  { %8682 = sst [smem:[#allocation16_spill]] %s8653_s4 }
   0x6   :  { %8683 = sst [smem:[#allocation17_spill]] %s8654_s5 }
   0x7   :  { %8684 = sst [smem:[#allocation18_spill]] %s8655_s6 }
   0x8   :  { %28 = vsyncpa [#allocation7], 0 }
   0x9   :  { %29 = vsyncpa [#allocation9], 0  ;;  %s7083_s3 = smov [#allocation6]   ;;  %s7035_s4 = scalar_lea.hbm %s8662_s13, 6144 }
   0xa   :  { %s61_s28 = sshll.u32 %s7083_s3, 4  ;;  %p7036_p0 = scmp.ne.s32.totalorder %s8662_s13, %s7035_s4  ;;  %s62_s28 = int_to_ptr.vmem [resolvable:$true] %s61_s28 }
   0xb   :  { %p7039_p1 = scmp.lt.u32.totalorder %s7035_s4, %s8662_s13 }
   0xd   :  { %p7041_p2 = pnand %p7039_p1, %p7036_p0 }
   0xf   :  { %7044 = shalt.err (!%p7041_p2)
}
  0x10   :  { %s7045_s24 = scalar_lea.vmem %s62_s28, 6144  ;;  %p7050_p4 = scmp.lt.s32.totalorder %s62_s28, %s62_s28 }
  0x11   :  { %p7046_p3 = scmp.ne.s32.totalorder %s62_s28, %s7045_s24  ;;  %p7051_p5 = scmp.lt.s32.totalorder %s7045_s24, %s7045_s24 }
  0x13   :  { %p7052_p6 = por %p7051_p5, %p7050_p4 }
  0x15   :  { %p7053_p7 = pnand %p7052_p6, %p7046_p3 }
  0x17   :  { %7056 = shalt.err (!%p7053_p7)
}
  0x18   :  { %s7084_s6 = smov 384   ;;  %s7085_s25 = smov 24  }
  0x19   :  { %67 = dma.hbm_to_vmem [thread:$0]  %s8662_s13, 6144, %s62_s28, [#allocation7], %s7084_s6, %s7084_s6, %s7085_s25  }
  0x1a   :  { %s7086_s27 = smov [#allocation8]   ;;  %s7057_s4 = scalar_lea.hbm %s8666_s17, 6144 }
  0x1b   :  { %s79_s3 = sshll.u32 %s7086_s27, 4  ;;  %p7058_p8 = scmp.ne.s32.totalorder %s8666_s17, %s7057_s4  ;;  %s80_s3 = int_to_ptr.vmem [resolvable:$true] %s79_s3 }
  0x1c   :  { %p7061_p9 = scmp.lt.u32.totalorder %s7057_s4, %s8666_s17 }
  0x1e   :  { %p7063_p10 = pnand %p7061_p9, %p7058_p8 }
  0x20   :  { %7066 = shalt.err (!%p7063_p10)
}
  0x21   :  { %s7067_s24 = scalar_lea.vmem %s80_s3, 6144  ;;  %p7072_p12 = scmp.lt.s32.totalorder %s80_s3, %s80_s3 }
  0x22   :  { %p7068_p11 = scmp.ne.s32.totalorder %s80_s3, %s7067_s24  ;;  %p7073_p13 = scmp.lt.s32.totalorder %s7067_s24, %s7067_s24 }
  0x24   :  { %p7074_p0 = por %p7073_p13, %p7072_p12 }
  0x26   :  { %p7075_p1 = pnand %p7074_p0, %p7068_p11 }
  0x28   :  { %7078 = shalt.err (!%p7075_p1)
}
  0x29   :  { %s7087_s13 = smov 128   ;;  %s7088_s28 = smov 8  }
  0x2a   :  { %85 = dma.hbm_to_vmem [thread:$0]  %s8666_s17, 6144, %s80_s3, [#allocation9], %s7087_s13, %s7087_s13, %s7088_s28  }
  0x2b   :  { %7079 = dma.done.wait [#allocation7], 6144  }
  0x2c   :  { %7080 = vsyncadd [#allocation7], 4294961152 }
  0x2d   :  { %7081 = dma.done.wait [#allocation9], 6144  }
  0x2e   :  { %7082 = vsyncadd [#allocation9], 4294961152  ;;  %v7089_v0 = vmov 0.0|0.0   ;;  %vm7090_vm0 = vmmov 0   ;;  %v7091_v1 = vmov 0.0   ;;  %v7092_v2 = vmov 0  }
  0x2f   :  { %6208 = vmatprep.subr.bf16.mxu0 %v7089_v0  ;;  %5670 = vmatprep.mubr.msk.f32.mxu0 %vm7090_vm0, %v7091_v1  ;;  %s8685_s2 = sld [smem:[#allocation15_spill]]  ;;  %s8686_s4 = sld [smem:[#allocation14_spill]]  ;;  %vm106_vm1 = vcmask 130048   ;;  %v405_v52 = vld [vmem:[#allocation6 + $0x8] sm:$0xff]  ;;  %v408_v53 = vld [vmem:[#allocation6 + $0x20] sm:$0xff]  ;;  %v407_v56 = vld [vmem:[#allocation6 + $0x18] sm:$0xff] }
  0x30   :  { %6717 = vset.pattern.permute.xlu0 %v7092_v2  ;;  %6718 = vset.pattern.permute.xlu1 %v7092_v2  ;;  %s8687_s1 = sld [smem:[#allocation12_spill]]  ;;  %s8688_s13 = sld [smem:[#allocation16_spill]]  ;;  %v404_v54 = vld [vmem:[#allocation6] sm:$0xff]  ;;  %v6217_v55 = vpack.c.bf16 %v408_v53, %v405_v52  ;;  %v411_v58 = vld [vmem:[#allocation6 + $0x38] sm:$0xff]  ;;  %v414_v59 = vld [vmem:[#allocation6 + $0x50] sm:$0xff]  ;;  %vm330_vm7 = vcmask 326656  }
  0x31   :  { %6211 = vmatprep.subr.bf16.mxu1 %v7089_v0  ;;  %5695 = vmatprep.mubr.msk.f32.mxu1 %vm7090_vm0, %v7091_v1  ;;  %s8689_s25 = sld [smem:[#allocation17_spill]]  ;;  %v6219_v57 = vpack.c.bf16 %v407_v56, %v404_v54  ;;  %v410_v60 = vld [vmem:[#allocation6 + $0x30] sm:$0xff]  ;;  %v6221_v61 = vpack.c.bf16 %v414_v59, %v411_v58  ;;  %v413_v62 = vld [vmem:[#allocation6 + $0x48] sm:$0xff]  ;;  %s8691_s26 = sld [smem:[#allocation13_spill]]  ;;  %vm1400_vm8 = vcmask 261120   ;;  %vm1618_vm9 = vcmask 254976  }
  0x32   :  { %v6223_v63 = vpack.c.bf16 %v413_v62, %v410_v60  ;;  %v417_v2 = vld [vmem:[#allocation6 + $0x68] sm:$0xff]  ;;  %s7093_s28 = smov 64   ;;  %1401 = vst.msk [vmem:[#allocation4] sm:$0xff] %vm1400_vm8, %v7091_v1  ;;  %1402 = vst.msk [vmem:[#allocation4 + $0x8] sm:$0xff] %vm1400_vm8, %v7091_v1  ;;  %vm5099_vm10 = vcmask 523264  }
  0x33   :  { %1403 = vst.msk [vmem:[#allocation4 + $0x10] sm:$0xff] %vm1400_vm8, %v7091_v1  ;;  %1404 = vst.msk [vmem:[#allocation4 + $0x18] sm:$0xff] %vm1400_vm8, %v7091_v1 }
  0x34   :  { %1405 = vst.msk [vmem:[#allocation4 + $0x20] sm:$0xff] %vm1400_vm8, %v7091_v1  ;;  %1406 = vst.msk [vmem:[#allocation5] sm:$0xff] %vm1400_vm8, %v7091_v1 }
  0x35   :  { %v99_v3 = vld [vmem:[%s8685_s2] sm:$0xff]  ;;  %v100_v4 = vld [vmem:[%s8685_s2 + $0x8] sm:$0xff]  ;;  %v249_v8 = vld [vmem:[%s8686_s4 + $0x10] sm:$0xff]  ;;  %1407 = vst.msk [vmem:[#allocation5 + $0x8] sm:$0xff] %vm1400_vm8, %v7091_v1 }
  0x36   :  { %v6209_v5 = vpack.c.bf16 %v100_v4, %v99_v3  ;;  %v247_v6 = vld [vmem:[%s8686_s4] sm:$0xff]  ;;  %v248_v9 = vld [vmem:[%s8686_s4 + $0x8] sm:$0xff]  ;;  %264 = vperm.xlu1 %6718, %v249_v8   ;;  %v250_v10 = vld [vmem:[%s8686_s4 + $0x18] sm:$0xff]  ;;  %1408 = vst.msk [vmem:[#allocation5 + $0x10] sm:$0xff] %vm1400_vm8, %v7091_v1 }
  0x37   :  { %v94_v7 = vld [vmem:[%s8687_s1] sm:$0xff]  ;;  %254 = vperm.xlu0 %6717, %v247_v6   ;;  %v95_v11 = vld [vmem:[%s8687_s1 + $0x8] sm:$0xff]  ;;  %v96_v13 = vld [vmem:[%s8687_s1 + $0x10] sm:$0xff]  ;;  %1409 = vst.msk [vmem:[#allocation5 + $0x18] sm:$0xff] %vm1400_vm8, %v7091_v1 }
  0x38   :  { %6210 = vmatpush3.bf16.msra.mxu0 %v6209_v5  ;;  %v251_v12 = vld [vmem:[%s8686_s4 + $0x20] sm:$0xff]  ;;  %v97_v14 = vld [vmem:[%s8687_s1 + $0x18] sm:$0xff]  ;;  %v102_v22 = vld [vmem:[%s8688_s13 + $0x8] sm:$0xff]  ;;  %1410 = vst.msk [vmem:[#allocation5 + $0x20] sm:$0xff] %vm1400_vm8, %v7091_v1 }
  0x39   :  { %v98_v15 = vld [vmem:[%s8687_s1 + $0x20] sm:$0xff]  ;;  %v103_v30 = vld [vmem:[%s8688_s13 + $0x10] sm:$0xff]  ;;  %v104_v36 = vld [vmem:[%s8688_s13 + $0x18] sm:$0xff]  ;;  %6218 = vmatprep.subr.bf16.mxu0 %v6217_v55 }
  0x3a   :  { %269 = vperm.xlu1 %6718, %v250_v10   ;;  %v101_v17 = vld [vmem:[%s8688_s13] sm:$0xff]  ;;  %v419_v6 = vld [vmem:[#allocation6 + $0x78] sm:$0xff] }
  0x3b   :  { %5671 = vmatmul.mubr.msk.f32.vlgmr.msra.gmra.mrb[0].mxu0 %vm106_vm1, %v94_v7  ;;  %259 = vperm.xlu0 %6717, %v248_v9   ;;  %v5263_v19 = vld [vmem:[%s8689_s25] ss:$0 sm:$0xff]  ;;  %v423_v8 = vld [vmem:[#allocation6 + $0x98] sm:$0xff]  ;;  %v426_v9 = vld [vmem:[#allocation6 + $0xb0] sm:$0xff] }
  0x3c   :  { %5673 = vmatprep.mubr.msk.f32.mxu0 %vm7090_vm0, %v7091_v1  ;;  %v105_v43 = vld [vmem:[%s8688_s13 + $0x20] sm:$0xff]  ;;  %6220 = vmatpush1.bf16.msra.mxu0 %v6219_v57  ;;  %v6229_v10 = vpack.c.bf16 %v426_v9, %v423_v8  ;;  %v415_v9 = vld [vmem:[#allocation6 + $0x58] sm:$0xff] }
  0x3d   :  { %6222 = vmatprep.subr.bf16.mxu0 %v6221_v61  ;;  %v420_v3 = vld [vmem:[#allocation6 + $0x80] sm:$0xff] }
  0x3e   :  { %v6225_v4 = vpack.c.bf16 %v420_v3, %v417_v2  ;;  %v416_v5 = vld [vmem:[#allocation6 + $0x60] sm:$0xff] }
  0x3f   :  { %5674 = vmatmul.mubr.msk.f32.gmra.mrb[2].mxu0 %vm106_vm1, %v95_v11  ;;  %274 = vperm.xlu0 %6717, %v251_v12   ;;  %v6227_v7 = vpack.c.bf16 %v419_v6, %v416_v5  ;;  %v422_v11 = vld [vmem:[#allocation6 + $0x90] sm:$0xff]  ;;  %v425_v12 = vld [vmem:[#allocation6 + $0xa8] sm:$0xff]  ;;  %v412_v8 = vld [vmem:[#allocation6 + $0x40] sm:$0xff] }
  0x40   :  { %5676 = vmatprep.mubr.msk.f32.mxu0 %vm7090_vm0, %v7091_v1  ;;  %6224 = vmatpush1.bf16.msra.mxu0 %v6223_v63  ;;  %v406_v5 = vld [vmem:[#allocation6 + $0x10] sm:$0xff]  ;;  %v409_v6 = vld [vmem:[#allocation6 + $0x28] sm:$0xff] }
  0x41   :  { %6226 = vmatprep.subr.bf16.mxu0 %v6225_v4 }
  0x43   :  { %5677 = vmatmul.mubr.msk.f32.gmra.mrb[4].mxu0 %vm106_vm1, %v96_v13  ;;  %v6231_v13 = vpack.c.bf16 %v425_v12, %v422_v11  ;;  %v421_v11 = vld [vmem:[#allocation6 + $0x88] sm:$0xff] }
  0x44   :  { %5679 = vmatprep.mubr.msk.f32.mxu0 %vm7090_vm0, %v7091_v1  ;;  %6228 = vmatpush1.bf16.msra.mxu0 %v6227_v7  ;;  %v6250_v7 = vpack.c.bf16 %v409_v6, %v406_v5 }
  0x45   :  { %6230 = vmatprep.subr.bf16.mxu0 %v6229_v10  ;;  %v418_v10 = vld [vmem:[#allocation6 + $0x70] sm:$0xff] }
  0x46   :  { %v6256_v12 = vpack.c.bf16 %v421_v11, %v418_v10  ;;  %v684_v10 = vld [vmem:[%s8664_s15 + $0x238] sm:$0xff] }
  0x47   :  { %5680 = vmatmul.mubr.msk.f32.gmra.mrb[6].mxu0 %vm106_vm1, %v97_v14  ;;  %v429_v14 = vld [vmem:[#allocation6 + $0xc8] sm:$0xff] }
  0x48   :  { %5682 = vmatprep.mubr.msk.f32.mxu0 %vm7090_vm0, %v7091_v1  ;;  %6232 = vmatpush1.bf16.msra.mxu0 %v6231_v13  ;;  %v424_v13 = vld [vmem:[#allocation6 + $0xa0] sm:$0xff] }
  0x4b   :  { %5683 = vmatmul.mubr.msk.f32.gmra.mrb[8].mxu0 %vm106_vm1, %v98_v15  ;;  %v432_v15 = vld [vmem:[#allocation6 + $0xe0] sm:$0xff] }
  0x4c   :  { %533 = vmatprep.mubr.f32.mxu0 %v7091_v1 }
  0xb5   :  { %v265_v28 = vpop.permute.xlu1 %264 }
  0xb6   :  { %v255_v16 = vpop.permute.xlu0 %254  ;;  %vm286_vm4 = vcmp.gt.f32.partialorder %v265_v28, 0.5 }
  0xb7   :  { %vm284_vm2 = vcmp.gt.f32.partialorder %v255_v16, 0.5  ;;  %v6233_v16 = vpack.c.bf16 %v432_v15, %v429_v14  ;;  %v427_v14 = vld [vmem:[#allocation6 + $0xb8] sm:$0xff] }
  0xb8   :  { %v6259_v15 = vpack.c.bf16 %v427_v14, %v424_v13  ;;  %v634_v13 = vld [vmem:[%s8664_s15 + $0xa8] sm:$0xff] }
  0xb9   :  { %v270_v37 = vpop.permute.xlu1 %269  ;;  %6234 = vmatprep.subr.bf16.mxu0 %v6233_v16  ;;  %v430_v16 = vld [vmem:[#allocation6 + $0xd0] sm:$0xff] }
  0xba   :  { %v260_v23 = vpop.permute.xlu0 %259  ;;  %vm287_vm5 = vcmp.gt.f32.partialorder %v270_v37, 0.5  ;;  %v447_v37 = vld [vmem:[#allocation6 + $0x158] sm:$0xff] }
  0xbb   :  { %vm285_vm3 = vcmp.gt.f32.partialorder %v260_v23, 0.5 }
  0xbe   :  { %v275_v44 = vpop.permute.xlu0 %274 }
  0xbf   :  { %vm288_vm6 = vcmp.gt.f32.partialorder %v275_v44, 0.5 }
 0x10e   :  { %v188_v18 = vpop.f32.mrb[0].mxu0 }
 0x10f   :  { %v7296_v20 = vadd.f32 %v188_v18, %v101_v17  ;;  %v5672_v21 = vpop.f32.mrb[1].mxu0  ;;  %v428_v17 = vld [vmem:[#allocation6 + $0xc0] sm:$0xff]  ;;  %v431_v18 = vld [vmem:[#allocation6 + $0xd8] sm:$0xff] }
 0x110   :  { %v435_v21 = vld [vmem:[#allocation6 + $0xf8] sm:$0xff] }
 0x111   :  { %v7302_v24 = vsel %vm284_vm2, %v7296_v20, %v5263_v19 }
 0x112   :  { %v193_v25 = vpop.f32.mrb[2].mxu0  ;;  %v294_v26 = vmul.f32 %v7302_v24, %v7302_v24 }
 0x113   :  { %v7306_v27 = vadd.f32 %v193_v25, %v102_v22  ;;  %v5675_v29 = vpop.f32.mrb[3].mxu0  ;;  %v438_v22 = vld [vmem:[#allocation6 + $0x110] sm:$0xff] }
 0x114   :  { %299 = vadd.xlane.f32.xlu1 %v294_v26  ;;  %v6237_v23 = vpack.c.bf16 %v438_v22, %v435_v21  ;;  %v434_v25 = vld [vmem:[#allocation6 + $0xf0] sm:$0xff]  ;;  %v437_v26 = vld [vmem:[#allocation6 + $0x108] sm:$0xff]  ;;  %v439_v21 = vld [vmem:[#allocation6 + $0x118] sm:$0xff] }
 0x115   :  { %v7312_v31 = vsel %vm285_vm3, %v7306_v27, %v5263_v19  ;;  %v6239_v28 = vpack.c.bf16 %v437_v26, %v434_v25  ;;  %v441_v29 = vld [vmem:[#allocation6 + $0x128] sm:$0xff] }
 0x116   :  { %v198_v32 = vpop.f32.mrb[4].mxu0  ;;  %v295_v33 = vmul.f32 %v7312_v31, %v7312_v31  ;;  %v445_v25 = vld [vmem:[#allocation6 + $0x148] sm:$0xff] }
 0x117   :  { %v7316_v34 = vadd.f32 %v198_v32, %v103_v30  ;;  %v5678_v35 = vpop.f32.mrb[5].mxu0  ;;  %v444_v30 = vld [vmem:[#allocation6 + $0x140] sm:$0xff] }
 0x118   :  { %301 = vadd.xlane.f32.xlu0 %v295_v33  ;;  %v6241_v32 = vpack.c.bf16 %v444_v30, %v441_v29  ;;  %v440_v33 = vld [vmem:[#allocation6 + $0x120] sm:$0xff]  ;;  %v443_v35 = vld [vmem:[#allocation6 + $0x138] sm:$0xff] }
 0x119   :  { %v7322_v38 = vsel %vm286_vm4, %v7316_v34, %v5263_v19  ;;  %v451_v29 = vld [vmem:[#allocation6 + $0x178] sm:$0xff] }
 0x11a   :  { %v203_v39 = vpop.f32.mrb[6].mxu0  ;;  %v296_v40 = vmul.f32 %v7322_v38, %v7322_v38 }
 0x11b   :  { %v7326_v41 = vadd.f32 %v203_v39, %v104_v36  ;;  %v5681_v42 = vpop.f32.mrb[7].mxu0  ;;  %v6243_v36 = vpack.c.bf16 %v443_v35, %v440_v33  ;;  %v450_v39 = vld [vmem:[#allocation6 + $0x170] sm:$0xff]  ;;  %v617_v33 = vld [vmem:[%s8664_s15 + $0x20] sm:$0xff] }
 0x11c   :  { %303 = vadd.xlane.f32.xlu0 %v296_v40  ;;  %v6245_v40 = vpack.c.bf16 %v450_v39, %v447_v37  ;;  %v446_v42 = vld [vmem:[#allocation6 + $0x150] sm:$0xff]  ;;  %v666_v37 = vld [vmem:[%s8664_s15 + $0x1a8] sm:$0xff] }
 0x11d   :  { %v7332_v45 = vsel %vm287_vm5, %v7326_v41, %v5263_v19 }
 0x11e   :  { %v208_v46 = vpop.f32.mrb[8].mxu0  ;;  %v297_v47 = vmul.f32 %v7332_v45, %v7332_v45 }
 0x11f   :  { %v7336_v48 = vadd.f32 %v208_v46, %v105_v43  ;;  %v5684_v49 = vpop.f32.mrb[9].mxu0  ;;  %v449_v43 = vld [vmem:[#allocation6 + $0x168] sm:$0xff] }
 0x120   :  { %305 = vadd.xlane.f32.xlu1 %v297_v47  ;;  %v6247_v44 = vpack.c.bf16 %v449_v43, %v446_v42  ;;  %v616_v42 = vld [vmem:[%s8664_s15 + $0x18] sm:$0xff] }
 0x121   :  { %v7339_v50 = vsel %vm288_vm6, %v7336_v48, %v5263_v19  ;;  %v6235_v19 = vpack.c.bf16 %v431_v18, %v428_v17  ;;  %v433_v17 = vld [vmem:[#allocation6 + $0xe8] sm:$0xff]  ;;  %v620_v43 = vld [vmem:[%s8664_s15 + $0x38] sm:$0xff] }
 0x122   :  { %v298_v51 = vmul.f32 %v7339_v50, %v7339_v50  ;;  %v6262_v18 = vpack.c.bf16 %v433_v17, %v430_v16  ;;  %v638_v16 = vld [vmem:[%s8664_s15 + $0xc8] sm:$0xff] }
 0x123   :  { %6236 = vmatpush1.bf16.msra.mxu0 %v6235_v19  ;;  %v436_v19 = vld [vmem:[#allocation6 + $0x100] sm:$0xff] }
 0x124   :  { %307 = vadd.xlane.f32.xlu0 %v298_v51  ;;  %6238 = vmatprep.subr.bf16.mxu0 %v6237_v23  ;;  %v6265_v22 = vpack.c.bf16 %v439_v21, %v436_v19  ;;  %v442_v23 = vld [vmem:[#allocation6 + $0x130] sm:$0xff]  ;;  %v636_v19 = vld [vmem:[%s8664_s15 + $0xb8] sm:$0xff]  ;;  %v641_v21 = vld [vmem:[%s8664_s15 + $0xe0] sm:$0xff] }
 0x125   :  { %v6268_v26 = vpack.c.bf16 %v445_v25, %v442_v23  ;;  %v690_v23 = vld [vmem:[%s8664_s15 + $0x268] sm:$0xff] }
 0x127   :  { %6240 = vmatpush1.bf16.msra.mxu0 %v6239_v28  ;;  %v448_v28 = vld [vmem:[#allocation6 + $0x160] sm:$0xff] }
 0x128   :  { %6242 = vmatprep.subr.bf16.mxu0 %v6241_v32  ;;  %v6271_v30 = vpack.c.bf16 %v451_v29, %v448_v28  ;;  %v614_v32 = vld [vmem:[%s8664_s15 + $0x8] sm:$0xff]  ;;  %v640_v28 = vld [vmem:[%s8664_s15 + $0xd8] sm:$0xff] }
 0x129   :  { %v6273_v35 = vpack.c.bf16 %v617_v33, %v614_v32  ;;  %v644_v32 = vld [vmem:[%s8664_s15 + $0xf8] sm:$0xff] }
 0x12b   :  { %6244 = vmatpush1.bf16.msra.mxu0 %v6243_v36  ;;  %v663_v36 = vld [vmem:[%s8664_s15 + $0x190] sm:$0xff] }
 0x12c   :  { %6246 = vmatprep.subr.bf16.mxu0 %v6245_v40  ;;  %v6369_v39 = vpack.c.bf16 %v666_v37, %v663_v36  ;;  %v613_v40 = vld [vmem:[%s8664_s15] sm:$0xff]  ;;  %v642_v36 = vld [vmem:[%s8664_s15 + $0xe8] sm:$0xff]  ;;  %v647_v37 = vld [vmem:[%s8664_s15 + $0x110] sm:$0xff] }
 0x12f   :  { %6248 = vmatpush1.bf16.msra.mxu0 %v6247_v44  ;;  %v615_v44 = vld [vmem:[%s8664_s15 + $0x10] sm:$0xff] }
 0x130   :  { %6274 = vmatprep.subr.bf16.mxu0 %v6273_v35  ;;  %v639_v35 = vld [vmem:[%s8664_s15 + $0xd0] sm:$0xff] }
 0x1a1   :  { %v300_v46 = vpop.xlane.xlu1 %299 }
 0x1a2   :  { %v309_v47 = vadd.f32 1e-24, %v300_v46  ;;  %v618_v46 = vld [vmem:[%s8664_s15 + $0x28] sm:$0xff] }
 0x1a4   :  { %6719 = vrsqrt.f32 %v309_v47  ;;  %v623_v47 = vld [vmem:[%s8664_s15 + $0x50] sm:$0xff] }
 0x1a5   :  { %v302_v49 = vpop.xlane.xlu0 %301 }
 0x1a6   :  { %v310_v51 = vadd.f32 1e-24, %v302_v49  ;;  %v669_v49 = vld [vmem:[%s8664_s15 + $0x1c0] sm:$0xff] }
 0x1a8   :  { %6721 = vrsqrt.f32 %v310_v51  ;;  %v672_v51 = vld [vmem:[%s8664_s15 + $0x1d8] sm:$0xff] }
 0x1a9   :  { %v304_v52 = vpop.xlane.xlu0 %303 }
 0x1aa   :  { %v311_v53 = vadd.f32 1e-24, %v304_v52  ;;  %v6275_v52 = vpack.c.bf16 %v616_v42, %v613_v40  ;;  %v696_v40 = vld [vmem:[%s8664_s15 + $0x298] sm:$0xff] }
 0x1ac   :  { %6723 = vrsqrt.f32 %v311_v53  ;;  %v619_v53 = vld [vmem:[%s8664_s15 + $0x30] sm:$0xff] }
 0x1ad   :  { %v306_v54 = vpop.xlane.xlu1 %305 }
 0x1ae   :  { %v6720_v55 = vpop.eup %6719  ;;  %v312_v56 = vadd.f32 1e-24, %v306_v54  ;;  %v622_v54 = vld [vmem:[%s8664_s15 + $0x48] sm:$0xff] }
 0x1af   :  { %v319_v57 = vmul.f32 %v6720_v55, %v7302_v24  ;;  %v6371_v55 = vpack.c.bf16 %v618_v46, %v615_v44  ;;  %v646_v44 = vld [vmem:[%s8664_s15 + $0x108] sm:$0xff]  ;;  %v6387_v46 = vpack.c.bf16 %v642_v36, %v639_v35  ;;  %v689_v35 = vld [vmem:[%s8664_s15 + $0x260] sm:$0xff] }
 0x1b0   :  { %6725 = vrsqrt.f32 %v312_v56  ;;  %v6277_v56 = vpack.c.bf16 %v623_v47, %v620_v43  ;;  %v643_v43 = vld [vmem:[%s8664_s15 + $0xf0] sm:$0xff]  ;;  %v6293_v47 = vpack.c.bf16 %v647_v37, %v644_v32  ;;  %v682_v32 = vld [vmem:[%s8664_s15 + $0x228] sm:$0xff] }
 0x1b1   :  { %v308_v58 = vpop.xlane.xlu0 %307  ;;  %324 = vst [vmem:[%s8668_s19] sm:$0xff] %v319_v57 }
 0x1b2   :  { %v6722_v59 = vpop.eup %6721  ;;  %v313_v60 = vadd.f32 1e-24, %v308_v58  ;;  %v6373_v58 = vpack.c.bf16 %v672_v51, %v669_v49  ;;  %v650_v49 = vld [vmem:[%s8664_s15 + $0x128] sm:$0xff] }
 0x1b3   :  { %v320_v61 = vmul.f32 %v6722_v59, %v7312_v31  ;;  %v621_v59 = vld [vmem:[%s8664_s15 + $0x40] sm:$0xff] }
 0x1b4   :  { %6727 = vrsqrt.f32 %v313_v60  ;;  %v624_v60 = vld [vmem:[%s8664_s15 + $0x58] sm:$0xff] }
 0x1b5   :  { %325 = vst [vmem:[%s8668_s19 + $0x8] sm:$0xff] %v320_v61  ;;  %v6212_v62 = vpack.c.bf16 %v320_v61, %v319_v57  ;;  %v626_v57 = vld [vmem:[%s8664_s15 + $0x68] sm:$0xff]  ;;  %v6375_v5 = vpack.c.bf16 %v624_v60, %v621_v59 }
 0x1b6   :  { %v6724_v63 = vpop.eup %6723 }
 0x1b7   :  { %6213 = vmatpush3.bf16.msra.mxu1 %v6212_v62  ;;  %v321_v24 = vmul.f32 %v6724_v63, %v7322_v38  ;;  %v629_v62 = vld [vmem:[%s8664_s15 + $0x80] sm:$0xff]  ;;  %v675_v63 = vld [vmem:[%s8664_s15 + $0x1f0] sm:$0xff] }
 0x1b8   :  { %6214 = vmatprep.subr.bf16.mxu1 %v7089_v0  ;;  %v6281_v6 = vpack.c.bf16 %v629_v62, %v626_v57  ;;  %v6295_v57 = vpack.c.bf16 %v646_v44, %v643_v43  ;;  %v695_v43 = vld [vmem:[%s8664_s15 + $0x290] sm:$0xff] }
 0x1b9   :  { %326 = vst [vmem:[%s8668_s19 + $0x10] sm:$0xff] %v321_v24 }
 0x1ba   :  { %v6726_v2 = vpop.eup %6725 }
 0x1bb   :  { %v322_v3 = vmul.f32 %v6726_v2, %v7332_v45  ;;  %v329_v45 = vld [vmem:[%s8661_s12] sm:$0xff] }
 0x1bd   :  { %327 = vst [vmem:[%s8668_s19 + $0x18] sm:$0xff] %v322_v3  ;;  %v6215_v31 = vpack.c.bf16 %v322_v3, %v321_v24  ;;  %v678_v24 = vld [vmem:[%s8664_s15 + $0x208] sm:$0xff]  ;;  %v6279_v3 = vpack.c.bf16 %v622_v54, %v619_v53  ;;  %v648_v53 = vld [vmem:[%s8664_s15 + $0x118] sm:$0xff]  ;;  %v653_v54 = vld [vmem:[%s8664_s15 + $0x140] sm:$0xff] }
 0x1be   :  { %v6728_v4 = vpop.eup %6727  ;;  %v6297_v60 = vpack.c.bf16 %v653_v54, %v650_v49  ;;  %v694_v49 = vld [vmem:[%s8664_s15 + $0x288] sm:$0xff] }
 0x1bf   :  { %6216 = vmatpush3.bf16.msra.mxu1 %v6215_v31  ;;  %v323_v38 = vmul.f32 %v6728_v4, %v7339_v50  ;;  %v6253_v50 = vpack.c.bf16 %v415_v9, %v412_v8  ;;  %v625_v31 = vld [vmem:[%s8664_s15 + $0x60] sm:$0xff]  ;;  %v628_v4 = vld [vmem:[%s8664_s15 + $0x78] sm:$0xff]  ;;  %v630_v8 = vld [vmem:[%s8664_s15 + $0x88] sm:$0xff] }
 0x1c0   :  { %5693 = vmatprep.subr.mxu1 %v7091_v1  ;;  %v635_v9 = vld [vmem:[%s8664_s15 + $0xb0] sm:$0xff]  ;;  %v6283_v11 = vpack.c.bf16 %v628_v4, %v625_v31 }
 0x1c1   :  { %328 = vst [vmem:[%s8668_s19 + $0x20] sm:$0xff] %v323_v38  ;;  %s8690_s19 = sld [smem:[#allocation18_spill]] }
 0x1c3   :  { %5694 = vmatpush3.msra.mxu1 %v323_v38  ;;  %v632_v38 = vld [vmem:[%s8664_s15 + $0x98] sm:$0xff] }
 0x1c4   :  { %5696 = vmatmul.mubr.msk.f32.vlgmr.msra.gmra.mrb[0].mxu1 %vm330_vm7, %v329_v45  ;;  %6249 = vmatprep.subr.bf16.mxu1 %v7089_v0  ;;  %v6377_v45 = vpack.c.bf16 %v678_v24, %v675_v63  ;;  %v651_v63 = vld [vmem:[%s8664_s15 + $0x130] sm:$0xff]  ;;  %v654_v24 = vld [vmem:[%s8664_s15 + $0x148] sm:$0xff] }
 0x1c5   :  { %6251 = vmatpush3.bf16.msra.mxu1 %v6250_v7  ;;  %5730 = vmatprep.mubr.msk.f32.mxu1 %vm7090_vm0, %v7091_v1  ;;  %v627_v7 = vld [vmem:[%s8664_s15 + $0x70] sm:$0xff]  ;;  %v6395_v4 = vpack.c.bf16 %v654_v24, %v651_v63  ;;  %v706_v24 = vld [vmem:[%s8664_s15 + $0x2e8] sm:$0xff] }
 0x1c6   :  { %6252 = vmatprep.subr.bf16.mxu1 %v7089_v0  ;;  %v6379_v14 = vpack.c.bf16 %v630_v8, %v627_v7  ;;  %v665_v7 = vld [vmem:[%s8664_s15 + $0x1a0] sm:$0xff]  ;;  %v703_v63 = vld [vmem:[%s8664_s15 + $0x2d0] sm:$0xff] }
 0x1c9   :  { %6254 = vmatpush3.bf16.msra.mxu1 %v6253_v50  ;;  %v681_v50 = vld [vmem:[%s8664_s15 + $0x220] sm:$0xff] }
 0x1ca   :  { %6255 = vmatprep.subr.bf16.mxu1 %v7089_v0  ;;  %v6381_v17 = vpack.c.bf16 %v684_v10, %v681_v50  ;;  %v661_v50 = vld [vmem:[%s8664_s15 + $0x180] sm:$0xff]  ;;  %v664_v10 = vld [vmem:[%s8664_s15 + $0x198] sm:$0xff] }
 0x1cd   :  { %6257 = vmatpush3.bf16.msra.mxu1 %v6256_v12  ;;  %v631_v12 = vld [vmem:[%s8664_s15 + $0x90] sm:$0xff] }
 0x1ce   :  { %6258 = vmatprep.subr.bf16.mxu1 %v7089_v0  ;;  %v6287_v25 = vpack.c.bf16 %v634_v13, %v631_v12  ;;  %v671_v12 = vld [vmem:[%s8664_s15 + $0x1d0] sm:$0xff]  ;;  %v6307_v13 = vpack.c.bf16 %v664_v10, %v661_v50  ;;  %v7679_v50 = vld [vmem:[%s8663_s14] sm:$0x7] }
 0x1d1   :  { %6260 = vmatpush3.bf16.msra.mxu1 %v6259_v15  ;;  %v6285_v15 = vpack.c.bf16 %v635_v9, %v632_v38  ;;  %v658_v38 = vld [vmem:[%s8664_s15 + $0x168] sm:$0xff] }
 0x1d2   :  { %6261 = vmatprep.subr.bf16.mxu1 %v7089_v0 }
 0x1d5   :  { %6263 = vmatpush3.bf16.msra.mxu1 %v6262_v18  ;;  %v633_v18 = vld [vmem:[%s8664_s15 + $0xa0] sm:$0xff] }
 0x1d6   :  { %6264 = vmatprep.subr.bf16.mxu1 %v7089_v0  ;;  %v6383_v29 = vpack.c.bf16 %v636_v19, %v633_v18  ;;  %v677_v18 = vld [vmem:[%s8664_s15 + $0x200] sm:$0xff] }
 0x1d9   :  { %6266 = vmatpush3.bf16.msra.mxu1 %v6265_v22  ;;  %v687_v22 = vld [vmem:[%s8664_s15 + $0x250] sm:$0xff] }
 0x1da   :  { %6267 = vmatprep.subr.bf16.mxu1 %v7089_v0  ;;  %v6385_v33 = vpack.c.bf16 %v690_v23, %v687_v22  ;;  %v673_v22 = vld [vmem:[%s8664_s15 + $0x1e0] sm:$0xff]  ;;  %v676_v23 = vld [vmem:[%s8664_s15 + $0x1f8] sm:$0xff] }
 0x1dd   :  { %6269 = vmatpush3.bf16.msra.mxu1 %v6268_v26  ;;  %v637_v26 = vld [vmem:[%s8664_s15 + $0xc0] sm:$0xff] }
 0x1de   :  { %6270 = vmatprep.subr.bf16.mxu1 %v7089_v0  ;;  %v6291_v42 = vpack.c.bf16 %v640_v28, %v637_v26  ;;  %v683_v26 = vld [vmem:[%s8664_s15 + $0x230] sm:$0xff]  ;;  %v6315_v28 = vpack.c.bf16 %v676_v23, %v673_v22  ;;  %v714_v22 = vld [vmem:[%s8664_s15 + $0x328] sm:$0xff] }
 0x1e1   :  { %6272 = vmatpush3.bf16.msra.mxu1 %v6271_v30  ;;  %v6289_v30 = vpack.c.bf16 %v641_v21, %v638_v16  ;;  %v670_v16 = vld [vmem:[%s8664_s15 + $0x1c8] sm:$0xff] }
 0x1e2   :  { %6370 = vmatprep.subr.bf16.mxu1 %v6369_v39  ;;  %v693_v39 = vld [vmem:[%s8664_s15 + $0x280] sm:$0xff] }
 0x1e3   :  { %v6389_v51 = vpack.c.bf16 %v696_v40, %v693_v39  ;;  %v685_v39 = vld [vmem:[%s8664_s15 + $0x240] sm:$0xff]  ;;  %v688_v40 = vld [vmem:[%s8664_s15 + $0x258] sm:$0xff] }
 0x1e4   :  { %v6323_v44 = vpack.c.bf16 %v688_v40, %v685_v39  ;;  %v720_v39 = vld [vmem:[%s8664_s15 + $0x358] sm:$0xff]  ;;  %v722_v40 = vld [vmem:[%s8664_s15 + $0x368] sm:$0xff] }
 0x297   :  { %v400_v61 = vpop.f32.mrb[0].mxu1 }
 0x298   :  { %v5697_v2 = vpop.f32.mrb[1].mxu1  ;;  %534 = vmatmul.mubr.f32.vlgmr.msra.gmra.mrb[10].mxu0 %v400_v61  ;;  %5731 = vmatmul.mubr.f32.vlgmr.msra.gmra.mrb[2].mxu1 %v400_v61  ;;  %v652_v61 = vld [vmem:[%s8664_s15 + $0x138] sm:$0xff] }
 0x299   :  { %6276 = vmatpush1.bf16.msra.mxu0 %v6275_v52  ;;  %6372 = vmatpush3.bf16.msra.mxu1 %v6371_v55  ;;  %v645_v52 = vld [vmem:[%s8664_s15 + $0x100] sm:$0xff]  ;;  %v699_v55 = vld [vmem:[%s8664_s15 + $0x2b0] sm:$0xff]  ;;  %v656_v2 = vld [vmem:[%s8664_s15 + $0x158] sm:$0xff] }
 0x29a   :  { %6278 = vmatprep.subr.bf16.mxu0 %v6277_v56  ;;  %6374 = vmatprep.subr.bf16.mxu1 %v6373_v58  ;;  %v702_v56 = vld [vmem:[%s8664_s15 + $0x2c8] sm:$0xff]  ;;  %v649_v58 = vld [vmem:[%s8664_s15 + $0x120] sm:$0xff]  ;;  %v6391_v59 = vpack.c.bf16 %v648_v53, %v645_v52 }
 0x29b   :  { %v6393_v62 = vpack.c.bf16 %v702_v56, %v699_v55  ;;  %v6299_v31 = vpack.c.bf16 %v652_v61, %v649_v58  ;;  %v701_v52 = vld [vmem:[%s8664_s15 + $0x2c0] sm:$0xff]  ;;  %v700_v56 = vld [vmem:[%s8664_s15 + $0x2b8] sm:$0xff] }
 0x29c   :  { %v697_v55 = vld [vmem:[%s8664_s15 + $0x2a0] sm:$0xff]  ;;  %v704_v58 = vld [vmem:[%s8664_s15 + $0x2d8] sm:$0xff] }
 0x29d   :  { %6280 = vmatpush1.bf16.msra.mxu0 %v6279_v3  ;;  %6376 = vmatpush3.bf16.msra.mxu1 %v6375_v5  ;;  %v659_v3 = vld [vmem:[%s8664_s15 + $0x170] sm:$0xff] }
 0x29e   :  { %6282 = vmatprep.subr.bf16.mxu0 %v6281_v6  ;;  %6378 = vmatprep.subr.bf16.mxu1 %v6377_v45  ;;  %v6301_v5 = vpack.c.bf16 %v659_v3, %v656_v2  ;;  %v655_v6 = vld [vmem:[%s8664_s15 + $0x150] sm:$0xff]  ;;  %v662_v45 = vld [vmem:[%s8664_s15 + $0x188] sm:$0xff]  ;;  %v6335_v3 = vpack.c.bf16 %v706_v24, %v703_v63  ;;  %v737_v63 = vld [vmem:[%s8664_s15 + $0x3e0] sm:$0xff] }
 0x29f   :  { %v6303_v8 = vpack.c.bf16 %v658_v38, %v655_v6  ;;  %v6305_v9 = vpack.c.bf16 %v665_v7, %v662_v45  ;;  %v710_v6 = vld [vmem:[%s8664_s15 + $0x308] sm:$0xff]  ;;  %v713_v38 = vld [vmem:[%s8664_s15 + $0x320] sm:$0xff]  ;;  %v454_v7 = vlaneseq }
 0x2a0   :  { %v6337_v45 = vpack.c.bf16 %v713_v38, %v710_v6  ;;  %v738_v6 = vld [vmem:[%s8664_s15 + $0x3e8] sm:$0xff]  ;;  %v740_v38 = vld [vmem:[%s8664_s15 + $0x3f8] sm:$0xff] }
 0x2a1   :  { %6284 = vmatpush1.bf16.msra.mxu0 %v6283_v11  ;;  %6380 = vmatpush3.bf16.msra.mxu1 %v6379_v14  ;;  %v668_v11 = vld [vmem:[%s8664_s15 + $0x1b8] sm:$0xff] }
 0x2a2   :  { %6286 = vmatprep.subr.bf16.mxu0 %v6285_v15  ;;  %6382 = vmatprep.subr.bf16.mxu1 %v6381_v17  ;;  %v6309_v14 = vpack.c.bf16 %v671_v12, %v668_v11  ;;  %v667_v15 = vld [vmem:[%s8664_s15 + $0x1b0] sm:$0xff]  ;;  %v674_v17 = vld [vmem:[%s8664_s15 + $0x1e8] sm:$0xff] }
 0x2a3   :  { %v6311_v19 = vpack.c.bf16 %v670_v16, %v667_v15  ;;  %v6313_v21 = vpack.c.bf16 %v677_v18, %v674_v17  ;;  %v709_v15 = vld [vmem:[%s8664_s15 + $0x300] sm:$0xff] }
 0x2a5   :  { %6288 = vmatpush1.bf16.msra.mxu0 %v6287_v25  ;;  %6384 = vmatpush3.bf16.msra.mxu1 %v6383_v29  ;;  %v680_v25 = vld [vmem:[%s8664_s15 + $0x218] sm:$0xff] }
 0x2a6   :  { %6290 = vmatprep.subr.bf16.mxu0 %v6289_v30  ;;  %6386 = vmatprep.subr.bf16.mxu1 %v6385_v33  ;;  %v6317_v29 = vpack.c.bf16 %v683_v26, %v680_v25  ;;  %v679_v30 = vld [vmem:[%s8664_s15 + $0x210] sm:$0xff]  ;;  %v686_v33 = vld [vmem:[%s8664_s15 + $0x248] sm:$0xff]  ;;  %v716_v25 = vld [vmem:[%s8664_s15 + $0x338] sm:$0xff] }
 0x2a7   :  { %v6319_v36 = vpack.c.bf16 %v682_v32, %v679_v30  ;;  %v6321_v37 = vpack.c.bf16 %v689_v35, %v686_v33  ;;  %v719_v26 = vld [vmem:[%s8664_s15 + $0x350] sm:$0xff] }
 0x2a8   :  { %v715_v32 = vld [vmem:[%s8664_s15 + $0x330] sm:$0xff]  ;;  %v6341_v35 = vpack.c.bf16 %v719_v26, %v716_v25 }
 0x2a9   :  { %6292 = vmatpush1.bf16.msra.mxu0 %v6291_v42  ;;  %6388 = vmatpush3.bf16.msra.mxu1 %v6387_v46  ;;  %v692_v42 = vld [vmem:[%s8664_s15 + $0x278] sm:$0xff] }
 0x2aa   :  { %6294 = vmatprep.subr.bf16.mxu0 %v6293_v47  ;;  %6390 = vmatprep.subr.bf16.mxu1 %v6389_v51  ;;  %v6325_v46 = vpack.c.bf16 %v695_v43, %v692_v42  ;;  %v691_v47 = vld [vmem:[%s8664_s15 + $0x270] sm:$0xff]  ;;  %v698_v51 = vld [vmem:[%s8664_s15 + $0x2a8] sm:$0xff]  ;;  %v725_v42 = vld [vmem:[%s8664_s15 + $0x380] sm:$0xff] }
 0x2ab   :  { %v6327_v53 = vpack.c.bf16 %v694_v49, %v691_v47  ;;  %v6329_v54 = vpack.c.bf16 %v701_v52, %v698_v51  ;;  %v6345_v47 = vpack.c.bf16 %v725_v42, %v722_v40  ;;  %v724_v49 = vld [vmem:[%s8664_s15 + $0x378] sm:$0xff]  ;;  %v723_v51 = vld [vmem:[%s8664_s15 + $0x370] sm:$0xff]  ;;  %v726_v52 = vld [vmem:[%s8664_s15 + $0x388] sm:$0xff] }
 0x2ac   :  { %v754_v42 = vld [vmem:[%s8664_s15 + $0x468] sm:$0xff] }
 0x2ad   :  { %6296 = vmatpush1.bf16.msra.mxu0 %v6295_v57  ;;  %6392 = vmatpush3.bf16.msra.mxu1 %v6391_v59  ;;  %v6331_v57 = vpack.c.bf16 %v700_v56, %v697_v55  ;;  %v707_v59 = vld [vmem:[%s8664_s15 + $0x2f0] sm:$0xff]  ;;  %v6408_v56 = vpack.c.bf16 %v726_v52, %v723_v51  ;;  %v1075_v51 = vld [vmem:[#allocation8 + $0x80] sm:$0xff]  ;;  %v1076_v52 = vld [vmem:[#allocation8 + $0x88] sm:$0xff] }
 0x2ae   :  { %6298 = vmatprep.subr.bf16.mxu0 %v6297_v60  ;;  %6394 = vmatprep.subr.bf16.mxu1 %v6393_v62  ;;  %v705_v60 = vld [vmem:[%s8664_s15 + $0x2e0] sm:$0xff]  ;;  %v6333_v61 = vpack.c.bf16 %v707_v59, %v704_v58  ;;  %v708_v62 = vld [vmem:[%s8664_s15 + $0x2f8] sm:$0xff]  ;;  %v730_v59 = vld [vmem:[%s8664_s15 + $0x3a8] sm:$0xff] }
 0x2af   :  { %v6397_v2 = vpack.c.bf16 %v708_v62, %v705_v60  ;;  %v729_v60 = vld [vmem:[%s8664_s15 + $0x3a0] sm:$0xff]  ;;  %v734_v62 = vld [vmem:[%s8664_s15 + $0x3c8] sm:$0xff] }
 0x2b1   :  { %6300 = vmatpush1.bf16.msra.mxu0 %v6299_v31  ;;  %6396 = vmatpush3.bf16.msra.mxu1 %v6395_v4  ;;  %v657_v31 = vld [vmem:[%s8664_s15 + $0x160] sm:$0xff]  ;;  %v660_v4 = vld [vmem:[%s8664_s15 + $0x178] sm:$0xff] }
 0x2b2   :  { %6302 = vmatprep.subr.bf16.mxu0 %v6301_v5  ;;  %v6399_v5 = vpack.c.bf16 %v660_v4, %v657_v31  ;;  %6398 = vmatprep.subr.bf16.mxu1 %v6397_v2  ;;  %v6353_v31 = vpack.c.bf16 %v737_v63, %v734_v62  ;;  %v736_v4 = vld [vmem:[%s8664_s15 + $0x3d8] sm:$0xff] }
 0x2b3   :  { %v1094_v63 = vld [vmem:[#allocation8 + $0x118] sm:$0xff] }
 0x2b5   :  { %6304 = vmatpush1.bf16.msra.mxu0 %v6303_v8  ;;  %6400 = vmatpush3.bf16.msra.mxu1 %v6399_v5  ;;  %v7673_v8 = vshrl.u32 %v454_v7, 7  ;;  %v735_v5 = vld [vmem:[%s8664_s15 + $0x3d0] sm:$0xff] }
 0x2b6   :  { %6306 = vmatprep.subr.bf16.mxu0 %v6305_v9  ;;  %6401 = vmatprep.subr.bf16.mxu1 %v7089_v0 }
 0x2b7   :  { %v456_v9 = vsub.s32 0, %v7673_v8  ;;  %v460_v10 = vsub.s32 1, %v7673_v8  ;;  %v464_v25 = vsub.s32 2, %v7673_v8  ;;  %v1412_v8 = vld [vmem:[%s8657_s8] sm:$0xff] }
 0x2b9   :  { %6308 = vmatpush1.bf16.msra.mxu0 %v6307_v13  ;;  %v457_v11 = vrot.slane %v7679_v50, %v456_v9  ;;  %v461_v12 = vrot.slane %v7679_v50, %v460_v10 }
 0x2ba   :  { %6310 = vmatprep.subr.bf16.mxu0 %v6309_v14 }
 0x2bd   :  { %6312 = vmatpush1.bf16.msra.mxu0 %v6311_v19  ;;  %v712_v19 = vld [vmem:[%s8664_s15 + $0x318] sm:$0xff] }
 0x2be   :  { %6314 = vmatprep.subr.bf16.mxu0 %v6313_v21  ;;  %v711_v21 = vld [vmem:[%s8664_s15 + $0x310] sm:$0xff] }
 0x2bf   :  { %v6402_v30 = vpack.c.bf16 %v714_v22, %v711_v21 }
 0x2c1   :  { %6316 = vmatpush1.bf16.msra.mxu0 %v6315_v28 }
 0x2c2   :  { %6318 = vmatprep.subr.bf16.mxu0 %v6317_v29  ;;  %v6339_v29 = vpack.c.bf16 %v712_v19, %v709_v15  ;;  %v742_v15 = vld [vmem:[%s8664_s15 + $0x408] sm:$0xff]  ;;  %v749_v19 = vld [vmem:[%s8664_s15 + $0x440] sm:$0xff] }
 0x2c5   :  { %6320 = vmatpush1.bf16.msra.mxu0 %v6319_v36  ;;  %v718_v36 = vld [vmem:[%s8664_s15 + $0x348] sm:$0xff] }
 0x2c6   :  { %6322 = vmatprep.subr.bf16.mxu0 %v6321_v37  ;;  %v717_v37 = vld [vmem:[%s8664_s15 + $0x340] sm:$0xff]  ;;  %v6343_v43 = vpack.c.bf16 %v718_v36, %v715_v32  ;;  %v752_v32 = vld [vmem:[%s8664_s15 + $0x458] sm:$0xff] }
 0x2c9   :  { %6324 = vmatpush1.bf16.msra.mxu0 %v6323_v44  ;;  %v6405_v44 = vpack.c.bf16 %v720_v39, %v717_v37  ;;  %v751_v37 = vld [vmem:[%s8664_s15 + $0x450] sm:$0xff]  ;;  %v465_v39 = vrot.slane %v7679_v50, %v464_v25 }
 0x2ca   :  { %6326 = vmatprep.subr.bf16.mxu0 %v6325_v46  ;;  %v721_v46 = vld [vmem:[%s8664_s15 + $0x360] sm:$0xff] }
 0x2cb   :  { %v6347_v55 = vpack.c.bf16 %v724_v49, %v721_v46  ;;  %v6367_v46 = vpack.c.bf16 %v754_v42, %v751_v37  ;;  %v1085_v37 = vld [vmem:[#allocation8 + $0xd0] sm:$0xff] }
 0x2cd   :  { %6328 = vmatpush1.bf16.msra.mxu0 %v6327_v53  ;;  %v728_v53 = vld [vmem:[%s8664_s15 + $0x398] sm:$0xff] }
 0x2ce   :  { %6330 = vmatprep.subr.bf16.mxu0 %v6329_v54  ;;  %v731_v54 = vld [vmem:[%s8664_s15 + $0x3b0] sm:$0xff] }
 0x2cf   :  { %v6349_v58 = vpack.c.bf16 %v731_v54, %v728_v53  ;;  %v1091_v53 = vld [vmem:[#allocation8 + $0x100] sm:$0xff]  ;;  %v6425_v54 = vpack.c.bf16 %v1076_v52, %v1075_v51  ;;  %v1088_v51 = vld [vmem:[#allocation8 + $0xe8] sm:$0xff] }
 0x2d1   :  { %6332 = vmatpush1.bf16.msra.mxu0 %v6331_v57  ;;  %v727_v57 = vld [vmem:[%s8664_s15 + $0x390] sm:$0xff] }
 0x2d2   :  { %6334 = vmatprep.subr.bf16.mxu0 %v6333_v61  ;;  %v732_v61 = vld [vmem:[%s8664_s15 + $0x3b8] sm:$0xff]  ;;  %v6351_v24 = vpack.c.bf16 %v730_v59, %v727_v57  ;;  %v1077_v59 = vld [vmem:[#allocation8 + $0x90] sm:$0xff] }
 0x2d3   :  { %v6411_v2 = vpack.c.bf16 %v732_v61, %v729_v60  ;;  %v1078_v60 = vld [vmem:[#allocation8 + $0x98] sm:$0xff]  ;;  %v1093_v61 = vld [vmem:[#allocation8 + $0x110] sm:$0xff] }
 0x2d4   :  { %v6429_v62 = vpack.c.bf16 %v1078_v60, %v1077_v59  ;;  %v1105_v60 = vld [vmem:[#allocation8 + $0x170] sm:$0xff] }
 0x2d5   :  { %6336 = vmatpush1.bf16.msra.mxu0 %v6335_v3  ;;  %v733_v3 = vld [vmem:[%s8664_s15 + $0x3c0] sm:$0xff] }
 0x2d6   :  { %6338 = vmatprep.subr.bf16.mxu0 %v6337_v45  ;;  %v743_v45 = vld [vmem:[%s8664_s15 + $0x410] sm:$0xff]  ;;  %v6355_v7 = vpack.c.bf16 %v736_v4, %v733_v3  ;;  %v6461_v3 = vpack.c.bf16 %v1094_v63, %v1093_v61  ;;  %v1079_v4 = vld [vmem:[#allocation8 + $0xa0] sm:$0xff]  ;;  %v1106_v61 = vld [vmem:[#allocation8 + $0x178] sm:$0xff] }
 0x2d7   :  { %v1090_v63 = vld [vmem:[#allocation8 + $0xf8] sm:$0xff] }
 0x36b   :  { %v535_v13 = vpop.f32.mrb[10].mxu0  ;;  %v7688_v14 = vpop.f32.mrb[2].mxu1 }
 0x36c   :  { %v536_v16 = vadd.f32 %v535_v13, %v457_v11  ;;  %v537_v17 = vpop.f32.mrb[11].mxu0  ;;  %v5732_v18 = vpop.f32.mrb[3].mxu1  ;;  %v6414_v11 = vpack.c.bf16 %v738_v6, %v735_v5  ;;  %v6357_v13 = vpack.c.bf16 %v743_v45, %v740_v38  ;;  %v1080_v5 = vld [vmem:[#allocation8 + $0xa8] sm:$0xff]  ;;  %v1095_v6 = vld [vmem:[#allocation8 + $0x120] sm:$0xff] }
 0x36d   :  { %v538_v23 = vadd.f32 %v537_v17, %v461_v12  ;;  %v739_v12 = vld [vmem:[%s8664_s15 + $0x3f0] sm:$0xff]  ;;  %v744_v17 = vld [vmem:[%s8664_s15 + $0x418] sm:$0xff]  ;;  %v746_v18 = vld [vmem:[%s8664_s15 + $0x428] sm:$0xff]  ;;  %v6433_v38 = vpack.c.bf16 %v1080_v5, %v1079_v4 }
 0x36e   :  { %v610_v33 = vmax.f32 %v536_v16, 0.0  ;;  %v741_v16 = vld [vmem:[%s8664_s15 + $0x400] sm:$0xff]  ;;  %v6359_v21 = vpack.c.bf16 %v742_v15, %v739_v12  ;;  %v6361_v26 = vpack.c.bf16 %v749_v19, %v746_v18  ;;  %v1096_v45 = vld [vmem:[#allocation8 + $0x128] sm:$0xff]  ;;  %v1081_v12 = vld [vmem:[#allocation8 + $0xb0] sm:$0xff] }
 0x36f   :  { %v611_v28 = vmax.f32 %v538_v23, 0.0  ;;  %v6417_v22 = vpack.c.bf16 %v744_v17, %v741_v16  ;;  %v745_v23 = vld [vmem:[%s8664_s15 + $0x420] sm:$0xff]  ;;  %v6464_v15 = vpack.c.bf16 %v1096_v45, %v1095_v6  ;;  %v1097_v17 = vld [vmem:[#allocation8 + $0x130] sm:$0xff]  ;;  %v1098_v19 = vld [vmem:[#allocation8 + $0x138] sm:$0xff] }
 0x370   :  { %v1267_v5 = vld [vmem:[%s8690_s19 + $0x8] sm:$0xff]  ;;  %v1269_v6 = vld [vmem:[%s8690_s19 + $0x18] sm:$0xff] }
 0x371   :  { %838 = vmatprep.mubr.f32.mxu0 %v611_v28  ;;  %980 = vmatprep.mubr.f32.mxu1 %v611_v28  ;;  %v748_v28 = vld [vmem:[%s8664_s15 + $0x438] sm:$0xff] }
 0x372   :  { %839 = vmatmul.mubr.f32.vlgmr.msra.gmra.mrb[12].mxu0 %v610_v33  ;;  %981 = vmatmul.mubr.f32.vlgmr.msra.gmra.mrb[4].mxu1 %v610_v33  ;;  %v755_v33 = vld [vmem:[%s8664_s15 + $0x470] sm:$0xff] }
 0x373   :  { %6340 = vmatpush1.bf16.msra.mxu0 %v6339_v29  ;;  %6403 = vmatpush3.bf16.msra.mxu1 %v6402_v30  ;;  %v747_v29 = vld [vmem:[%s8664_s15 + $0x430] sm:$0xff]  ;;  %v750_v30 = vld [vmem:[%s8664_s15 + $0x448] sm:$0xff]  ;;  %v6365_v40 = vpack.c.bf16 %v755_v33, %v752_v32 }
 0x374   :  { %6342 = vmatprep.subr.bf16.mxu0 %v6341_v35  ;;  %6404 = vmatprep.subr.bf16.mxu1 %v7089_v0  ;;  %v6363_v35 = vpack.c.bf16 %v748_v28, %v745_v23  ;;  %v6420_v36 = vpack.c.bf16 %v750_v30, %v747_v29  ;;  %v1083_v23 = vld [vmem:[#allocation8 + $0xc0] sm:$0xff]  ;;  %v6467_v28 = vpack.c.bf16 %v1098_v19, %v1097_v17  ;;  %v1100_v33 = vld [vmem:[#allocation8 + $0x148] sm:$0xff] }
 0x375   :  { %909 = vmatprep.mubr.f32.mxu0 %v7091_v1  ;;  %5765 = vmatprep.mubr.msk.f32.mxu1 %vm7090_vm0, %v7091_v1  ;;  %v1099_v30 = vld [vmem:[#allocation8 + $0x140] sm:$0xff] }
 0x377   :  { %6344 = vmatpush1.bf16.msra.mxu0 %v6343_v43  ;;  %6406 = vmatpush3.bf16.msra.mxu1 %v6405_v44  ;;  %v753_v43 = vld [vmem:[%s8664_s15 + $0x460] sm:$0xff]  ;;  %v756_v44 = vld [vmem:[%s8664_s15 + $0x478] sm:$0xff] }
 0x378   :  { %6346 = vmatprep.subr.bf16.mxu0 %v6345_v47  ;;  %6407 = vmatprep.subr.bf16.mxu1 %v7089_v0  ;;  %v6423_v50 = vpack.c.bf16 %v756_v44, %v753_v43  ;;  %v607_v47 = vadd.f32 %v7688_v14, %v465_v39  ;;  %v1060_v14 = vld [vmem:[#allocation8 + $0x8] sm:$0xff]  ;;  %v1086_v39 = vld [vmem:[#allocation8 + $0xd8] sm:$0xff]  ;;  %v1101_v43 = vld [vmem:[#allocation8 + $0x150] sm:$0xff] }
 0x379   :  { %v6445_v44 = vpack.c.bf16 %v1086_v39, %v1085_v37  ;;  %v1415_v37 = vld [vmem:[%s8657_s8 + $0x18] sm:$0xff]  ;;  %v1261_v39 = vld [vmem:[%s8691_s26] sm:$0xff] }
 0x37a   :  { %v612_v49 = vmax.f32 %v607_v47, 0.0  ;;  %v1070_v47 = vld [vmem:[#allocation8 + $0x58] sm:$0xff] }
 0x37b   :  { %6348 = vmatpush1.bf16.msra.mxu0 %v6347_v55  ;;  %6409 = vmatpush3.bf16.msra.mxu1 %v6408_v56  ;;  %v1092_v55 = vld [vmem:[#allocation8 + $0x108] sm:$0xff]  ;;  %v1059_v56 = vld [vmem:[#allocation8] sm:$0xff] }
 0x37c   :  { %6350 = vmatprep.subr.bf16.mxu0 %v6349_v58  ;;  %6410 = vmatprep.subr.bf16.mxu1 %v7089_v0  ;;  %v6458_v57 = vpack.c.bf16 %v1092_v55, %v1091_v53  ;;  %v6427_v58 = vpack.c.bf16 %v1060_v14, %v1059_v56  ;;  %v1104_v56 = vld [vmem:[#allocation8 + $0x168] sm:$0xff]  ;;  %v1071_v14 = vld [vmem:[#allocation8 + $0x60] sm:$0xff] }
 0x37f   :  { %6352 = vmatpush1.bf16.msra.mxu0 %v6351_v24  ;;  %6412 = vmatpush3.bf16.msra.mxu1 %v6411_v2  ;;  %v1061_v24 = vld [vmem:[#allocation8 + $0x10] sm:$0xff]  ;;  %v1062_v2 = vld [vmem:[#allocation8 + $0x18] sm:$0xff] }
 0x380   :  { %6354 = vmatprep.subr.bf16.mxu0 %v6353_v31  ;;  %6413 = vmatprep.subr.bf16.mxu1 %v7089_v0  ;;  %v6431_v31 = vpack.c.bf16 %v1062_v2, %v1061_v24  ;;  %v6479_v24 = vpack.c.bf16 %v1106_v61, %v1105_v60  ;;  %v1271_v60 = vld [vmem:[%s8656_s7 + $0x8] sm:$0xff] }
 0x383   :  { %6356 = vmatpush1.bf16.msra.mxu0 %v6355_v7  ;;  %6415 = vmatpush3.bf16.msra.mxu1 %v6414_v11  ;;  %v1063_v7 = vld [vmem:[#allocation8 + $0x20] sm:$0xff]  ;;  %v1064_v11 = vld [vmem:[#allocation8 + $0x28] sm:$0xff] }
 0x384   :  { %6358 = vmatprep.subr.bf16.mxu0 %v6357_v13  ;;  %6416 = vmatprep.subr.bf16.mxu1 %v7089_v0  ;;  %v1082_v13 = vld [vmem:[#allocation8 + $0xb8] sm:$0xff]  ;;  %v6435_v16 = vpack.c.bf16 %v1064_v11, %v1063_v7 }
 0x385   :  { %v6437_v18 = vpack.c.bf16 %v1082_v13, %v1081_v12  ;;  %v757_v12 = vld [vmem:[%s8665_s16] sm:$0x7] }
 0x386   :  { %v770_v13 = vrot.slane %v757_v12, %v464_v25  ;;  %v1268_v25 = vld [vmem:[%s8690_s19 + $0x10] sm:$0xff] }
 0x387   :  { %6360 = vmatpush1.bf16.msra.mxu0 %v6359_v21  ;;  %6418 = vmatpush3.bf16.msra.mxu1 %v6417_v22  ;;  %v1065_v21 = vld [vmem:[#allocation8 + $0x30] sm:$0xff]  ;;  %v1066_v22 = vld [vmem:[#allocation8 + $0x38] sm:$0xff] }
 0x388   :  { %6362 = vmatprep.subr.bf16.mxu0 %v6361_v26  ;;  %6419 = vmatprep.subr.bf16.mxu1 %v7089_v0  ;;  %v1084_v26 = vld [vmem:[#allocation8 + $0xc8] sm:$0xff]  ;;  %v6439_v29 = vpack.c.bf16 %v1066_v22, %v1065_v21  ;;  %v1266_v21 = vld [vmem:[%s8690_s19] sm:$0xff] }
 0x389   :  { %v6441_v32 = vpack.c.bf16 %v1084_v26, %v1083_v23 }
 0x38b   :  { %6364 = vmatpush1.bf16.msra.mxu0 %v6363_v35  ;;  %6421 = vmatpush3.bf16.msra.mxu1 %v6420_v36  ;;  %v1067_v35 = vld [vmem:[#allocation8 + $0x40] sm:$0xff]  ;;  %v1068_v36 = vld [vmem:[#allocation8 + $0x48] sm:$0xff] }
 0x38c   :  { %6366 = vmatprep.subr.bf16.mxu0 %v6365_v40  ;;  %6422 = vmatprep.subr.bf16.mxu1 %v7089_v0  ;;  %v6470_v40 = vpack.c.bf16 %v1100_v33, %v1099_v30  ;;  %v6443_v42 = vpack.c.bf16 %v1068_v36, %v1067_v35  ;;  %v1414_v36 = vld [vmem:[%s8657_s8 + $0x10] sm:$0xff] }
 0x38f   :  { %6368 = vmatpush1.bf16.msra.mxu0 %v6367_v46  ;;  %6424 = vmatpush3.bf16.msra.mxu1 %v6423_v50  ;;  %v1102_v46 = vld [vmem:[#allocation8 + $0x158] sm:$0xff]  ;;  %v1069_v50 = vld [vmem:[#allocation8 + $0x50] sm:$0xff] }
 0x390   :  { %6457 = vmatprep.subr.bf16.mxu0 %v7089_v0  ;;  %6426 = vmatprep.subr.bf16.mxu1 %v6425_v54  ;;  %v6473_v52 = vpack.c.bf16 %v1102_v46, %v1101_v43  ;;  %v6447_v53 = vpack.c.bf16 %v1070_v47, %v1069_v50  ;;  %v1103_v54 = vld [vmem:[#allocation8 + $0x160] sm:$0xff]  ;;  %v1263_v43 = vld [vmem:[%s8691_s26 + $0x10] sm:$0xff]  ;;  %v1492_v47 = vld [vmem:[%s8658_s9 + $0x8] sm:$0xff] }
 0x391   :  { %v1265_v46 = vld [vmem:[%s8691_s26 + $0x20] sm:$0xff] }
 0x392   :  { %910 = vmatmul.mubr.f32.vlgmr.msra.gmra.mrb[12].mxu0 %v612_v49  ;;  %5766 = vmatmul.mubr.f32.vlgmr.msra.gmra.mrb[6].mxu1 %v612_v49  ;;  %v1087_v49 = vld [vmem:[#allocation8 + $0xe0] sm:$0xff] }
 0x393   :  { %5800 = vmatprep.mubr.msk.f32.mxu0 %vm7090_vm0, %v7091_v1  ;;  %6459 = vmatpush3.bf16.msra.mxu0 %v6458_v57  ;;  %v6449_v55 = vpack.c.bf16 %v1088_v51, %v1087_v49  ;;  %v1072_v57 = vld [vmem:[#allocation8 + $0x68] sm:$0xff]  ;;  %v1491_v50 = vld [vmem:[%s8658_s9] sm:$0xff]  ;;  %v1493_v51 = vld [vmem:[%s8658_s9 + $0x10] sm:$0xff] }
 0x394   :  { %6428 = vmatpush3.bf16.msra.mxu1 %v6427_v58  ;;  %6460 = vmatprep.subr.bf16.mxu0 %v7089_v0  ;;  %v6476_v58 = vpack.c.bf16 %v1104_v56, %v1103_v54  ;;  %v6451_v59 = vpack.c.bf16 %v1072_v57, %v1071_v14  ;;  %v7935_v49 = vpack.c.bf16 %v1492_v47, %v1491_v50  ;;  %v5265_v14 = vld [vmem:[%s8667_s18] ss:$0 sm:$0xff] }
 0x395   :  { %6430 = vmatprep.subr.bf16.mxu1 %v6429_v62  ;;  %v1089_v62 = vld [vmem:[#allocation8 + $0xf0] sm:$0xff] }
 0x396   :  { %v6453_v2 = vpack.c.bf16 %v1090_v63, %v1089_v62 }
 0x397   :  { %6462 = vmatpush3.bf16.msra.mxu0 %v6461_v3  ;;  %v1073_v3 = vld [vmem:[#allocation8 + $0x70] sm:$0xff] }
 0x398   :  { %6432 = vmatpush3.bf16.msra.mxu1 %v6431_v31  ;;  %6463 = vmatprep.subr.bf16.mxu0 %v7089_v0  ;;  %v1074_v31 = vld [vmem:[#allocation8 + $0x78] sm:$0xff] }
 0x399   :  { %6434 = vmatprep.subr.bf16.mxu1 %v6433_v38  ;;  %v6455_v4 = vpack.c.bf16 %v1074_v31, %v1073_v3  ;;  %v6481_v38 = vpack.c.bf16 %v1269_v6, %v1267_v5  ;;  %v1272_v31 = vld [vmem:[%s8656_s7 + $0x10] sm:$0xff] }
 0x39b   :  { %6465 = vmatpush3.bf16.msra.mxu0 %v6464_v15  ;;  %v762_v15 = vrot.slane %v757_v12, %v456_v9  ;;  %v1413_v9 = vld [vmem:[%s8657_s8 + $0x8] sm:$0xff] }
 0x39c   :  { %6436 = vmatpush3.bf16.msra.mxu1 %v6435_v16  ;;  %6466 = vmatprep.subr.bf16.mxu0 %v7089_v0  ;;  %v766_v16 = vrot.slane %v757_v12, %v460_v10  ;;  %v7881_v33 = vpack.c.bf16 %v1413_v9, %v1412_v8  ;;  %v1275_v12 = vld [vmem:[%s8656_s7 + $0x28] sm:$0xff] }
 0x39d   :  { %6438 = vmatprep.subr.bf16.mxu1 %v6437_v18 }
 0x39f   :  { %6468 = vmatpush3.bf16.msra.mxu0 %v6467_v28 }
 0x3a0   :  { %6440 = vmatpush3.bf16.msra.mxu1 %v6439_v29  ;;  %6469 = vmatprep.subr.bf16.mxu0 %v7089_v0 }
 0x3a1   :  { %6442 = vmatprep.subr.bf16.mxu1 %v6441_v32  ;;  %v6483_v32 = vpack.c.bf16 %v1268_v25, %v1266_v21  ;;  %v1279_v25 = vld [vmem:[%s8656_s7 + $0x48] sm:$0xff] }
 0x3a3   :  { %6471 = vmatpush3.bf16.msra.mxu0 %v6470_v40  ;;  %v7895_v40 = vpack.c.bf16 %v1415_v37, %v1414_v36 }
 0x3a4   :  { %6444 = vmatpush3.bf16.msra.mxu1 %v6443_v42  ;;  %6472 = vmatprep.subr.bf16.mxu0 %v7089_v0  ;;  %v1262_v42 = vld [vmem:[%s8691_s26 + $0x8] sm:$0xff] }
 0x3a5   :  { %6446 = vmatprep.subr.bf16.mxu1 %v6445_v44  ;;  %v1264_v44 = vld [vmem:[%s8691_s26 + $0x18] sm:$0xff] }
 0x3a7   :  { %6474 = vmatpush3.bf16.msra.mxu0 %v6473_v52  ;;  %v1494_v52 = vld [vmem:[%s8658_s9 + $0x18] sm:$0xff] }
 0x3a8   :  { %6448 = vmatpush3.bf16.msra.mxu1 %v6447_v53  ;;  %6475 = vmatprep.subr.bf16.mxu0 %v7089_v0  ;;  %v7945_v53 = vpack.c.bf16 %v1494_v52, %v1493_v51 }
 0x3a9   :  { %6450 = vmatprep.subr.bf16.mxu1 %v6449_v55 }
 0x3ab   :  { %6477 = vmatpush3.bf16.msra.mxu0 %v6476_v58 }
 0x3ac   :  { %6452 = vmatpush3.bf16.msra.mxu1 %v6451_v59  ;;  %6478 = vmatprep.subr.bf16.mxu0 %v7089_v0  ;;  %v1270_v59 = vld [vmem:[%s8656_s7] sm:$0xff] }
 0x3ad   :  { %6454 = vmatprep.subr.bf16.mxu1 %v6453_v2 }
 0x3af   :  { %6480 = vmatpush3.bf16.msra.mxu0 %v6479_v24 }
 0x3b0   :  { %6521 = vmatprep.subr.bf16.mxu0 %v7089_v0  ;;  %6456 = vmatpush3.bf16.msra.mxu1 %v6455_v4  ;;  %v1273_v4 = vld [vmem:[%s8656_s7 + $0x18] sm:$0xff] }
 0x3b1   :  { %6482 = vmatprep.subr.bf16.mxu1 %v6481_v38 }
 0x445   :  { %v5411_v45 = vpop.f32.mrb[4].mxu1 }
 0x446   :  { %v5412_v7 = vpop.f32.mrb[5].mxu1 }
 0x447   :  { %v5413_v11 = vadd.f32 %v5412_v7, %v5411_v45 }
 0x449   :  { %v983_v17 = vadd.f32 %v5413_v11, %v770_v13  ;;  %v1274_v11 = vld [vmem:[%s8656_s7 + $0x20] sm:$0xff] }
 0x465   :  { %v911_v18 = vpop.f32.mrb[12].mxu0  ;;  %v1052_v19 = vpop.f32.mrb[6].mxu1 }
 0x466   :  { %v6701_v22 = vadd.f32 %v911_v18, %v762_v15  ;;  %v1053_v23 = vadd.f32 %v1052_v19, %v983_v17  ;;  %v913_v26 = vpop.f32.mrb[13].mxu0  ;;  %v5767_v28 = vpop.f32.mrb[7].mxu1  ;;  %v1276_v18 = vld [vmem:[%s8656_s7 + $0x30] sm:$0xff]  ;;  %v1277_v19 = vld [vmem:[%s8656_s7 + $0x38] sm:$0xff] }
 0x467   :  { %v6702_v10 = vadd.f32 %v913_v26, %v766_v16  ;;  %v1278_v28 = vld [vmem:[%s8656_s7 + $0x40] sm:$0xff] }
 0x468   :  { %v1058_v29 = vmax.f32 %v1053_v23, 0.0  ;;  %v1056_v35 = vmax.f32 %v6701_v22, 0.0 }
 0x469   :  { %v1057_v30 = vmax.f32 %v6702_v10, 0.0 }
 0x46a   :  { %5801 = vmatmul.mubr.f32.vlgmr.msra.gmra.mrb[14].mxu0 %v1058_v29 }
 0x46b   :  { %1178 = vmatprep.mubr.f32.mxu1 %v1057_v30  ;;  %6523 = vmatpush3.bf16.msra.mxu0 %v7881_v33 }
 0x46c   :  { %1179 = vmatmul.mubr.f32.vlgmr.msra.gmra.mrb[8].mxu1 %v1056_v35  ;;  %6524 = vmatprep.subr.bf16.mxu0 %v7089_v0 }
 0x46d   :  { %6484 = vmatpush1.bf16.msra.mxu1 %v6483_v32  ;;  %1359 = vmatprep.mubr.f32.mxu1 %v7091_v1 }
 0x46e   :  { %6485 = vmatprep.subr.bf16.mxu1 %v7089_v0  ;;  %5877 = vmatprep.mubr.msk.f32.mxu0 %vm7090_vm0, %v7091_v1 }
 0x46f   :  { %6526 = vmatpush3.bf16.msra.mxu0 %v7895_v40 }
 0x470   :  { %5267 = vmatmul.mubr.msk.f32.vlgmr.msra.gmra.mrb[10].mxu1 %vm106_vm1, %v1261_v39  ;;  %6533 = vmatprep.subr.bf16.mxu0 %v7089_v0 }
 0x471   :  { %6487 = vmatpush3.bf16.msra.mxu1 %v7881_v33  ;;  %1365 = vmatprep.mubr.f32.mxu1 %v7091_v1 }
 0x472   :  { %6488 = vmatprep.subr.bf16.mxu1 %v7089_v0 }
 0x474   :  { %5268 = vmatmul.mubr.msk.f32.gmra.mrb[12].mxu1 %vm106_vm1, %v1262_v42 }
 0x475   :  { %1371 = vmatprep.mubr.f32.mxu1 %v7091_v1  ;;  %6490 = vmatpush3.bf16.msra.mxu1 %v7895_v40 }
 0x476   :  { %6491 = vmatprep.subr.bf16.mxu1 %v7089_v0 }
 0x478   :  { %5269 = vmatmul.mubr.msk.f32.gmra.mrb[14].mxu1 %vm106_vm1, %v1263_v43 }
 0x479   :  { %1377 = vmatprep.mubr.f32.mxu1 %v7091_v1 }
 0x47c   :  { %5270 = vmatmul.mubr.msk.f32.gmra.mrb[16].mxu1 %vm106_vm1, %v1264_v44 }
 0x47d   :  { %1383 = vmatprep.mubr.f32.mxu1 %v7091_v1 }
 0x480   :  { %5271 = vmatmul.mubr.msk.f32.gmra.mrb[18].mxu1 %vm106_vm1, %v1265_v46 }
 0x481   :  { %5811 = vmatprep.mubr.msk.f32.mxu1 %vm7090_vm0, %v7091_v1 }
 0x484   :  { %5812 = vmatmul.mubr.f32.vlgmr.msra.gmra.mrb[20].mxu1 %v7091_v1 }
 0x485   :  { %6493 = vmatpush3.bf16.msra.mxu1 %v7935_v49  ;;  %5822 = vmatprep.mubr.msk.f32.mxu1 %vm7090_vm0, %v7091_v1 }
 0x486   :  { %6494 = vmatprep.subr.bf16.mxu1 %v7089_v0 }
 0x489   :  { %6496 = vmatpush3.bf16.msra.mxu1 %v7945_v53 }
 0x48a   :  { %6497 = vmatprep.subr.bf16.mxu1 %v7089_v0 }
 0x48c   :  { %5823 = vmatmul.mubr.f32.vlgmr.msra.gmra.mrb[22].mxu1 %v7091_v1 }
 0x48d   :  { %6499 = vmatpush3.bf16.msra.mxu1 %v7881_v33  ;;  %5833 = vmatprep.mubr.msk.f32.mxu1 %vm7090_vm0, %v7091_v1 }
 0x48e   :  { %6500 = vmatprep.subr.bf16.mxu1 %v7089_v0 }
 0x491   :  { %6502 = vmatpush3.bf16.msra.mxu1 %v7895_v40 }
 0x492   :  { %6503 = vmatprep.subr.bf16.mxu1 %v7089_v0 }
 0x53d   :  { %v1250_v54 = vpop.f32.mrb[14].mxu0 }
 0x53e   :  { %v5802_v55 = vpop.f32.mrb[15].mxu0 }
 0x53f   :  { %v5463_v56 = vpop.f32.mrb[8].mxu1 }
 0x540   :  { %v5464_v57 = vpop.f32.mrb[9].mxu1 }
 0x541   :  { %v5465_v58 = vadd.f32 %v5464_v57, %v5463_v56 }
 0x543   :  { %v1181_v61 = vadd.f32 %v5465_v58, %v5265_v14  ;;  %v1361_v62 = vpop.f32.mrb[10].mxu1 }
 0x544   :  { %v1362_v63 = vadd.f32 %v1361_v62, %v1270_v59  ;;  %v1363_v24 = vpop.f32.mrb[11].mxu1 }
 0x545   :  { %v1251_v2 = vadd.f32 %v1250_v54, %v1181_v61  ;;  %v1364_v3 = vadd.f32 %v1363_v24, %v1271_v60 }
 0x546   :  { %1390 = vst [vmem:[#allocation2] sm:$0xff] %v1362_v63 }
 0x547   :  { %v5266_v5 = vmul.f32 -1.442695, %v1251_v2  ;;  %1395 = vst [vmem:[#allocation3] sm:$0xff] %v1364_v3  ;;  %v1367_v6 = vpop.f32.mrb[12].mxu1 }
 0x548   :  { %v1368_v38 = vadd.f32 %v1367_v6, %v1272_v31  ;;  %v1369_v45 = vpop.f32.mrb[13].mxu1 }
 0x549   :  { %6729 = vpow2.f32 %v5266_v5  ;;  %v1370_v7 = vadd.f32 %v1369_v45, %v1273_v4 }
 0x54a   :  { %1391 = vst [vmem:[#allocation2 + $0x8] sm:$0xff] %v1368_v38 }
 0x54b   :  { %1396 = vst [vmem:[#allocation3 + $0x8] sm:$0xff] %v1370_v7  ;;  %v1373_v13 = vpop.f32.mrb[14].mxu1 }
 0x54c   :  { %v1374_v15 = vadd.f32 %v1373_v13, %v1274_v11  ;;  %v1375_v16 = vpop.f32.mrb[15].mxu1 }
 0x54d   :  { %v1376_v17 = vadd.f32 %v1375_v16, %v1275_v12  ;;  %v1411_v35 = vld [vmem:[#allocation2] sm:$0x3]  ;;  %v1625_v16 = vld [vmem:[#allocation2 + $0x2] sm:$0x3] }
 0x54e   :  { %1392 = vst [vmem:[#allocation2 + $0x10] sm:$0xff] %v1374_v15 }
 0x54f   :  { %1397 = vst [vmem:[#allocation3 + $0x10] sm:$0xff] %v1376_v17  ;;  %v1379_v21 = vpop.f32.mrb[16].mxu1 }
 0x550   :  { %v1380_v22 = vadd.f32 %v1379_v21, %v1276_v18  ;;  %v1381_v23 = vpop.f32.mrb[17].mxu1 }
 0x551   :  { %v1382_v26 = vadd.f32 %v1381_v23, %v1277_v19 }
 0x552   :  { %1393 = vst [vmem:[#allocation2 + $0x18] sm:$0xff] %v1380_v22 }
 0x553   :  { %v6730_v8 = vpop.eup %6729  ;;  %1398 = vst [vmem:[#allocation3 + $0x18] sm:$0xff] %v1382_v26  ;;  %v1385_v9 = vpop.f32.mrb[18].mxu1 }
 0x554   :  { %v1257_v10 = vadd.f32 1.0, %v6730_v8  ;;  %v1386_v29 = vadd.f32 %v1385_v9, %v1278_v28  ;;  %v1387_v30 = vpop.f32.mrb[19].mxu1 }
 0x555   :  { %v1388_v32 = vadd.f32 %v1387_v30, %v1279_v25 }
 0x556   :  { %6731 = vrcp.f32 %v1257_v10  ;;  %1394 = vst [vmem:[#allocation2 + $0x20] sm:$0xff] %v1386_v29 }
 0x557   :  { %1399 = vst [vmem:[#allocation3 + $0x20] sm:$0xff] %v1388_v32  ;;  %v1485_v36 = vpop.f32.mrb[20].mxu1 }
 0x558   :  { %v1489_v37 = vadd.f32 %v1485_v36, %v1411_v35  ;;  %v5813_v39 = vpop.f32.mrb[21].mxu1 }
 0x55a   :  { %6733 = vtanh.f32 %v1489_v37  ;;  %v5272_v52 = vmul.f32 -1.442695, %v1489_v37  ;;  %v1703_v21 = vld [vmem:[#allocation3 + $0x1e] sm:$0x3] }
 0x55e   :  { %v1490_v42 = vld [vmem:[#allocation3 + $0x20] sm:$0x3] }
 0x55f   :  { %v1561_v43 = vpop.f32.mrb[22].mxu1 }
 0x560   :  { %v6732_v44 = vpop.eup %6731  ;;  %v1565_v46 = vadd.f32 %v1561_v43, %v1490_v42  ;;  %v5824_v50 = vpop.f32.mrb[23].mxu1 }
 0x561   :  { %1260 = vst [vmem:[%s8670_s21] sm:$0xff] %v6732_v44  ;;  %s7094_s21 = smov 32  }
 0x562   :  { %6735 = vtanh.f32 %v1565_v46  ;;  %v5273_v54 = vmul.f32 -1.442695, %v1565_v46 }
 0x563   :  { %6737 = vpow2.f32 %v5272_v52 }
 0x564   :  { %v6734_v47 = vpop.eup %6733  ;;  %6739 = vpow2.f32 %v5273_v54 }
 0x565   :  { %1575 = vrot.lane.b32.xlu1 %v6734_v47, %s7093_s28 }
 0x56c   :  { %v6736_v51 = vpop.eup %6735 }
 0x56d   :  { %1599 = vrot.lane.b32.xlu0 %v6736_v51, %s7093_s28  ;;  %v6738_v55 = vpop.eup %6737 }
 0x56e   :  { %v1569_v56 = vadd.f32 1.0, %v6738_v55  ;;  %v6740_v14 = vpop.eup %6739 }
 0x56f   :  { %v1593_v57 = vadd.f32 1.0, %v6740_v14 }
 0x570   :  { %6741 = vrcp.f32 %v1569_v56 }
 0x571   :  { %6743 = vrcp.f32 %v1593_v57 }
 0x57a   :  { %v6742_v58 = vpop.eup %6741 }
 0x57b   :  { %v6744_v61 = vpop.eup %6743  ;;  %v1573_v24 = vmul.f32 0.0, %v6742_v58 }
 0x57c   :  { %v1597_v31 = vmul.f32 0.0, %v6744_v61 }
 0x5d7   :  { %v1576_v59 = vpop.permute.xlu1 %1575 }
 0x5d8   :  { %v1578_v60 = vmul.f32 %v6742_v58, %v1576_v59 }
 0x5da   :  { %1580 = vrot.lane.b32.xlu1 %v1578_v60, %s7094_s21 }
 0x5df   :  { %v1600_v62 = vpop.permute.xlu0 %1599 }
 0x5e0   :  { %v1602_v63 = vmul.f32 %v6744_v61, %v1600_v62 }
 0x5e2   :  { %1604 = vrot.lane.b32.xlu1 %v1602_v63, %s7094_s21  ;;  %v1917_v63 = vld [vmem:[#allocation3 + $0x1c] sm:$0x3] }
 0x64c   :  { %v1581_v2 = vpop.permute.xlu1 %1580 }
 0x64d   :  { %v7999_v3 = vadd.f32 %v1581_v2, %v1573_v24 }
 0x64f   :  { %6745 = vtanh.f32 %v7999_v3 }
 0x654   :  { %v1605_v4 = vpop.permute.xlu1 %1604 }
 0x655   :  { %v8002_v5 = vadd.f32 %v1605_v4, %v1597_v31  ;;  %v1839_v31 = vld [vmem:[#allocation2 + $0x4] sm:$0x3] }
 0x657   :  { %6747 = vtanh.f32 %v8002_v5 }
 0x659   :  { %v6746_v6 = vpop.eup %6745 }
 0x65a   :  { %1586 = vrot.lane.b32.xlu0 %v6746_v6, %s7093_s28 }
 0x661   :  { %v6748_v38 = vpop.eup %6747 }
 0x662   :  { %1610 = vrot.lane.b32.xlu1 %v6748_v38, %s7093_s28 }
 0x6cc   :  { %v1587_v45 = vpop.permute.xlu0 %1586 }
 0x6cd   :  { %v1589_v7 = vmul.f32 %v6742_v58, %v1587_v45 }
 0x6cf   :  { %1615 = vrot.lane.b32.xlu0 %v1589_v7, %s7094_s21 }
 0x6d4   :  { %v1611_v11 = vpop.permute.xlu1 %1610 }
 0x6d5   :  { %v1613_v12 = vmul.f32 %v6744_v61, %v1611_v11 }
 0x6d7   :  { %1621 = vrot.lane.b32.xlu1 %v1613_v12, %s7094_s21 }
 0x741   :  { %v1616_v13 = vpop.permute.xlu0 %1615 }
 0x742   :  { %1619 = vst.msk [vmem:[#allocation4] sm:$0x3] %vm1618_vm9, %v1616_v13  ;;  %5834 = vmatmul.mubr.msk.f32.vlgmr.msra.gmra.mrb[24].mxu1 %vm1400_vm8, %v1616_v13 }
 0x743   :  { %6505 = vmatpush3.bf16.msra.mxu1 %v7935_v49  ;;  %5844 = vmatprep.mubr.msk.f32.mxu1 %vm7090_vm0, %v7091_v1 }
 0x744   :  { %6506 = vmatprep.subr.bf16.mxu1 %v7089_v0 }
 0x747   :  { %6508 = vmatpush3.bf16.msra.mxu1 %v7945_v53 }
 0x748   :  { %6509 = vmatprep.subr.bf16.mxu1 %v7089_v0 }
 0x749   :  { %v1622_v15 = vpop.permute.xlu1 %1621 }
 0x74a   :  { %1624 = vst.msk [vmem:[#allocation5 + $0x20] sm:$0x3] %vm1618_vm9, %v1622_v15  ;;  %5845 = vmatmul.mubr.msk.f32.vlgmr.msra.gmra.mrb[26].mxu1 %vm1400_vm8, %v1622_v15 }
 0x74b   :  { %6511 = vmatpush3.bf16.msra.mxu1 %v7881_v33  ;;  %5855 = vmatprep.mubr.msk.f32.mxu1 %vm7090_vm0, %v7091_v1 }
 0x74c   :  { %6512 = vmatprep.subr.bf16.mxu1 %v7089_v0 }
 0x74f   :  { %6514 = vmatpush3.bf16.msra.mxu1 %v7895_v40 }
 0x750   :  { %6515 = vmatprep.subr.bf16.mxu1 %v7089_v0 }
 0x815   :  { %v1698_v17 = vpop.f32.mrb[24].mxu1 }
 0x816   :  { %v1702_v18 = vadd.f32 %v1698_v17, %v1625_v16  ;;  %v5835_v19 = vpop.f32.mrb[25].mxu1 }
 0x818   :  { %6749 = vtanh.f32 %v1702_v18  ;;  %v5276_v8 = vmul.f32 -1.442695, %v1702_v18 }
 0x81d   :  { %v1776_v22 = vpop.f32.mrb[26].mxu1 }
 0x81e   :  { %v1780_v23 = vadd.f32 %v1776_v22, %v1703_v21  ;;  %v5846_v26 = vpop.f32.mrb[27].mxu1 }
 0x820   :  { %6751 = vtanh.f32 %v1780_v23  ;;  %v5277_v9 = vmul.f32 -1.442695, %v1780_v23 }
 0x821   :  { %6753 = vpow2.f32 %v5276_v8 }
 0x822   :  { %v6750_v28 = vpop.eup %6749  ;;  %6755 = vpow2.f32 %v5277_v9 }
 0x823   :  { %1790 = vrot.lane.b32.xlu0 %v6750_v28, %s7093_s28 }
 0x82a   :  { %v6752_v25 = vpop.eup %6751 }
 0x82b   :  { %1814 = vrot.lane.b32.xlu1 %v6752_v25, %s7093_s28  ;;  %v6754_v10 = vpop.eup %6753 }
 0x82c   :  { %v1784_v29 = vadd.f32 1.0, %v6754_v10  ;;  %v6756_v30 = vpop.eup %6755 }
 0x82d   :  { %v1808_v32 = vadd.f32 1.0, %v6756_v30 }
 0x82e   :  { %6757 = vrcp.f32 %v1784_v29 }
 0x82f   :  { %6759 = vrcp.f32 %v1808_v32 }
 0x838   :  { %v6758_v35 = vpop.eup %6757 }
 0x839   :  { %v6760_v39 = vpop.eup %6759  ;;  %v1788_v44 = vmul.f32 %v6758_v35, %v7999_v3 }
 0x83a   :  { %v1812_v47 = vmul.f32 %v6760_v39, %v8002_v5 }
 0x895   :  { %v1791_v36 = vpop.permute.xlu0 %1790 }
 0x896   :  { %v1793_v37 = vmul.f32 %v6758_v35, %v1791_v36 }
 0x898   :  { %1795 = vrot.lane.b32.xlu0 %v1793_v37, %s7094_s21 }
 0x89d   :  { %v1815_v42 = vpop.permute.xlu1 %1814 }
 0x89e   :  { %v1817_v43 = vmul.f32 %v6760_v39, %v1815_v42 }
 0x8a0   :  { %1819 = vrot.lane.b32.xlu1 %v1817_v43, %s7094_s21 }
 0x90a   :  { %v1796_v46 = vpop.permute.xlu0 %1795 }
 0x90b   :  { %v8050_v50 = vadd.f32 %v1796_v46, %v1788_v44  ;;  %v2053_v46 = vld [vmem:[#allocation2 + $0x6] sm:$0x3] }
 0x90d   :  { %6761 = vtanh.f32 %v8050_v50 }
 0x912   :  { %v1820_v51 = vpop.permute.xlu1 %1819 }
 0x913   :  { %v1822_v52 = vadd.f32 %v1820_v51, %v1812_v47 }
 0x915   :  { %6763 = vtanh.f32 %v1822_v52 }
 0x917   :  { %v6762_v54 = vpop.eup %6761 }
 0x918   :  { %1801 = vrot.lane.b32.xlu0 %v6762_v54, %s7093_s28 }
 0x91f   :  { %v6764_v55 = vpop.eup %6763 }
 0x920   :  { %1825 = vrot.lane.b32.xlu1 %v6764_v55, %s7093_s28 }
 0x98a   :  { %v1802_v56 = vpop.permute.xlu0 %1801 }
 0x98b   :  { %v1804_v14 = vmul.f32 %v6758_v35, %v1802_v56 }
 0x98d   :  { %1830 = vrot.lane.b32.xlu0 %v1804_v14, %s7094_s21 }
 0x992   :  { %v1826_v57 = vpop.permute.xlu1 %1825 }
 0x993   :  { %v1828_v58 = vmul.f32 %v6760_v39, %v1826_v57  ;;  %v2131_v39 = vld [vmem:[#allocation3 + $0x1a] sm:$0x3] }
 0x995   :  { %1835 = vrot.lane.b32.xlu1 %v1828_v58, %s7094_s21 }
 0x9ff   :  { %v1831_v59 = vpop.permute.xlu0 %1830 }
 0xa00   :  { %1833 = vst.msk [vmem:[#allocation4 + $0x2] sm:$0x3] %vm1618_vm9, %v1831_v59  ;;  %5856 = vmatmul.mubr.msk.f32.vlgmr.msra.gmra.mrb[28].mxu1 %vm1400_vm8, %v1831_v59 }
 0xa01   :  { %6517 = vmatpush3.bf16.msra.mxu1 %v7935_v49  ;;  %5866 = vmatprep.mubr.msk.f32.mxu1 %vm7090_vm0, %v7091_v1 }
 0xa02   :  { %6518 = vmatprep.subr.bf16.mxu1 %v7089_v0 }
 0xa05   :  { %6520 = vmatpush3.bf16.msra.mxu1 %v7945_v53 }
 0xa06   :  { %6527 = vmatprep.subr.bf16.mxu1 %v7089_v0 }
 0xa07   :  { %v1836_v60 = vpop.permute.xlu1 %1835 }
 0xa08   :  { %1838 = vst.msk [vmem:[#allocation5 + $0x1e] sm:$0x3] %vm1618_vm9, %v1836_v60  ;;  %5867 = vmatmul.mubr.msk.f32.vlgmr.msra.gmra.mrb[30].mxu1 %vm1400_vm8, %v1836_v60 }
 0xa09   :  { %6529 = vmatpush3.bf16.msra.mxu1 %v7935_v49  ;;  %5888 = vmatprep.mubr.msk.f32.mxu1 %vm7090_vm0, %v7091_v1 }
 0xa0a   :  { %6530 = vmatprep.subr.bf16.mxu1 %v7089_v0 }
 0xa0d   :  { %6532 = vmatpush3.bf16.msra.mxu1 %v7945_v53 }
 0xa0e   :  { %6539 = vmatprep.subr.bf16.mxu1 %v7089_v0 }
 0xad3   :  { %v1912_v61 = vpop.f32.mrb[28].mxu1 }
 0xad4   :  { %v5857_v62 = vpop.f32.mrb[29].mxu1  ;;  %v1916_v4 = vadd.f32 %v1912_v61, %v1839_v31 }
 0xad6   :  { %v5280_v45 = vmul.f32 -1.442695, %v1916_v4 }
 0xadb   :  { %v1990_v24 = vpop.f32.mrb[30].mxu1 }
 0xadc   :  { %v1994_v2 = vadd.f32 %v1990_v24, %v1917_v63  ;;  %v5868_v3 = vpop.f32.mrb[31].mxu1 }
 0xade   :  { %6765 = vtanh.f32 %v1994_v2  ;;  %v5281_v38 = vmul.f32 -1.442695, %v1994_v2 }
 0xadf   :  { %6767 = vtanh.f32 %v1916_v4 }
 0xae0   :  { %6769 = vpow2.f32 %v5281_v38 }
 0xae1   :  { %6771 = vpow2.f32 %v5280_v45 }
 0xae8   :  { %v6766_v5 = vpop.eup %6765 }
 0xae9   :  { %2028 = vrot.lane.b32.xlu0 %v6766_v5, %s7093_s28  ;;  %v6768_v6 = vpop.eup %6767 }
 0xaea   :  { %v6770_v7 = vpop.eup %6769 }
 0xaeb   :  { %v2022_v11 = vadd.f32 1.0, %v6770_v7  ;;  %v6772_v12 = vpop.eup %6771 }
 0xaec   :  { %v1998_v13 = vadd.f32 1.0, %v6772_v12 }
 0xaed   :  { %2004 = vrot.lane.b32.xlu0 %v6768_v6, %s7093_s28  ;;  %6773 = vrcp.f32 %v2022_v11 }
 0xaee   :  { %6775 = vrcp.f32 %v1998_v13 }
 0xaf7   :  { %v6774_v15 = vpop.eup %6773 }
 0xaf8   :  { %v6776_v18 = vpop.eup %6775  ;;  %v2026_v22 = vmul.f32 %v6774_v15, %v1822_v52 }
 0xaf9   :  { %v2002_v28 = vmul.f32 %v6776_v18, %v8050_v50 }
 0xb5b   :  { %v2029_v16 = vpop.permute.xlu0 %2028 }
 0xb5c   :  { %v2031_v17 = vmul.f32 %v6774_v15, %v2029_v16 }
 0xb5e   :  { %2033 = vrot.lane.b32.xlu1 %v2031_v17, %s7094_s21 }
 0xb5f   :  { %v2005_v19 = vpop.permute.xlu0 %2004 }
 0xb60   :  { %v2007_v21 = vmul.f32 %v6776_v18, %v2005_v19 }
 0xb62   :  { %2009 = vrot.lane.b32.xlu0 %v2007_v21, %s7094_s21 }
 0xbd0   :  { %v2034_v23 = vpop.permute.xlu1 %2033 }
 0xbd1   :  { %v8078_v26 = vadd.f32 %v2034_v23, %v2026_v22  ;;  %v2267_v23 = vld [vmem:[#allocation2 + $0x8] sm:$0x3] }
 0xbd3   :  { %6777 = vtanh.f32 %v8078_v26 }
 0xbd4   :  { %v2010_v25 = vpop.permute.xlu0 %2009 }
 0xbd5   :  { %v8082_v8 = vadd.f32 %v2010_v25, %v2002_v28 }
 0xbd7   :  { %6779 = vtanh.f32 %v8082_v8 }
 0xbdd   :  { %v6778_v9 = vpop.eup %6777 }
 0xbde   :  { %2039 = vrot.lane.b32.xlu1 %v6778_v9, %s7093_s28 }
 0xbe1   :  { %v6780_v10 = vpop.eup %6779 }
 0xbe2   :  { %2015 = vrot.lane.b32.xlu0 %v6780_v10, %s7093_s28 }
 0xc50   :  { %v2040_v29 = vpop.permute.xlu1 %2039 }
 0xc51   :  { %v2042_v30 = vmul.f32 %v6774_v15, %v2040_v29 }
 0xc53   :  { %2049 = vrot.lane.b32.xlu1 %v2042_v30, %s7094_s21 }
 0xc54   :  { %v2016_v32 = vpop.permute.xlu0 %2015 }
 0xc55   :  { %v2018_v35 = vmul.f32 %v6776_v18, %v2016_v32  ;;  %v2345_v18 = vld [vmem:[#allocation3 + $0x18] sm:$0x3] }
 0xc57   :  { %2044 = vrot.lane.b32.xlu1 %v2018_v35, %s7094_s21 }
 0xcc5   :  { %v2050_v36 = vpop.permute.xlu1 %2049 }
 0xcc6   :  { %2052 = vst.msk [vmem:[#allocation5 + $0x1c] sm:$0x3] %vm1618_vm9, %v2050_v36  ;;  %5889 = vmatmul.mubr.msk.f32.vlgmr.msra.gmra.mrb[32].mxu1 %vm1400_vm8, %v2050_v36 }
 0xcc7   :  { %6541 = vmatpush3.bf16.msra.mxu1 %v7935_v49  ;;  %5910 = vmatprep.mubr.msk.f32.mxu1 %vm7090_vm0, %v7091_v1 }
 0xcc8   :  { %6542 = vmatprep.subr.bf16.mxu1 %v7089_v0 }
 0xcc9   :  { %v2045_v37 = vpop.permute.xlu1 %2044 }
 0xcca   :  { %2047 = vst.msk [vmem:[#allocation4 + $0x4] sm:$0x3] %vm1618_vm9, %v2045_v37  ;;  %5878 = vmatmul.mubr.msk.f32.vlgmr.msra.gmra.mrb[16].mxu0 %vm1400_vm8, %v2045_v37 }
 0xccb   :  { %6535 = vmatpush3.bf16.msra.mxu0 %v7881_v33  ;;  %6544 = vmatpush3.bf16.msra.mxu1 %v7945_v53 }
 0xccc   :  { %6536 = vmatprep.subr.bf16.mxu0 %v7089_v0  ;;  %5899 = vmatprep.mubr.msk.f32.mxu0 %vm7090_vm0, %v7091_v1 }
 0xccd   :  { %6551 = vmatprep.subr.bf16.mxu1 %v7089_v0 }
 0xccf   :  { %6538 = vmatpush3.bf16.msra.mxu0 %v7895_v40 }
 0xcd0   :  { %6545 = vmatprep.subr.bf16.mxu0 %v7089_v0 }
 0xd99   :  { %v2204_v42 = vpop.f32.mrb[32].mxu1 }
 0xd9a   :  { %v2208_v43 = vadd.f32 %v2204_v42, %v2131_v39  ;;  %v5890_v44 = vpop.f32.mrb[33].mxu1 }
 0xd9c   :  { %6781 = vtanh.f32 %v2208_v43  ;;  %v5285_v55 = vmul.f32 -1.442695, %v2208_v43 }
 0xd9d   :  { %v2126_v50 = vpop.f32.mrb[16].mxu0 }
 0xd9e   :  { %v2130_v47 = vadd.f32 %v2126_v50, %v2053_v46  ;;  %v5879_v51 = vpop.f32.mrb[17].mxu0 }
 0xda0   :  { %6783 = vtanh.f32 %v2130_v47  ;;  %v5284_v56 = vmul.f32 -1.442695, %v2130_v47 }
 0xda1   :  { %6785 = vpow2.f32 %v5285_v55 }
 0xda2   :  { %6787 = vpow2.f32 %v5284_v56 }
 0xda6   :  { %v6782_v52 = vpop.eup %6781 }
 0xda7   :  { %2242 = vrot.lane.b32.xlu0 %v6782_v52, %s7093_s28 }
 0xdaa   :  { %v6784_v54 = vpop.eup %6783 }
 0xdab   :  { %2218 = vrot.lane.b32.xlu0 %v6784_v54, %s7093_s28  ;;  %v6786_v14 = vpop.eup %6785 }
 0xdac   :  { %v2236_v57 = vadd.f32 1.0, %v6786_v14  ;;  %v6788_v58 = vpop.eup %6787 }
 0xdad   :  { %v2212_v59 = vadd.f32 1.0, %v6788_v58 }
 0xdae   :  { %6789 = vrcp.f32 %v2236_v57 }
 0xdaf   :  { %6791 = vrcp.f32 %v2212_v59 }
 0xdb8   :  { %v6790_v60 = vpop.eup %6789 }
 0xdb9   :  { %v6792_v63 = vpop.eup %6791  ;;  %v2240_v3 = vmul.f32 %v6790_v60, %v8078_v26 }
 0xdba   :  { %v2216_v5 = vmul.f32 %v6792_v63, %v8082_v8 }
 0xe19   :  { %v2243_v61 = vpop.permute.xlu0 %2242 }
 0xe1a   :  { %v2245_v62 = vmul.f32 %v6790_v60, %v2243_v61 }
 0xe1c   :  { %2247 = vrot.lane.b32.xlu1 %v2245_v62, %s7094_s21 }
 0xe1d   :  { %v2219_v24 = vpop.permute.xlu0 %2218 }
 0xe1e   :  { %v2221_v2 = vmul.f32 %v6792_v63, %v2219_v24 }
 0xe20   :  { %2223 = vrot.lane.b32.xlu0 %v2221_v2, %s7094_s21 }
 0xe8e   :  { %v2248_v31 = vpop.permute.xlu1 %2247 }
 0xe8f   :  { %v8110_v4 = vadd.f32 %v2248_v31, %v2240_v3  ;;  %v2481_v3 = vld [vmem:[#allocation2 + $0xa] sm:$0x3] }
 0xe91   :  { %6793 = vtanh.f32 %v8110_v4 }
 0xe92   :  { %v2224_v6 = vpop.permute.xlu0 %2223 }
 0xe93   :  { %v8114_v38 = vadd.f32 %v2224_v6, %v2216_v5 }
 0xe95   :  { %6795 = vtanh.f32 %v8114_v38 }
 0xe9b   :  { %v6794_v45 = vpop.eup %6793 }
 0xe9c   :  { %2253 = vrot.lane.b32.xlu1 %v6794_v45, %s7093_s28 }
 0xe9f   :  { %v6796_v7 = vpop.eup %6795 }
 0xea0   :  { %2229 = vrot.lane.b32.xlu0 %v6796_v7, %s7093_s28 }
 0xf0e   :  { %v2254_v11 = vpop.permute.xlu1 %2253 }
 0xf0f   :  { %v2256_v12 = vmul.f32 %v6790_v60, %v2254_v11 }
 0xf11   :  { %2263 = vrot.lane.b32.xlu1 %v2256_v12, %s7094_s21 }
 0xf12   :  { %v2230_v13 = vpop.permute.xlu0 %2229 }
 0xf13   :  { %v2232_v15 = vmul.f32 %v6792_v63, %v2230_v13 }
 0xf15   :  { %2258 = vrot.lane.b32.xlu1 %v2232_v15, %s7094_s21 }
 0xf83   :  { %v2264_v16 = vpop.permute.xlu1 %2263 }
 0xf84   :  { %2266 = vst.msk [vmem:[#allocation5 + $0x1a] sm:$0x3] %vm1618_vm9, %v2264_v16  ;;  %5911 = vmatmul.mubr.msk.f32.vlgmr.msra.gmra.mrb[34].mxu1 %vm1400_vm8, %v2264_v16 }
 0xf85   :  { %6553 = vmatpush3.bf16.msra.mxu1 %v7935_v49  ;;  %5932 = vmatprep.mubr.msk.f32.mxu1 %vm7090_vm0, %v7091_v1 }
 0xf86   :  { %6554 = vmatprep.subr.bf16.mxu1 %v7089_v0 }
 0xf87   :  { %v2259_v17 = vpop.permute.xlu1 %2258 }
 0xf88   :  { %2261 = vst.msk [vmem:[#allocation4 + $0x6] sm:$0x3] %vm1618_vm9, %v2259_v17  ;;  %5900 = vmatmul.mubr.msk.f32.vlgmr.msra.gmra.mrb[18].mxu0 %vm1400_vm8, %v2259_v17 }
 0xf89   :  { %6547 = vmatpush3.bf16.msra.mxu0 %v7881_v33  ;;  %6556 = vmatpush3.bf16.msra.mxu1 %v7945_v53 }
 0xf8a   :  { %6548 = vmatprep.subr.bf16.mxu0 %v7089_v0  ;;  %5921 = vmatprep.mubr.msk.f32.mxu0 %vm7090_vm0, %v7091_v1 }
 0xf8b   :  { %6563 = vmatprep.subr.bf16.mxu1 %v7089_v0 }
 0xf8d   :  { %6550 = vmatpush3.bf16.msra.mxu0 %v7895_v40 }
 0xf8e   :  { %6557 = vmatprep.subr.bf16.mxu0 %v7089_v0 }
0x1057   :  { %v2418_v19 = vpop.f32.mrb[34].mxu1 }
0x1058   :  { %v2422_v21 = vadd.f32 %v2418_v19, %v2345_v18  ;;  %v5912_v22 = vpop.f32.mrb[35].mxu1 }
0x105a   :  { %6797 = vtanh.f32 %v2422_v21  ;;  %v5289_v10 = vmul.f32 -1.442695, %v2422_v21 }
0x105b   :  { %v2340_v26 = vpop.f32.mrb[18].mxu0 }
0x105c   :  { %v2344_v28 = vadd.f32 %v2340_v26, %v2267_v23  ;;  %v5901_v25 = vpop.f32.mrb[19].mxu0 }
0x105e   :  { %6799 = vtanh.f32 %v2344_v28  ;;  %v5288_v29 = vmul.f32 -1.442695, %v2344_v28 }
0x105f   :  { %6801 = vpow2.f32 %v5289_v10 }
0x1060   :  { %6803 = vpow2.f32 %v5288_v29 }
0x1064   :  { %v6798_v8 = vpop.eup %6797 }
0x1065   :  { %2456 = vrot.lane.b32.xlu0 %v6798_v8, %s7093_s28 }
0x1068   :  { %v6800_v9 = vpop.eup %6799 }
0x1069   :  { %2432 = vrot.lane.b32.xlu0 %v6800_v9, %s7093_s28  ;;  %v6802_v30 = vpop.eup %6801 }
0x106a   :  { %v2450_v32 = vadd.f32 1.0, %v6802_v30  ;;  %v6804_v35 = vpop.eup %6803 }
0x106b   :  { %v2426_v36 = vadd.f32 1.0, %v6804_v35 }
0x106c   :  { %6805 = vrcp.f32 %v2450_v32 }
0x106d   :  { %6807 = vrcp.f32 %v2426_v36  ;;  %v2773_v36 = vld [vmem:[#allocation3 + $0x14] sm:$0x3] }
0x1076   :  { %v6806_v37 = vpop.eup %6805 }
0x1077   :  { %v6808_v43 = vpop.eup %6807  ;;  %v2454_v50 = vmul.f32 %v6806_v37, %v8110_v4 }
0x1078   :  { %v2430_v52 = vmul.f32 %v6808_v43, %v8114_v38 }
0x10d7   :  { %v2457_v39 = vpop.permute.xlu0 %2456 }
0x10d8   :  { %v2459_v42 = vmul.f32 %v6806_v37, %v2457_v39 }
0x10da   :  { %2461 = vrot.lane.b32.xlu1 %v2459_v42, %s7094_s21 }
0x10db   :  { %v2433_v44 = vpop.permute.xlu0 %2432 }
0x10dc   :  { %v2435_v46 = vmul.f32 %v6808_v43, %v2433_v44 }
0x10de   :  { %2437 = vrot.lane.b32.xlu0 %v2435_v46, %s7094_s21 }
0x114c   :  { %v2462_v47 = vpop.permute.xlu1 %2461 }
0x114d   :  { %v8142_v51 = vadd.f32 %v2462_v47, %v2454_v50 }
0x114f   :  { %6809 = vtanh.f32 %v8142_v51 }
0x1150   :  { %v2438_v54 = vpop.permute.xlu0 %2437 }
0x1151   :  { %v8146_v55 = vadd.f32 %v2438_v54, %v2430_v52 }
0x1153   :  { %6811 = vtanh.f32 %v8146_v55 }
0x1159   :  { %v6810_v56 = vpop.eup %6809 }
0x115a   :  { %2467 = vrot.lane.b32.xlu1 %v6810_v56, %s7093_s28 }
0x115d   :  { %v6812_v14 = vpop.eup %6811 }
0x115e   :  { %2443 = vrot.lane.b32.xlu0 %v6812_v14, %s7093_s28 }
0x11cc   :  { %v2468_v57 = vpop.permute.xlu1 %2467 }
0x11cd   :  { %v2470_v58 = vmul.f32 %v6806_v37, %v2468_v57 }
0x11cf   :  { %2477 = vrot.lane.b32.xlu1 %v2470_v58, %s7094_s21 }
0x11d0   :  { %v2444_v59 = vpop.permute.xlu0 %2443 }
0x11d1   :  { %v2446_v60 = vmul.f32 %v6808_v43, %v2444_v59  ;;  %v2695_v43 = vld [vmem:[#allocation2 + $0xc] sm:$0x3] }
0x11d3   :  { %2472 = vrot.lane.b32.xlu1 %v2446_v60, %s7094_s21 }
0x1241   :  { %v2478_v61 = vpop.permute.xlu1 %2477 }
0x1242   :  { %2480 = vst.msk [vmem:[#allocation5 + $0x18] sm:$0x3] %vm1618_vm9, %v2478_v61  ;;  %5933 = vmatmul.mubr.msk.f32.vlgmr.msra.gmra.mrb[36].mxu1 %vm1400_vm8, %v2478_v61 }
0x1243   :  { %6565 = vmatpush3.bf16.msra.mxu1 %v7935_v49  ;;  %5954 = vmatprep.mubr.msk.f32.mxu1 %vm7090_vm0, %v7091_v1  ;;  %v2559_v49 = vld [vmem:[#allocation3 + $0x16] sm:$0x3] }
0x1244   :  { %6566 = vmatprep.subr.bf16.mxu1 %v7089_v0 }
0x1245   :  { %v2473_v62 = vpop.permute.xlu1 %2472 }
0x1246   :  { %2475 = vst.msk [vmem:[#allocation4 + $0x8] sm:$0x3] %vm1618_vm9, %v2473_v62  ;;  %5922 = vmatmul.mubr.msk.f32.vlgmr.msra.gmra.mrb[20].mxu0 %vm1400_vm8, %v2473_v62 }
0x1247   :  { %6559 = vmatpush3.bf16.msra.mxu0 %v7881_v33  ;;  %6568 = vmatpush3.bf16.msra.mxu1 %v7945_v53 }
0x1248   :  { %6560 = vmatprep.subr.bf16.mxu0 %v7089_v0  ;;  %5943 = vmatprep.mubr.msk.f32.mxu0 %vm7090_vm0, %v7091_v1 }
0x1249   :  { %6575 = vmatprep.subr.bf16.mxu1 %v7089_v0 }
0x124b   :  { %6562 = vmatpush3.bf16.msra.mxu0 %v7895_v40 }
0x124c   :  { %6569 = vmatprep.subr.bf16.mxu0 %v7089_v0 }
0x1315   :  { %v2632_v63 = vpop.f32.mrb[36].mxu1 }
0x1316   :  { %v2636_v24 = vadd.f32 %v2632_v63, %v2559_v49  ;;  %v5934_v2 = vpop.f32.mrb[37].mxu1 }
0x1318   :  { %6813 = vtanh.f32 %v2636_v24  ;;  %v5293_v6 = vmul.f32 -1.442695, %v2636_v24 }
0x1319   :  { %v2554_v33 = vpop.f32.mrb[20].mxu0 }
0x131a   :  { %v2558_v31 = vadd.f32 %v2554_v33, %v2481_v3  ;;  %v5923_v53 = vpop.f32.mrb[21].mxu0 }
0x131b   :  { %v2988_v53 = vld [vmem:[%s8658_s9] sm:$0xff] }
0x131c   :  { %6815 = vtanh.f32 %v2558_v31  ;;  %v5292_v40 = vmul.f32 -1.442695, %v2558_v31 }
0x131d   :  { %6817 = vpow2.f32 %v5293_v6 }
0x131e   :  { %6819 = vpow2.f32 %v5292_v40  ;;  %v2911_v40 = vld [vmem:[%s8657_s8 + $0x8] sm:$0xff] }
0x1322   :  { %v6814_v4 = vpop.eup %6813 }
0x1323   :  { %2670 = vrot.lane.b32.xlu0 %v6814_v4, %s7093_s28  ;;  %v2989_v4 = vld [vmem:[%s8658_s9 + $0x8] sm:$0xff] }
0x1324   :  { %v8206_v6 = vpack.c.bf16 %v2989_v4, %v2988_v53 }
0x1326   :  { %v6816_v5 = vpop.eup %6815 }
0x1327   :  { %2646 = vrot.lane.b32.xlu0 %v6816_v5, %s7093_s28  ;;  %v6818_v38 = vpop.eup %6817  ;;  %v2910_v5 = vld [vmem:[%s8657_s8] sm:$0xff] }
0x1328   :  { %v2664_v45 = vadd.f32 1.0, %v6818_v38  ;;  %v6820_v7 = vpop.eup %6819  ;;  %v2990_v38 = vld [vmem:[%s8658_s9 + $0x10] sm:$0xff] }
0x1329   :  { %v2640_v11 = vadd.f32 1.0, %v6820_v7  ;;  %v8217_v7 = vpack.c.bf16 %v2911_v40, %v2910_v5  ;;  %v3123_v40 = vld [vmem:[#allocation2 + $0x10] sm:$0x3] }
0x132a   :  { %6821 = vrcp.f32 %v2664_v45  ;;  %v2991_v45 = vld [vmem:[%s8658_s9 + $0x18] sm:$0xff] }
0x132b   :  { %6823 = vrcp.f32 %v2640_v11  ;;  %v8220_v11 = vpack.c.bf16 %v2991_v45, %v2990_v38 }
0x1334   :  { %v6822_v12 = vpop.eup %6821 }
0x1335   :  { %v6824_v16 = vpop.eup %6823  ;;  %v2668_v19 = vmul.f32 %v6822_v12, %v8142_v51 }
0x1336   :  { %v2644_v23 = vmul.f32 %v6824_v16, %v8146_v55 }
0x1395   :  { %v2671_v13 = vpop.permute.xlu0 %2670 }
0x1396   :  { %v2673_v15 = vmul.f32 %v6822_v12, %v2671_v13 }
0x1398   :  { %2675 = vrot.lane.b32.xlu1 %v2673_v15, %s7094_s21  ;;  %v2912_v15 = vld [vmem:[%s8657_s8 + $0x10] sm:$0xff] }
0x1399   :  { %v2647_v17 = vpop.permute.xlu0 %2646 }
0x139a   :  { %v2649_v18 = vmul.f32 %v6824_v16, %v2647_v17 }
0x139c   :  { %2651 = vrot.lane.b32.xlu0 %v2649_v18, %s7094_s21 }
0x140a   :  { %v2676_v21 = vpop.permute.xlu1 %2675 }
0x140b   :  { %v2678_v22 = vadd.f32 %v2676_v21, %v2668_v19 }
0x140d   :  { %6825 = vtanh.f32 %v2678_v22 }
0x140e   :  { %v2652_v26 = vpop.permute.xlu0 %2651 }
0x140f   :  { %v2654_v28 = vadd.f32 %v2652_v26, %v2644_v23 }
0x1411   :  { %6827 = vtanh.f32 %v2654_v28 }
0x1417   :  { %v6826_v25 = vpop.eup %6825 }
0x1418   :  { %2681 = vrot.lane.b32.xlu1 %v6826_v25, %s7093_s28 }
0x141b   :  { %v6828_v8 = vpop.eup %6827 }
0x141c   :  { %2657 = vrot.lane.b32.xlu0 %v6828_v8, %s7093_s28 }
0x148a   :  { %v2682_v9 = vpop.permute.xlu1 %2681 }
0x148b   :  { %v2684_v10 = vmul.f32 %v6822_v12, %v2682_v9 }
0x148d   :  { %2691 = vrot.lane.b32.xlu1 %v2684_v10, %s7094_s21  ;;  %v2909_v10 = vld [vmem:[#allocation2 + $0xe] sm:$0x3] }
0x148e   :  { %v2658_v29 = vpop.permute.xlu0 %2657 }
0x148f   :  { %v2660_v30 = vmul.f32 %v6824_v16, %v2658_v29  ;;  %v2913_v16 = vld [vmem:[%s8657_s8 + $0x18] sm:$0xff] }
0x1490   :  { %v8235_v17 = vpack.c.bf16 %v2913_v16, %v2912_v15 }
0x1491   :  { %2686 = vrot.lane.b32.xlu1 %v2660_v30, %s7094_s21 }
0x14ff   :  { %v2692_v32 = vpop.permute.xlu1 %2691 }
0x1500   :  { %2694 = vst.msk [vmem:[#allocation5 + $0x16] sm:$0x3] %vm1618_vm9, %v2692_v32  ;;  %5955 = vmatmul.mubr.msk.f32.vlgmr.msra.gmra.mrb[38].mxu1 %vm1400_vm8, %v2692_v32 }
0x1501   :  { %5976 = vmatprep.mubr.msk.f32.mxu1 %vm7090_vm0, %v7091_v1  ;;  %6577 = vmatpush3.bf16.msra.mxu1 %v8206_v6 }
0x1502   :  { %6578 = vmatprep.subr.bf16.mxu1 %v7089_v0 }
0x1503   :  { %v2687_v35 = vpop.permute.xlu1 %2686 }
0x1504   :  { %2689 = vst.msk [vmem:[#allocation4 + $0xa] sm:$0x3] %vm1618_vm9, %v2687_v35  ;;  %5944 = vmatmul.mubr.msk.f32.vlgmr.msra.gmra.mrb[22].mxu0 %vm1400_vm8, %v2687_v35 }
0x1505   :  { %5965 = vmatprep.mubr.msk.f32.mxu0 %vm7090_vm0, %v7091_v1  ;;  %6571 = vmatpush3.bf16.msra.mxu0 %v8217_v7 }
0x1506   :  { %6572 = vmatprep.subr.bf16.mxu0 %v7089_v0  ;;  %6580 = vmatpush3.bf16.msra.mxu1 %v8220_v11 }
0x1507   :  { %6587 = vmatprep.subr.bf16.mxu1 %v7089_v0 }
0x1509   :  { %6574 = vmatpush3.bf16.msra.mxu0 %v8235_v17 }
0x150a   :  { %6581 = vmatprep.subr.bf16.mxu0 %v7089_v0 }
0x15d3   :  { %v2846_v37 = vpop.f32.mrb[38].mxu1 }
0x15d4   :  { %v2850_v39 = vadd.f32 %v2846_v37, %v2773_v36  ;;  %v5956_v42 = vpop.f32.mrb[39].mxu1 }
0x15d6   :  { %6829 = vtanh.f32 %v2850_v39  ;;  %v5297_v52 = vmul.f32 -1.442695, %v2850_v39 }
0x15d7   :  { %v2768_v44 = vpop.f32.mrb[22].mxu0 }
0x15d8   :  { %v2772_v46 = vadd.f32 %v2768_v44, %v2695_v43  ;;  %v5945_v50 = vpop.f32.mrb[23].mxu0 }
0x15da   :  { %6831 = vtanh.f32 %v2772_v46  ;;  %v5296_v54 = vmul.f32 -1.442695, %v2772_v46 }
0x15db   :  { %6833 = vpow2.f32 %v5297_v52 }
0x15dc   :  { %6835 = vpow2.f32 %v5296_v54 }
0x15e0   :  { %v6830_v47 = vpop.eup %6829 }
0x15e1   :  { %2884 = vrot.lane.b32.xlu0 %v6830_v47, %s7093_s28 }
0x15e4   :  { %v6832_v51 = vpop.eup %6831 }
0x15e5   :  { %2860 = vrot.lane.b32.xlu0 %v6832_v51, %s7093_s28  ;;  %v6834_v55 = vpop.eup %6833 }
0x15e6   :  { %v2878_v56 = vadd.f32 1.0, %v6834_v55  ;;  %v6836_v14 = vpop.eup %6835 }
0x15e7   :  { %v2854_v57 = vadd.f32 1.0, %v6836_v14 }
0x15e8   :  { %6837 = vrcp.f32 %v2878_v56 }
0x15e9   :  { %6839 = vrcp.f32 %v2854_v57 }
0x15f2   :  { %v6838_v58 = vpop.eup %6837 }
0x15f3   :  { %v6840_v61 = vpop.eup %6839  ;;  %v2882_v63 = vmul.f32 %v6838_v58, %v2678_v22 }
0x15f4   :  { %v2858_v3 = vmul.f32 %v6840_v61, %v2654_v28  ;;  %v2987_v28 = vld [vmem:[#allocation3 + $0x12] sm:$0x3] }
0x1653   :  { %v2885_v59 = vpop.permute.xlu0 %2884 }
0x1654   :  { %v2887_v60 = vmul.f32 %v6838_v58, %v2885_v59 }
0x1656   :  { %2889 = vrot.lane.b32.xlu1 %v2887_v60, %s7094_s21 }
0x1657   :  { %v2861_v62 = vpop.permute.xlu0 %2860 }
0x1658   :  { %v2863_v49 = vmul.f32 %v6840_v61, %v2861_v62 }
0x165a   :  { %2865 = vrot.lane.b32.xlu0 %v2863_v49, %s7094_s21 }
0x16c8   :  { %v2890_v24 = vpop.permute.xlu1 %2889 }
0x16c9   :  { %v8191_v2 = vadd.f32 %v2890_v24, %v2882_v63 }
0x16cb   :  { %6841 = vtanh.f32 %v8191_v2 }
0x16cc   :  { %v2866_v33 = vpop.permute.xlu0 %2865 }
0x16cd   :  { %v8194_v31 = vadd.f32 %v2866_v33, %v2858_v3 }
0x16cf   :  { %6843 = vtanh.f32 %v8194_v31 }
0x16d5   :  { %v6842_v12 = vpop.eup %6841 }
0x16d6   :  { %2895 = vrot.lane.b32.xlu1 %v6842_v12, %s7093_s28 }
0x16d9   :  { %v6844_v13 = vpop.eup %6843 }
0x16da   :  { %2871 = vrot.lane.b32.xlu0 %v6844_v13, %s7093_s28 }
0x1748   :  { %v2896_v18 = vpop.permute.xlu1 %2895 }
0x1749   :  { %v2898_v19 = vmul.f32 %v6838_v58, %v2896_v18 }
0x174b   :  { %2905 = vrot.lane.b32.xlu1 %v2898_v19, %s7094_s21 }
0x174c   :  { %v2872_v21 = vpop.permute.xlu0 %2871 }
0x174d   :  { %v2874_v22 = vmul.f32 %v6840_v61, %v2872_v21 }
0x174f   :  { %2900 = vrot.lane.b32.xlu1 %v2874_v22, %s7094_s21 }
0x17bd   :  { %v2906_v23 = vpop.permute.xlu1 %2905 }
0x17be   :  { %2908 = vst.msk [vmem:[#allocation5 + $0x14] sm:$0x3] %vm1618_vm9, %v2906_v23  ;;  %5977 = vmatmul.mubr.msk.f32.vlgmr.msra.gmra.mrb[40].mxu1 %vm1400_vm8, %v2906_v23 }
0x17bf   :  { %6589 = vmatpush3.bf16.msra.mxu1 %v8206_v6  ;;  %5998 = vmatprep.mubr.msk.f32.mxu1 %vm7090_vm0, %v7091_v1 }
0x17c0   :  { %6590 = vmatprep.subr.bf16.mxu1 %v7089_v0 }
0x17c1   :  { %v2901_v26 = vpop.permute.xlu1 %2900 }
0x17c2   :  { %2903 = vst.msk [vmem:[#allocation4 + $0xc] sm:$0x3] %vm1618_vm9, %v2901_v26  ;;  %5966 = vmatmul.mubr.msk.f32.vlgmr.msra.gmra.mrb[24].mxu0 %vm1400_vm8, %v2901_v26 }
0x17c3   :  { %6583 = vmatpush3.bf16.msra.mxu0 %v8217_v7  ;;  %6592 = vmatpush3.bf16.msra.mxu1 %v8220_v11 }
0x17c4   :  { %6584 = vmatprep.subr.bf16.mxu0 %v7089_v0  ;;  %5987 = vmatprep.mubr.msk.f32.mxu0 %vm7090_vm0, %v7091_v1 }
0x17c5   :  { %6599 = vmatprep.subr.bf16.mxu1 %v7089_v0 }
0x17c7   :  { %6586 = vmatpush3.bf16.msra.mxu0 %v8235_v17 }
0x17c8   :  { %6593 = vmatprep.subr.bf16.mxu0 %v7089_v0 }
0x1891   :  { %v3060_v25 = vpop.f32.mrb[40].mxu1 }
0x1892   :  { %v3064_v8 = vadd.f32 %v3060_v25, %v2987_v28  ;;  %v5978_v9 = vpop.f32.mrb[41].mxu1 }
0x1894   :  { %6845 = vtanh.f32 %v3064_v8  ;;  %v5301_v37 = vmul.f32 -1.442695, %v3064_v8 }
0x1895   :  { %v2982_v29 = vpop.f32.mrb[24].mxu0 }
0x1896   :  { %v2986_v30 = vadd.f32 %v2982_v29, %v2909_v10  ;;  %v5967_v32 = vpop.f32.mrb[25].mxu0 }
0x1898   :  { %6847 = vtanh.f32 %v2986_v30  ;;  %v5300_v39 = vmul.f32 -1.442695, %v2986_v30 }
0x1899   :  { %6849 = vpow2.f32 %v5301_v37 }
0x189a   :  { %6851 = vpow2.f32 %v5300_v39 }
0x189e   :  { %v6846_v35 = vpop.eup %6845 }
0x189f   :  { %3098 = vrot.lane.b32.xlu0 %v6846_v35, %s7093_s28 }
0x18a2   :  { %v6848_v36 = vpop.eup %6847 }
0x18a3   :  { %3074 = vrot.lane.b32.xlu0 %v6848_v36, %s7093_s28  ;;  %v6850_v42 = vpop.eup %6849 }
0x18a4   :  { %v3092_v43 = vadd.f32 1.0, %v6850_v42  ;;  %v6852_v44 = vpop.eup %6851 }
0x18a5   :  { %v3068_v46 = vadd.f32 1.0, %v6852_v44 }
0x18a6   :  { %6853 = vrcp.f32 %v3092_v43 }
0x18a7   :  { %6855 = vrcp.f32 %v3068_v46 }
0x18b0   :  { %v6854_v50 = vpop.eup %6853 }
0x18b1   :  { %v6856_v52 = vpop.eup %6855  ;;  %v3096_v56 = vmul.f32 %v6854_v50, %v8191_v2 }
0x18b2   :  { %v3072_v58 = vmul.f32 %v6856_v52, %v8194_v31  ;;  %v3201_v31 = vld [vmem:[#allocation3 + $0x10] sm:$0x3] }
0x1911   :  { %v3099_v47 = vpop.permute.xlu0 %3098 }
0x1912   :  { %v3101_v51 = vmul.f32 %v6854_v50, %v3099_v47 }
0x1914   :  { %3103 = vrot.lane.b32.xlu1 %v3101_v51, %s7094_s21 }
0x1915   :  { %v3075_v54 = vpop.permute.xlu0 %3074 }
0x1916   :  { %v3077_v55 = vmul.f32 %v6856_v52, %v3075_v54 }
0x1918   :  { %3079 = vrot.lane.b32.xlu0 %v3077_v55, %s7094_s21 }
0x1986   :  { %v3104_v14 = vpop.permute.xlu1 %3103 }
0x1987   :  { %v8262_v57 = vadd.f32 %v3104_v14, %v3096_v56  ;;  %v3337_v14 = vld [vmem:[#allocation2 + $0x12] sm:$0x3] }
0x1989   :  { %6857 = vtanh.f32 %v8262_v57 }
0x198a   :  { %v3080_v59 = vpop.permute.xlu0 %3079 }
0x198b   :  { %v8266_v60 = vadd.f32 %v3080_v59, %v3072_v58 }
0x198d   :  { %6859 = vtanh.f32 %v8266_v60 }
0x1993   :  { %v6858_v61 = vpop.eup %6857 }
0x1994   :  { %3109 = vrot.lane.b32.xlu1 %v6858_v61, %s7093_s28 }
0x1997   :  { %v6860_v62 = vpop.eup %6859 }
0x1998   :  { %3085 = vrot.lane.b32.xlu0 %v6860_v62, %s7093_s28 }
0x1a06   :  { %v3110_v49 = vpop.permute.xlu1 %3109 }
0x1a07   :  { %v3112_v63 = vmul.f32 %v6854_v50, %v3110_v49 }
0x1a09   :  { %3119 = vrot.lane.b32.xlu1 %v3112_v63, %s7094_s21 }
0x1a0a   :  { %v3086_v24 = vpop.permute.xlu0 %3085 }
0x1a0b   :  { %v3088_v2 = vmul.f32 %v6856_v52, %v3086_v24  ;;  %v3415_v52 = vld [vmem:[#allocation3 + $0xe] sm:$0x3] }
0x1a0d   :  { %3114 = vrot.lane.b32.xlu1 %v3088_v2, %s7094_s21 }
0x1a7b   :  { %v3120_v3 = vpop.permute.xlu1 %3119 }
0x1a7c   :  { %3122 = vst.msk [vmem:[#allocation5 + $0x12] sm:$0x3] %vm1618_vm9, %v3120_v3  ;;  %5999 = vmatmul.mubr.msk.f32.vlgmr.msra.gmra.mrb[42].mxu1 %vm1400_vm8, %v3120_v3 }
0x1a7d   :  { %6601 = vmatpush3.bf16.msra.mxu1 %v8206_v6  ;;  %6020 = vmatprep.mubr.msk.f32.mxu1 %vm7090_vm0, %v7091_v1 }
0x1a7e   :  { %6602 = vmatprep.subr.bf16.mxu1 %v7089_v0 }
0x1a7f   :  { %v3115_v33 = vpop.permute.xlu1 %3114 }
0x1a80   :  { %3117 = vst.msk [vmem:[#allocation4 + $0xe] sm:$0x3] %vm1618_vm9, %v3115_v33  ;;  %5988 = vmatmul.mubr.msk.f32.vlgmr.msra.gmra.mrb[26].mxu0 %vm1400_vm8, %v3115_v33 }
0x1a81   :  { %6595 = vmatpush3.bf16.msra.mxu0 %v8217_v7  ;;  %6604 = vmatpush3.bf16.msra.mxu1 %v8220_v11 }
0x1a82   :  { %6596 = vmatprep.subr.bf16.mxu0 %v7089_v0  ;;  %6009 = vmatprep.mubr.msk.f32.mxu0 %vm7090_vm0, %v7091_v1 }
0x1a83   :  { %6611 = vmatprep.subr.bf16.mxu1 %v7089_v0 }
0x1a85   :  { %6598 = vmatpush3.bf16.msra.mxu0 %v8235_v17 }
0x1a86   :  { %6605 = vmatprep.subr.bf16.mxu0 %v7089_v0 }
0x1b4f   :  { %v3274_v53 = vpop.f32.mrb[42].mxu1 }
0x1b50   :  { %v3278_v4 = vadd.f32 %v3274_v53, %v3201_v31  ;;  %v6000_v5 = vpop.f32.mrb[43].mxu1 }
0x1b52   :  { %6861 = vtanh.f32 %v3278_v4  ;;  %v5305_v16 = vmul.f32 -1.442695, %v3278_v4 }
0x1b53   :  { %v3196_v38 = vpop.f32.mrb[26].mxu0 }
0x1b54   :  { %v3200_v45 = vadd.f32 %v3196_v38, %v3123_v40  ;;  %v5989_v12 = vpop.f32.mrb[27].mxu0 }
0x1b56   :  { %6863 = vtanh.f32 %v3200_v45  ;;  %v5304_v18 = vmul.f32 -1.442695, %v3200_v45 }
0x1b57   :  { %6865 = vpow2.f32 %v5305_v16 }
0x1b58   :  { %6867 = vpow2.f32 %v5304_v18 }
0x1b5c   :  { %v6862_v13 = vpop.eup %6861 }
0x1b5d   :  { %3312 = vrot.lane.b32.xlu0 %v6862_v13, %s7093_s28 }
0x1b60   :  { %v6864_v15 = vpop.eup %6863 }
0x1b61   :  { %3288 = vrot.lane.b32.xlu0 %v6864_v15, %s7093_s28  ;;  %v6866_v19 = vpop.eup %6865 }
0x1b62   :  { %v3306_v21 = vadd.f32 1.0, %v6866_v19  ;;  %v6868_v22 = vpop.eup %6867 }
0x1b63   :  { %v3282_v23 = vadd.f32 1.0, %v6868_v22 }
0x1b64   :  { %6869 = vrcp.f32 %v3306_v21 }
0x1b65   :  { %6871 = vrcp.f32 %v3282_v23 }
0x1b6e   :  { %v6870_v26 = vpop.eup %6869 }
0x1b6f   :  { %v6872_v8 = vpop.eup %6871  ;;  %v3310_v29 = vmul.f32 %v6870_v26, %v8262_v57 }
0x1b70   :  { %v3286_v35 = vmul.f32 %v6872_v8, %v8266_v60 }
0x1bcf   :  { %v3313_v28 = vpop.permute.xlu0 %3312 }
0x1bd0   :  { %v3315_v25 = vmul.f32 %v6870_v26, %v3313_v28 }
0x1bd2   :  { %3317 = vrot.lane.b32.xlu1 %v3315_v25, %s7094_s21 }
0x1bd3   :  { %v3289_v9 = vpop.permute.xlu0 %3288 }
0x1bd4   :  { %v3291_v10 = vmul.f32 %v6872_v8, %v3289_v9 }
0x1bd6   :  { %3293 = vrot.lane.b32.xlu0 %v3291_v10, %s7094_s21 }
0x1c44   :  { %v3318_v30 = vpop.permute.xlu1 %3317 }
0x1c45   :  { %v8294_v32 = vadd.f32 %v3318_v30, %v3310_v29  ;;  %v3551_v30 = vld [vmem:[#allocation2 + $0x14] sm:$0x3] }
0x1c47   :  { %6873 = vtanh.f32 %v8294_v32 }
0x1c48   :  { %v3294_v36 = vpop.permute.xlu0 %3293 }
0x1c49   :  { %v8298_v37 = vadd.f32 %v3294_v36, %v3286_v35 }
0x1c4b   :  { %6875 = vtanh.f32 %v8298_v37 }
0x1c51   :  { %v6874_v39 = vpop.eup %6873 }
0x1c52   :  { %3323 = vrot.lane.b32.xlu1 %v6874_v39, %s7093_s28 }
0x1c55   :  { %v6876_v42 = vpop.eup %6875 }
0x1c56   :  { %3299 = vrot.lane.b32.xlu0 %v6876_v42, %s7093_s28 }
0x1cc4   :  { %v3324_v43 = vpop.permute.xlu1 %3323 }
0x1cc5   :  { %v3326_v44 = vmul.f32 %v6870_v26, %v3324_v43 }
0x1cc7   :  { %3333 = vrot.lane.b32.xlu1 %v3326_v44, %s7094_s21 }
0x1cc8   :  { %v3300_v46 = vpop.permute.xlu0 %3299 }
0x1cc9   :  { %v3302_v50 = vmul.f32 %v6872_v8, %v3300_v46  ;;  %v3629_v8 = vld [vmem:[#allocation3 + $0xc] sm:$0x3] }
0x1ccb   :  { %3328 = vrot.lane.b32.xlu1 %v3302_v50, %s7094_s21 }
0x1d39   :  { %v3334_v47 = vpop.permute.xlu1 %3333 }
0x1d3a   :  { %3336 = vst.msk [vmem:[#allocation5 + $0x10] sm:$0x3] %vm1618_vm9, %v3334_v47  ;;  %6021 = vmatmul.mubr.msk.f32.vlgmr.msra.gmra.mrb[44].mxu1 %vm1400_vm8, %v3334_v47 }
0x1d3b   :  { %6613 = vmatpush3.bf16.msra.mxu1 %v8206_v6  ;;  %6042 = vmatprep.mubr.msk.f32.mxu1 %vm7090_vm0, %v7091_v1 }
0x1d3c   :  { %6614 = vmatprep.subr.bf16.mxu1 %v7089_v0 }
0x1d3d   :  { %v3329_v51 = vpop.permute.xlu1 %3328 }
0x1d3e   :  { %3331 = vst.msk [vmem:[#allocation4 + $0x10] sm:$0x3] %vm1618_vm9, %v3329_v51  ;;  %6010 = vmatmul.mubr.msk.f32.vlgmr.msra.gmra.mrb[28].mxu0 %vm1400_vm8, %v3329_v51 }
0x1d3f   :  { %6607 = vmatpush3.bf16.msra.mxu0 %v8217_v7  ;;  %6616 = vmatpush3.bf16.msra.mxu1 %v8220_v11 }
0x1d40   :  { %6608 = vmatprep.subr.bf16.mxu0 %v7089_v0  ;;  %6031 = vmatprep.mubr.msk.f32.mxu0 %vm7090_vm0, %v7091_v1 }
0x1d41   :  { %6623 = vmatprep.subr.bf16.mxu1 %v7089_v0 }
0x1d43   :  { %6610 = vmatpush3.bf16.msra.mxu0 %v8235_v17 }
0x1d44   :  { %6617 = vmatprep.subr.bf16.mxu0 %v7089_v0 }
0x1e0d   :  { %v3488_v54 = vpop.f32.mrb[44].mxu1 }
0x1e0e   :  { %v3492_v55 = vadd.f32 %v3488_v54, %v3415_v52  ;;  %v6022_v56 = vpop.f32.mrb[45].mxu1 }
0x1e10   :  { %6877 = vtanh.f32 %v3492_v55  ;;  %v5309_v62 = vmul.f32 -1.442695, %v3492_v55 }
0x1e11   :  { %v3410_v57 = vpop.f32.mrb[28].mxu0 }
0x1e12   :  { %v3414_v58 = vadd.f32 %v3410_v57, %v3337_v14  ;;  %v6011_v59 = vpop.f32.mrb[29].mxu0 }
0x1e14   :  { %6879 = vtanh.f32 %v3414_v58  ;;  %v5308_v49 = vmul.f32 -1.442695, %v3414_v58 }
0x1e15   :  { %6881 = vpow2.f32 %v5309_v62 }
0x1e16   :  { %6883 = vpow2.f32 %v5308_v49 }
0x1e1a   :  { %v6878_v60 = vpop.eup %6877 }
0x1e1b   :  { %3526 = vrot.lane.b32.xlu0 %v6878_v60, %s7093_s28 }
0x1e1e   :  { %v6880_v61 = vpop.eup %6879 }
0x1e1f   :  { %3502 = vrot.lane.b32.xlu0 %v6880_v61, %s7093_s28  ;;  %v6882_v63 = vpop.eup %6881 }
0x1e20   :  { %v3520_v24 = vadd.f32 1.0, %v6882_v63  ;;  %v6884_v2 = vpop.eup %6883 }
0x1e21   :  { %v3496_v3 = vadd.f32 1.0, %v6884_v2 }
0x1e22   :  { %6885 = vrcp.f32 %v3520_v24 }
0x1e23   :  { %6887 = vrcp.f32 %v3496_v3 }
0x1e2c   :  { %v6886_v33 = vpop.eup %6885 }
0x1e2d   :  { %v6888_v4 = vpop.eup %6887  ;;  %v3524_v38 = vmul.f32 %v6886_v33, %v8294_v32 }
0x1e2e   :  { %v3500_v13 = vmul.f32 %v6888_v4, %v8298_v37 }
0x1e8d   :  { %v3527_v31 = vpop.permute.xlu0 %3526 }
0x1e8e   :  { %v3529_v53 = vmul.f32 %v6886_v33, %v3527_v31 }
0x1e90   :  { %3531 = vrot.lane.b32.xlu1 %v3529_v53, %s7094_s21 }
0x1e91   :  { %v3503_v5 = vpop.permute.xlu0 %3502 }
0x1e92   :  { %v3505_v40 = vmul.f32 %v6888_v4, %v3503_v5 }
0x1e94   :  { %3507 = vrot.lane.b32.xlu0 %v3505_v40, %s7094_s21 }
0x1f02   :  { %v3532_v45 = vpop.permute.xlu1 %3531 }
0x1f03   :  { %v8326_v12 = vadd.f32 %v3532_v45, %v3524_v38  ;;  %v3765_v45 = vld [vmem:[#allocation2 + $0x16] sm:$0x3] }
0x1f05   :  { %6889 = vtanh.f32 %v8326_v12 }
0x1f06   :  { %v3508_v15 = vpop.permute.xlu0 %3507 }
0x1f07   :  { %v8330_v16 = vadd.f32 %v3508_v15, %v3500_v13 }
0x1f09   :  { %6891 = vtanh.f32 %v8330_v16 }
0x1f0f   :  { %v6890_v18 = vpop.eup %6889 }
0x1f10   :  { %3537 = vrot.lane.b32.xlu1 %v6890_v18, %s7093_s28 }
0x1f13   :  { %v6892_v19 = vpop.eup %6891 }
0x1f14   :  { %3513 = vrot.lane.b32.xlu0 %v6892_v19, %s7093_s28 }
0x1f82   :  { %v3538_v21 = vpop.permute.xlu1 %3537 }
0x1f83   :  { %v3540_v22 = vmul.f32 %v6886_v33, %v3538_v21 }
0x1f85   :  { %3547 = vrot.lane.b32.xlu1 %v3540_v22, %s7094_s21 }
0x1f86   :  { %v3514_v23 = vpop.permute.xlu0 %3513 }
0x1f87   :  { %v3516_v26 = vmul.f32 %v6888_v4, %v3514_v23  ;;  %v3843_v4 = vld [vmem:[#allocation3 + $0xa] sm:$0x3] }
0x1f89   :  { %3542 = vrot.lane.b32.xlu1 %v3516_v26, %s7094_s21 }
0x1ff7   :  { %v3548_v28 = vpop.permute.xlu1 %3547 }
0x1ff8   :  { %3550 = vst.msk [vmem:[#allocation5 + $0xe] sm:$0x3] %vm1618_vm9, %v3548_v28  ;;  %6043 = vmatmul.mubr.msk.f32.vlgmr.msra.gmra.mrb[46].mxu1 %vm1400_vm8, %v3548_v28 }
0x1ff9   :  { %6625 = vmatpush3.bf16.msra.mxu1 %v8206_v6  ;;  %6064 = vmatprep.mubr.msk.f32.mxu1 %vm7090_vm0, %v7091_v1 }
0x1ffa   :  { %6626 = vmatprep.subr.bf16.mxu1 %v7089_v0 }
0x1ffb   :  { %v3543_v25 = vpop.permute.xlu1 %3542 }
0x1ffc   :  { %3545 = vst.msk [vmem:[#allocation4 + $0x12] sm:$0x3] %vm1618_vm9, %v3543_v25  ;;  %6032 = vmatmul.mubr.msk.f32.vlgmr.msra.gmra.mrb[30].mxu0 %vm1400_vm8, %v3543_v25 }
0x1ffd   :  { %6619 = vmatpush3.bf16.msra.mxu0 %v8217_v7  ;;  %6628 = vmatpush3.bf16.msra.mxu1 %v8220_v11 }
0x1ffe   :  { %6620 = vmatprep.subr.bf16.mxu0 %v7089_v0  ;;  %6053 = vmatprep.mubr.msk.f32.mxu0 %vm7090_vm0, %v7091_v1 }
0x1fff   :  { %6635 = vmatprep.subr.bf16.mxu1 %v7089_v0 }
0x2001   :  { %6622 = vmatpush3.bf16.msra.mxu0 %v8235_v17 }
0x2002   :  { %6629 = vmatprep.subr.bf16.mxu0 %v7089_v0 }
0x20cb   :  { %v3702_v9 = vpop.f32.mrb[46].mxu1 }
0x20cc   :  { %v3706_v10 = vadd.f32 %v3702_v9, %v3629_v8  ;;  %v6044_v29 = vpop.f32.mrb[47].mxu1 }
0x20ce   :  { %6893 = vtanh.f32 %v3706_v10  ;;  %v5313_v42 = vmul.f32 -1.442695, %v3706_v10 }
0x20cf   :  { %v3624_v32 = vpop.f32.mrb[30].mxu0 }
0x20d0   :  { %v3628_v35 = vadd.f32 %v3624_v32, %v3551_v30  ;;  %v6033_v36 = vpop.f32.mrb[31].mxu0 }
0x20d2   :  { %6895 = vtanh.f32 %v3628_v35  ;;  %v5312_v43 = vmul.f32 -1.442695, %v3628_v35 }
0x20d3   :  { %6897 = vpow2.f32 %v5313_v42 }
0x20d4   :  { %6899 = vpow2.f32 %v5312_v43 }
0x20d8   :  { %v6894_v37 = vpop.eup %6893 }
0x20d9   :  { %3740 = vrot.lane.b32.xlu0 %v6894_v37, %s7093_s28 }
0x20dc   :  { %v6896_v39 = vpop.eup %6895 }
0x20dd   :  { %3716 = vrot.lane.b32.xlu0 %v6896_v39, %s7093_s28  ;;  %v6898_v44 = vpop.eup %6897 }
0x20de   :  { %v3734_v46 = vadd.f32 1.0, %v6898_v44  ;;  %v6900_v50 = vpop.eup %6899 }
0x20df   :  { %v3710_v47 = vadd.f32 1.0, %v6900_v50 }
0x20e0   :  { %6901 = vrcp.f32 %v3734_v46 }
0x20e1   :  { %6903 = vrcp.f32 %v3710_v47 }
0x20ea   :  { %v6902_v51 = vpop.eup %6901 }
0x20eb   :  { %v6904_v55 = vpop.eup %6903  ;;  %v3738_v57 = vmul.f32 %v6902_v51, %v8326_v12 }
0x20ec   :  { %v3714_v60 = vmul.f32 %v6904_v55, %v8330_v16 }
0x214b   :  { %v3741_v52 = vpop.permute.xlu0 %3740 }
0x214c   :  { %v3743_v54 = vmul.f32 %v6902_v51, %v3741_v52 }
0x214e   :  { %3745 = vrot.lane.b32.xlu1 %v3743_v54, %s7094_s21 }
0x214f   :  { %v3717_v56 = vpop.permute.xlu0 %3716 }
0x2150   :  { %v3719_v14 = vmul.f32 %v6904_v55, %v3717_v56 }
0x2152   :  { %3721 = vrot.lane.b32.xlu0 %v3719_v14, %s7094_s21 }
0x21c0   :  { %v3746_v58 = vpop.permute.xlu1 %3745 }
0x21c1   :  { %v8358_v59 = vadd.f32 %v3746_v58, %v3738_v57  ;;  %v3979_v58 = vld [vmem:[#allocation2 + $0x18] sm:$0x3] }
0x21c3   :  { %6905 = vtanh.f32 %v8358_v59 }
0x21c4   :  { %v3722_v61 = vpop.permute.xlu0 %3721 }
0x21c5   :  { %v8362_v62 = vadd.f32 %v3722_v61, %v3714_v60 }
0x21c7   :  { %6907 = vtanh.f32 %v8362_v62 }
0x21cd   :  { %v6906_v49 = vpop.eup %6905 }
0x21ce   :  { %3751 = vrot.lane.b32.xlu1 %v6906_v49, %s7093_s28 }
0x21d1   :  { %v6908_v63 = vpop.eup %6907 }
0x21d2   :  { %3727 = vrot.lane.b32.xlu0 %v6908_v63, %s7093_s28 }
0x2240   :  { %v3752_v24 = vpop.permute.xlu1 %3751 }
0x2241   :  { %v3754_v2 = vmul.f32 %v6902_v51, %v3752_v24 }
0x2243   :  { %3761 = vrot.lane.b32.xlu1 %v3754_v2, %s7094_s21 }
0x2244   :  { %v3728_v3 = vpop.permute.xlu0 %3727 }
0x2245   :  { %v3730_v33 = vmul.f32 %v6904_v55, %v3728_v3  ;;  %v4057_v55 = vld [vmem:[#allocation3 + $0x8] sm:$0x3] }
0x2247   :  { %3756 = vrot.lane.b32.xlu1 %v3730_v33, %s7094_s21 }
0x22b5   :  { %v3762_v31 = vpop.permute.xlu1 %3761 }
0x22b6   :  { %3764 = vst.msk [vmem:[#allocation5 + $0xc] sm:$0x3] %vm1618_vm9, %v3762_v31  ;;  %6065 = vmatmul.mubr.msk.f32.vlgmr.msra.gmra.mrb[48].mxu1 %vm1400_vm8, %v3762_v31 }
0x22b7   :  { %6637 = vmatpush3.bf16.msra.mxu1 %v8206_v6  ;;  %6086 = vmatprep.mubr.msk.f32.mxu1 %vm7090_vm0, %v7091_v1 }
0x22b8   :  { %6638 = vmatprep.subr.bf16.mxu1 %v7089_v0 }
0x22b9   :  { %v3757_v53 = vpop.permute.xlu1 %3756 }
0x22ba   :  { %3759 = vst.msk [vmem:[#allocation4 + $0x14] sm:$0x3] %vm1618_vm9, %v3757_v53  ;;  %6054 = vmatmul.mubr.msk.f32.vlgmr.msra.gmra.mrb[32].mxu0 %vm1400_vm8, %v3757_v53 }
0x22bb   :  { %6631 = vmatpush3.bf16.msra.mxu0 %v8217_v7  ;;  %6640 = vmatpush3.bf16.msra.mxu1 %v8220_v11 }
0x22bc   :  { %6632 = vmatprep.subr.bf16.mxu0 %v7089_v0  ;;  %6075 = vmatprep.mubr.msk.f32.mxu0 %vm7090_vm0, %v7091_v1 }
0x22bd   :  { %6647 = vmatprep.subr.bf16.mxu1 %v7089_v0 }
0x22bf   :  { %6634 = vmatpush3.bf16.msra.mxu0 %v8235_v17 }
0x22c0   :  { %6641 = vmatprep.subr.bf16.mxu0 %v7089_v0 }
0x2389   :  { %v3916_v5 = vpop.f32.mrb[48].mxu1 }
0x238a   :  { %v3920_v40 = vadd.f32 %v3916_v5, %v3843_v4  ;;  %v6066_v38 = vpop.f32.mrb[49].mxu1 }
0x238c   :  { %6909 = vtanh.f32 %v3920_v40  ;;  %v5317_v19 = vmul.f32 -1.442695, %v3920_v40 }
0x238d   :  { %v3838_v12 = vpop.f32.mrb[32].mxu0 }
0x238e   :  { %v3842_v13 = vadd.f32 %v3838_v12, %v3765_v45  ;;  %v6055_v15 = vpop.f32.mrb[33].mxu0 }
0x2390   :  { %6911 = vtanh.f32 %v3842_v13  ;;  %v5316_v21 = vmul.f32 -1.442695, %v3842_v13 }
0x2391   :  { %6913 = vpow2.f32 %v5317_v19 }
0x2392   :  { %6915 = vpow2.f32 %v5316_v21 }
0x2396   :  { %v6910_v16 = vpop.eup %6909 }
0x2397   :  { %3954 = vrot.lane.b32.xlu0 %v6910_v16, %s7093_s28 }
0x239a   :  { %v6912_v18 = vpop.eup %6911 }
0x239b   :  { %3930 = vrot.lane.b32.xlu0 %v6912_v18, %s7093_s28  ;;  %v6914_v22 = vpop.eup %6913 }
0x239c   :  { %v3948_v23 = vadd.f32 1.0, %v6914_v22  ;;  %v6916_v26 = vpop.eup %6915 }
0x239d   :  { %v3924_v28 = vadd.f32 1.0, %v6916_v26 }
0x239e   :  { %6917 = vrcp.f32 %v3948_v23 }
0x239f   :  { %6919 = vrcp.f32 %v3924_v28 }
0x23a8   :  { %v6918_v25 = vpop.eup %6917 }
0x23a9   :  { %v6920_v10 = vpop.eup %6919  ;;  %v3952_v32 = vmul.f32 %v6918_v25, %v8358_v59 }
0x23aa   :  { %v3928_v37 = vmul.f32 %v6920_v10, %v8362_v62 }
0x2409   :  { %v3955_v8 = vpop.permute.xlu0 %3954 }
0x240a   :  { %v3957_v9 = vmul.f32 %v6918_v25, %v3955_v8 }
0x240c   :  { %3959 = vrot.lane.b32.xlu1 %v3957_v9, %s7094_s21 }
0x240d   :  { %v3931_v29 = vpop.permute.xlu0 %3930 }
0x240e   :  { %v3933_v30 = vmul.f32 %v6920_v10, %v3931_v29 }
0x2410   :  { %3935 = vrot.lane.b32.xlu0 %v3933_v30, %s7094_s21 }
0x247e   :  { %v3960_v35 = vpop.permute.xlu1 %3959 }
0x247f   :  { %v8390_v36 = vadd.f32 %v3960_v35, %v3952_v32  ;;  %v4193_v32 = vld [vmem:[#allocation2 + $0x1a] sm:$0x3] }
0x2481   :  { %6921 = vtanh.f32 %v8390_v36 }
0x2482   :  { %v3936_v39 = vpop.permute.xlu0 %3935 }
0x2483   :  { %v8394_v42 = vadd.f32 %v3936_v39, %v3928_v37 }
0x2485   :  { %6923 = vtanh.f32 %v8394_v42 }
0x248b   :  { %v6922_v43 = vpop.eup %6921 }
0x248c   :  { %3965 = vrot.lane.b32.xlu1 %v6922_v43, %s7093_s28 }
0x248f   :  { %v6924_v44 = vpop.eup %6923 }
0x2490   :  { %3941 = vrot.lane.b32.xlu0 %v6924_v44, %s7093_s28 }
0x24fe   :  { %v3966_v46 = vpop.permute.xlu1 %3965 }
0x24ff   :  { %v3968_v50 = vmul.f32 %v6918_v25, %v3966_v46 }
0x2501   :  { %3975 = vrot.lane.b32.xlu1 %v3968_v50, %s7094_s21 }
0x2502   :  { %v3942_v47 = vpop.permute.xlu0 %3941 }
0x2503   :  { %v3944_v51 = vmul.f32 %v6920_v10, %v3942_v47 }
0x2505   :  { %3970 = vrot.lane.b32.xlu1 %v3944_v51, %s7094_s21 }
0x2573   :  { %v3976_v52 = vpop.permute.xlu1 %3975 }
0x2574   :  { %3978 = vst.msk [vmem:[#allocation5 + $0xa] sm:$0x3] %vm1618_vm9, %v3976_v52  ;;  %6087 = vmatmul.mubr.msk.f32.vlgmr.msra.gmra.mrb[50].mxu1 %vm1400_vm8, %v3976_v52 }
0x2575   :  { %6649 = vmatpush3.bf16.msra.mxu1 %v8206_v6  ;;  %6108 = vmatprep.mubr.msk.f32.mxu1 %vm7090_vm0, %v7091_v1 }
0x2576   :  { %6650 = vmatprep.subr.bf16.mxu1 %v7089_v0 }
0x2577   :  { %v3971_v54 = vpop.permute.xlu1 %3970 }
0x2578   :  { %3973 = vst.msk [vmem:[#allocation4 + $0x16] sm:$0x3] %vm1618_vm9, %v3971_v54  ;;  %6076 = vmatmul.mubr.msk.f32.vlgmr.msra.gmra.mrb[34].mxu0 %vm1400_vm8, %v3971_v54 }
0x2579   :  { %6643 = vmatpush3.bf16.msra.mxu0 %v8217_v7  ;;  %6652 = vmatpush3.bf16.msra.mxu1 %v8220_v11 }
0x257a   :  { %6644 = vmatprep.subr.bf16.mxu0 %v7089_v0  ;;  %6097 = vmatprep.mubr.msk.f32.mxu0 %vm7090_vm0, %v7091_v1 }
0x257b   :  { %6659 = vmatprep.subr.bf16.mxu1 %v7089_v0 }
0x257d   :  { %6646 = vmatpush3.bf16.msra.mxu0 %v8235_v17 }
0x257e   :  { %6653 = vmatprep.subr.bf16.mxu0 %v7089_v0 }
0x2647   :  { %v4130_v56 = vpop.f32.mrb[50].mxu1 }
0x2648   :  { %v4134_v14 = vadd.f32 %v4130_v56, %v4057_v55  ;;  %v6088_v57 = vpop.f32.mrb[51].mxu1 }
0x264a   :  { %6925 = vtanh.f32 %v4134_v14  ;;  %v5321_v63 = vmul.f32 -1.442695, %v4134_v14 }
0x264b   :  { %v4052_v59 = vpop.f32.mrb[34].mxu0 }
0x264c   :  { %v4056_v60 = vadd.f32 %v4052_v59, %v3979_v58  ;;  %v6077_v61 = vpop.f32.mrb[35].mxu0 }
0x264e   :  { %6927 = vtanh.f32 %v4056_v60  ;;  %v5320_v24 = vmul.f32 -1.442695, %v4056_v60 }
0x264f   :  { %6929 = vpow2.f32 %v5321_v63 }
0x2650   :  { %6931 = vpow2.f32 %v5320_v24 }
0x2654   :  { %v6926_v62 = vpop.eup %6925 }
0x2655   :  { %4168 = vrot.lane.b32.xlu0 %v6926_v62, %s7093_s28 }
0x2658   :  { %v6928_v49 = vpop.eup %6927 }
0x2659   :  { %4144 = vrot.lane.b32.xlu0 %v6928_v49, %s7093_s28  ;;  %v6930_v2 = vpop.eup %6929 }
0x265a   :  { %v4162_v3 = vadd.f32 1.0, %v6930_v2  ;;  %v6932_v33 = vpop.eup %6931 }
0x265b   :  { %v4138_v31 = vadd.f32 1.0, %v6932_v33 }
0x265c   :  { %6933 = vrcp.f32 %v4162_v3 }
0x265d   :  { %6935 = vrcp.f32 %v4138_v31  ;;  %v4485_v31 = vld [vmem:[#allocation3 + $0x4] sm:$0x3] }
0x2666   :  { %v6934_v53 = vpop.eup %6933 }
0x2667   :  { %v6936_v40 = vpop.eup %6935  ;;  %v4166_v12 = vmul.f32 %v6934_v53, %v8390_v36 }
0x2668   :  { %v4142_v16 = vmul.f32 %v6936_v40, %v8394_v42 }
0x26c7   :  { %v4169_v4 = vpop.permute.xlu0 %4168 }
0x26c8   :  { %v4171_v5 = vmul.f32 %v6934_v53, %v4169_v4 }
0x26ca   :  { %4173 = vrot.lane.b32.xlu1 %v4171_v5, %s7094_s21 }
0x26cb   :  { %v4145_v38 = vpop.permute.xlu0 %4144 }
0x26cc   :  { %v4147_v45 = vmul.f32 %v6936_v40, %v4145_v38 }
0x26ce   :  { %4149 = vrot.lane.b32.xlu0 %v4147_v45, %s7094_s21 }
0x273c   :  { %v4174_v13 = vpop.permute.xlu1 %4173 }
0x273d   :  { %v8422_v15 = vadd.f32 %v4174_v13, %v4166_v12 }
0x273f   :  { %6937 = vtanh.f32 %v8422_v15 }
0x2740   :  { %v4150_v18 = vpop.permute.xlu0 %4149 }
0x2741   :  { %v8426_v19 = vadd.f32 %v4150_v18, %v4142_v16 }
0x2743   :  { %6939 = vtanh.f32 %v8426_v19 }
0x2749   :  { %v6938_v21 = vpop.eup %6937 }
0x274a   :  { %4179 = vrot.lane.b32.xlu1 %v6938_v21, %s7093_s28 }
0x274d   :  { %v6940_v22 = vpop.eup %6939 }
0x274e   :  { %4155 = vrot.lane.b32.xlu0 %v6940_v22, %s7093_s28 }
0x27bc   :  { %v4180_v23 = vpop.permute.xlu1 %4179 }
0x27bd   :  { %v4182_v26 = vmul.f32 %v6934_v53, %v4180_v23 }
0x27bf   :  { %4189 = vrot.lane.b32.xlu1 %v4182_v26, %s7094_s21 }
0x27c0   :  { %v4156_v28 = vpop.permute.xlu0 %4155 }
0x27c1   :  { %v4158_v25 = vmul.f32 %v6936_v40, %v4156_v28  ;;  %v4407_v40 = vld [vmem:[#allocation2 + $0x1c] sm:$0x3] }
0x27c3   :  { %4184 = vrot.lane.b32.xlu1 %v4158_v25, %s7094_s21 }
0x2831   :  { %v4190_v8 = vpop.permute.xlu1 %4189 }
0x2832   :  { %4192 = vst.msk [vmem:[#allocation5 + $0x8] sm:$0x3] %vm1618_vm9, %v4190_v8  ;;  %6109 = vmatmul.mubr.msk.f32.vlgmr.msra.gmra.mrb[52].mxu1 %vm1400_vm8, %v4190_v8 }
0x2833   :  { %6661 = vmatpush3.bf16.msra.mxu1 %v8206_v6  ;;  %6130 = vmatprep.mubr.msk.f32.mxu1 %vm7090_vm0, %v7091_v1  ;;  %v4271_v6 = vld [vmem:[#allocation3 + $0x6] sm:$0x3] }
0x2834   :  { %6662 = vmatprep.subr.bf16.mxu1 %v7089_v0 }
0x2835   :  { %v4185_v9 = vpop.permute.xlu1 %4184 }
0x2836   :  { %4187 = vst.msk [vmem:[#allocation4 + $0x18] sm:$0x3] %vm1618_vm9, %v4185_v9  ;;  %6098 = vmatmul.mubr.msk.f32.vlgmr.msra.gmra.mrb[36].mxu0 %vm1400_vm8, %v4185_v9 }
0x2837   :  { %6655 = vmatpush3.bf16.msra.mxu0 %v8217_v7  ;;  %6664 = vmatpush3.bf16.msra.mxu1 %v8220_v11 }
0x2838   :  { %6656 = vmatprep.subr.bf16.mxu0 %v7089_v0  ;;  %6119 = vmatprep.mubr.msk.f32.mxu0 %vm7090_vm0, %v7091_v1 }
0x2839   :  { %6671 = vmatprep.subr.bf16.mxu1 %v7089_v0 }
0x283b   :  { %6658 = vmatpush3.bf16.msra.mxu0 %v8235_v17 }
0x283c   :  { %6665 = vmatprep.subr.bf16.mxu0 %v7089_v0 }
0x2905   :  { %v4344_v10 = vpop.f32.mrb[52].mxu1 }
0x2906   :  { %v4348_v29 = vadd.f32 %v4344_v10, %v4271_v6  ;;  %v6110_v30 = vpop.f32.mrb[53].mxu1 }
0x2908   :  { %6941 = vtanh.f32 %v4348_v29  ;;  %v5325_v39 = vmul.f32 -1.442695, %v4348_v29 }
0x2909   :  { %v4266_v7 = vpop.f32.mrb[36].mxu0 }
0x290a   :  { %v4270_v35 = vadd.f32 %v4266_v7, %v4193_v32  ;;  %v6099_v11 = vpop.f32.mrb[37].mxu0 }
0x290b   :  { %v4700_v11 = vld [vmem:[%s8658_s9] sm:$0xff] }
0x290c   :  { %6943 = vtanh.f32 %v4270_v35  ;;  %v5324_v17 = vmul.f32 -1.442695, %v4270_v35 }
0x290d   :  { %6945 = vpow2.f32 %v5325_v39 }
0x290e   :  { %6947 = vpow2.f32 %v5324_v17  ;;  %v4623_v17 = vld [vmem:[%s8657_s8 + $0x8] sm:$0xff] }
0x2912   :  { %v6942_v36 = vpop.eup %6941 }
0x2913   :  { %4382 = vrot.lane.b32.xlu0 %v6942_v36, %s7093_s28  ;;  %v4701_v36 = vld [vmem:[%s8658_s9 + $0x8] sm:$0xff] }
0x2914   :  { %v6672_v39 = vpack.c.bf16 %v4701_v36, %v4700_v11 }
0x2916   :  { %v6944_v37 = vpop.eup %6943 }
0x2917   :  { %4358 = vrot.lane.b32.xlu0 %v6944_v37, %s7093_s28  ;;  %v6946_v42 = vpop.eup %6945  ;;  %v4622_v37 = vld [vmem:[%s8657_s8] sm:$0xff] }
0x2918   :  { %v4376_v43 = vadd.f32 1.0, %v6946_v42  ;;  %v6948_v44 = vpop.eup %6947  ;;  %v4702_v42 = vld [vmem:[%s8658_s9 + $0x10] sm:$0xff] }
0x2919   :  { %v4352_v46 = vadd.f32 1.0, %v6948_v44  ;;  %v6666_v44 = vpack.c.bf16 %v4623_v17, %v4622_v37 }
0x291a   :  { %6949 = vrcp.f32 %v4376_v43  ;;  %v4703_v43 = vld [vmem:[%s8658_s9 + $0x18] sm:$0xff] }
0x291b   :  { %6951 = vrcp.f32 %v4352_v46  ;;  %v6675_v46 = vpack.c.bf16 %v4703_v43, %v4702_v42 }
0x2924   :  { %v6950_v50 = vpop.eup %6949 }
0x2925   :  { %v6952_v52 = vpop.eup %6951  ;;  %v4380_v56 = vmul.f32 %v6950_v50, %v8422_v15 }
0x2926   :  { %v4356_v58 = vmul.f32 %v6952_v52, %v8426_v19 }
0x2985   :  { %v4383_v47 = vpop.permute.xlu0 %4382 }
0x2986   :  { %v4385_v51 = vmul.f32 %v6950_v50, %v4383_v47 }
0x2988   :  { %4387 = vrot.lane.b32.xlu1 %v4385_v51, %s7094_s21  ;;  %v4624_v51 = vld [vmem:[%s8657_s8 + $0x10] sm:$0xff] }
0x2989   :  { %v4359_v54 = vpop.permute.xlu0 %4358 }
0x298a   :  { %v4361_v55 = vmul.f32 %v6952_v52, %v4359_v54 }
0x298c   :  { %4363 = vrot.lane.b32.xlu0 %v4361_v55, %s7094_s21 }
0x29fa   :  { %v4388_v14 = vpop.permute.xlu1 %4387 }
0x29fb   :  { %v4390_v57 = vadd.f32 %v4388_v14, %v4380_v56 }
0x29fd   :  { %6953 = vtanh.f32 %v4390_v57 }
0x29fe   :  { %v4364_v59 = vpop.permute.xlu0 %4363 }
0x29ff   :  { %v4366_v60 = vadd.f32 %v4364_v59, %v4356_v58 }
0x2a01   :  { %6955 = vtanh.f32 %v4366_v60 }
0x2a07   :  { %v6954_v61 = vpop.eup %6953 }
0x2a08   :  { %4393 = vrot.lane.b32.xlu1 %v6954_v61, %s7093_s28 }
0x2a0b   :  { %v6956_v62 = vpop.eup %6955 }
0x2a0c   :  { %4369 = vrot.lane.b32.xlu0 %v6956_v62, %s7093_s28 }
0x2a7a   :  { %v4394_v49 = vpop.permute.xlu1 %4393 }
0x2a7b   :  { %v4396_v63 = vmul.f32 %v6950_v50, %v4394_v49 }
0x2a7d   :  { %4403 = vrot.lane.b32.xlu1 %v4396_v63, %s7094_s21  ;;  %v4621_v63 = vld [vmem:[#allocation2 + $0x1e] sm:$0x3] }
0x2a7e   :  { %v4370_v24 = vpop.permute.xlu0 %4369 }
0x2a7f   :  { %v4372_v2 = vmul.f32 %v6952_v52, %v4370_v24  ;;  %v4625_v52 = vld [vmem:[%s8657_s8 + $0x18] sm:$0xff] }
0x2a80   :  { %v6669_v54 = vpack.c.bf16 %v4625_v52, %v4624_v51 }
0x2a81   :  { %4398 = vrot.lane.b32.xlu1 %v4372_v2, %s7094_s21 }
0x2aef   :  { %v4404_v3 = vpop.permute.xlu1 %4403 }
0x2af0   :  { %4406 = vst.msk [vmem:[#allocation5 + $0x6] sm:$0x3] %vm1618_vm9, %v4404_v3  ;;  %6131 = vmatmul.mubr.msk.f32.vlgmr.msra.gmra.mrb[54].mxu1 %vm1400_vm8, %v4404_v3 }
0x2af1   :  { %6152 = vmatprep.mubr.msk.f32.mxu1 %vm7090_vm0, %v7091_v1  ;;  %6673 = vmatpush3.bf16.msra.mxu1 %v6672_v39 }
0x2af2   :  { %6674 = vmatprep.subr.bf16.mxu1 %v7089_v0 }
0x2af3   :  { %v4399_v33 = vpop.permute.xlu1 %4398 }
0x2af4   :  { %4401 = vst.msk [vmem:[#allocation4 + $0x1a] sm:$0x3] %vm1618_vm9, %v4399_v33  ;;  %6120 = vmatmul.mubr.msk.f32.vlgmr.msra.gmra.mrb[38].mxu0 %vm1400_vm8, %v4399_v33 }
0x2af5   :  { %6141 = vmatprep.mubr.msk.f32.mxu0 %vm7090_vm0, %v7091_v1  ;;  %6667 = vmatpush3.bf16.msra.mxu0 %v6666_v44 }
0x2af6   :  { %6668 = vmatprep.subr.bf16.mxu0 %v7089_v0  ;;  %6676 = vmatpush3.bf16.msra.mxu1 %v6675_v46 }
0x2af7   :  { %6683 = vmatprep.subr.bf16.mxu1 %v7089_v0 }
0x2af9   :  { %6670 = vmatpush3.bf16.msra.mxu0 %v6669_v54 }
0x2afa   :  { %6677 = vmatprep.subr.bf16.mxu0 %v7089_v0 }
0x2bc3   :  { %v4558_v53 = vpop.f32.mrb[54].mxu1 }
0x2bc4   :  { %v4562_v4 = vadd.f32 %v4558_v53, %v4485_v31  ;;  %v6132_v5 = vpop.f32.mrb[55].mxu1 }
0x2bc6   :  { %6957 = vtanh.f32 %v4562_v4  ;;  %v5329_v16 = vmul.f32 -1.442695, %v4562_v4 }
0x2bc7   :  { %v4480_v38 = vpop.f32.mrb[38].mxu0 }
0x2bc8   :  { %v4484_v45 = vadd.f32 %v4480_v38, %v4407_v40  ;;  %v6121_v12 = vpop.f32.mrb[39].mxu0 }
0x2bca   :  { %6959 = vtanh.f32 %v4484_v45  ;;  %v5328_v18 = vmul.f32 -1.442695, %v4484_v45 }
0x2bcb   :  { %6961 = vpow2.f32 %v5329_v16 }
0x2bcc   :  { %6963 = vpow2.f32 %v5328_v18 }
0x2bd0   :  { %v6958_v13 = vpop.eup %6957 }
0x2bd1   :  { %4596 = vrot.lane.b32.xlu0 %v6958_v13, %s7093_s28 }
0x2bd4   :  { %v6960_v15 = vpop.eup %6959 }
0x2bd5   :  { %4572 = vrot.lane.b32.xlu0 %v6960_v15, %s7093_s28  ;;  %v6962_v19 = vpop.eup %6961 }
0x2bd6   :  { %v4590_v21 = vadd.f32 1.0, %v6962_v19  ;;  %v6964_v22 = vpop.eup %6963 }
0x2bd7   :  { %v4566_v23 = vadd.f32 1.0, %v6964_v22 }
0x2bd8   :  { %6965 = vrcp.f32 %v4590_v21 }
0x2bd9   :  { %6967 = vrcp.f32 %v4566_v23 }
0x2be2   :  { %v6966_v26 = vpop.eup %6965 }
0x2be3   :  { %v6968_v8 = vpop.eup %6967  ;;  %v4594_v10 = vmul.f32 %v6966_v26, %v4390_v57 }
0x2be4   :  { %v4570_v32 = vmul.f32 %v6968_v8, %v4366_v60  ;;  %v4699_v60 = vld [vmem:[#allocation3 + $0x2] sm:$0x3] }
0x2c43   :  { %v4597_v28 = vpop.permute.xlu0 %4596 }
0x2c44   :  { %v4599_v25 = vmul.f32 %v6966_v26, %v4597_v28 }
0x2c46   :  { %4601 = vrot.lane.b32.xlu1 %v4599_v25, %s7094_s21 }
0x2c47   :  { %v4573_v9 = vpop.permute.xlu0 %4572 }
0x2c48   :  { %v4575_v6 = vmul.f32 %v6968_v8, %v4573_v9 }
0x2c4a   :  { %4577 = vrot.lane.b32.xlu0 %v4575_v6, %s7094_s21 }
0x2cb8   :  { %v4602_v29 = vpop.permute.xlu1 %4601 }
0x2cb9   :  { %v8471_v30 = vadd.f32 %v4602_v29, %v4594_v10 }
0x2cbb   :  { %6969 = vtanh.f32 %v8471_v30 }
0x2cbc   :  { %v4578_v7 = vpop.permute.xlu0 %4577 }
0x2cbd   :  { %v8474_v35 = vadd.f32 %v4578_v7, %v4570_v32 }
0x2cbf   :  { %6971 = vtanh.f32 %v8474_v35 }
0x2cc5   :  { %v6970_v50 = vpop.eup %6969 }
0x2cc6   :  { %4607 = vrot.lane.b32.xlu1 %v6970_v50, %s7093_s28 }
0x2cc9   :  { %v6972_v47 = vpop.eup %6971 }
0x2cca   :  { %4583 = vrot.lane.b32.xlu0 %v6972_v47, %s7093_s28 }
0x2d38   :  { %v4608_v55 = vpop.permute.xlu1 %4607 }
0x2d39   :  { %v4610_v56 = vmul.f32 %v6966_v26, %v4608_v55 }
0x2d3b   :  { %4617 = vrot.lane.b32.xlu1 %v4610_v56, %s7094_s21 }
0x2d3c   :  { %v4584_v14 = vpop.permute.xlu0 %4583 }
0x2d3d   :  { %v4586_v57 = vmul.f32 %v6968_v8, %v4584_v14 }
0x2d3f   :  { %4612 = vrot.lane.b32.xlu1 %v4586_v57, %s7094_s21 }
0x2dad   :  { %v4618_v58 = vpop.permute.xlu1 %4617 }
0x2dae   :  { %4620 = vst.msk [vmem:[#allocation5 + $0x4] sm:$0x3] %vm1618_vm9, %v4618_v58  ;;  %6153 = vmatmul.mubr.msk.f32.vlgmr.msra.gmra.mrb[56].mxu1 %vm1400_vm8, %v4618_v58 }
0x2daf   :  { %6685 = vmatpush3.bf16.msra.mxu1 %v6672_v39  ;;  %6174 = vmatprep.mubr.msk.f32.mxu1 %vm7090_vm0, %v7091_v1  ;;  %v4835_v39 = vld [vmem:[#allocation2 + $0x20] sm:$0x3] }
0x2db0   :  { %6686 = vmatprep.subr.bf16.mxu1 %v7089_v0 }
0x2db1   :  { %v4613_v59 = vpop.permute.xlu1 %4612 }
0x2db2   :  { %4615 = vst.msk [vmem:[#allocation4 + $0x1c] sm:$0x3] %vm1618_vm9, %v4613_v59  ;;  %6142 = vmatmul.mubr.msk.f32.vlgmr.msra.gmra.mrb[40].mxu0 %vm1400_vm8, %v4613_v59 }
0x2db3   :  { %6679 = vmatpush3.bf16.msra.mxu0 %v6666_v44  ;;  %6688 = vmatpush3.bf16.msra.mxu1 %v6675_v46 }
0x2db4   :  { %6680 = vmatprep.subr.bf16.mxu0 %v7089_v0  ;;  %6163 = vmatprep.mubr.msk.f32.mxu0 %vm7090_vm0, %v7091_v1 }
0x2db7   :  { %6682 = vmatpush3.bf16.msra.mxu0 %v6669_v54 }
0x2db8   :  { %6689 = vmatprep.subr.bf16.mxu0 %v7089_v0 }
0x2e81   :  { %v4772_v61 = vpop.f32.mrb[56].mxu1 }
0x2e82   :  { %v4776_v62 = vadd.f32 %v4772_v61, %v4699_v60  ;;  %v6154_v49 = vpop.f32.mrb[57].mxu1 }
0x2e84   :  { %6973 = vtanh.f32 %v4776_v62  ;;  %v5333_v53 = vmul.f32 -1.442695, %v4776_v62 }
0x2e85   :  { %v4694_v24 = vpop.f32.mrb[40].mxu0 }
0x2e86   :  { %v4698_v2 = vadd.f32 %v4694_v24, %v4621_v63  ;;  %v6143_v3 = vpop.f32.mrb[41].mxu0 }
0x2e88   :  { %6975 = vtanh.f32 %v4698_v2  ;;  %v5332_v4 = vmul.f32 -1.442695, %v4698_v2 }
0x2e89   :  { %6977 = vpow2.f32 %v5333_v53  ;;  %v5056_v53 = vld [vmem:[#allocation5 + $0x10] sm:$0xff] }
0x2e8a   :  { %6979 = vpow2.f32 %v5332_v4  ;;  %v5058_v4 = vld [vmem:[#allocation5 + $0x20] sm:$0xff] }
0x2e8e   :  { %v6974_v33 = vpop.eup %6973 }
0x2e8f   :  { %4810 = vrot.lane.b32.xlu0 %v6974_v33, %s7093_s28 }
0x2e92   :  { %v6976_v31 = vpop.eup %6975 }
0x2e93   :  { %4786 = vrot.lane.b32.xlu0 %v6976_v31, %s7093_s28  ;;  %v6978_v5 = vpop.eup %6977  ;;  %v5055_v31 = vld [vmem:[#allocation5 + $0x8] sm:$0xff] }
0x2e94   :  { %v4804_v40 = vadd.f32 1.0, %v6978_v5  ;;  %v6980_v38 = vpop.eup %6979  ;;  %v213_v5 = vmul.f32 %v7306_v27, %v7306_v27 }
0x2e95   :  { %v4780_v45 = vadd.f32 1.0, %v6980_v38  ;;  %v216_v38 = vmul.f32 %v7336_v48, %v7336_v48 }
0x2e96   :  { %6981 = vrcp.f32 %v4804_v40  ;;  %v214_v40 = vmul.f32 %v7316_v34, %v7316_v34 }
0x2e97   :  { %6983 = vrcp.f32 %v4780_v45 }
0x2ea0   :  { %v6982_v12 = vpop.eup %6981 }
0x2ea1   :  { %v6984_v16 = vpop.eup %6983  ;;  %v4808_v21 = vmul.f32 %v6982_v12, %v8471_v30 }
0x2ea2   :  { %v4784_v26 = vmul.f32 %v6984_v16, %v8474_v35  ;;  %v4913_v35 = vld [vmem:[#allocation3] sm:$0x3] }
0x2f01   :  { %v4811_v13 = vpop.permute.xlu0 %4810 }
0x2f02   :  { %v4813_v15 = vmul.f32 %v6982_v12, %v4811_v13  ;;  %v5084_v13 = vld [vmem:[%s8659_s10] sm:$0xff] }
0x2f04   :  { %4815 = vrot.lane.b32.xlu1 %v4813_v15, %s7094_s21  ;;  %v5085_v15 = vld [vmem:[%s8659_s10 + $0x8] sm:$0xff] }
0x2f05   :  { %v4787_v18 = vpop.permute.xlu0 %4786 }
0x2f06   :  { %v4789_v19 = vmul.f32 %v6984_v16, %v4787_v18  ;;  %v6690_v18 = vpack.c.bf16 %v5085_v15, %v5084_v13 }
0x2f08   :  { %4791 = vrot.lane.b32.xlu0 %v4789_v19, %s7094_s21  ;;  %v5087_v19 = vld [vmem:[%s8659_s10 + $0x18] sm:$0xff] }
0x2f76   :  { %v4816_v22 = vpop.permute.xlu1 %4815 }
0x2f77   :  { %v4818_v23 = vadd.f32 %v4816_v22, %v4808_v21  ;;  %v5088_v22 = vld [vmem:[%s8659_s10 + $0x20] sm:$0xff] }
0x2f79   :  { %6985 = vtanh.f32 %v4818_v23 }
0x2f7a   :  { %v4792_v28 = vpop.permute.xlu0 %4791 }
0x2f7b   :  { %v4794_v25 = vadd.f32 %v4792_v28, %v4784_v26 }
0x2f7d   :  { %6987 = vtanh.f32 %v4794_v25 }
0x2f83   :  { %v6986_v8 = vpop.eup %6985 }
0x2f84   :  { %4821 = vrot.lane.b32.xlu1 %v6986_v8, %s7093_s28  ;;  %v5091_v8 = vld [vmem:[%s8659_s10 + $0x38] sm:$0xff] }
0x2f87   :  { %v6988_v9 = vpop.eup %6987 }
0x2f88   :  { %4797 = vrot.lane.b32.xlu0 %v6988_v9, %s7093_s28 }
0x2ff6   :  { %v4822_v6 = vpop.permute.xlu1 %4821 }
0x2ff7   :  { %v4824_v10 = vmul.f32 %v6982_v12, %v4822_v6 }
0x2ff9   :  { %4831 = vrot.lane.b32.xlu1 %v4824_v10, %s7094_s21 }
0x2ffa   :  { %v4798_v29 = vpop.permute.xlu0 %4797 }
0x2ffb   :  { %v4800_v30 = vmul.f32 %v6984_v16, %v4798_v29  ;;  %v5086_v16 = vld [vmem:[%s8659_s10 + $0x10] sm:$0xff] }
0x2ffc   :  { %v6693_v21 = vpack.c.bf16 %v5087_v19, %v5086_v16 }
0x2ffd   :  { %4826 = vrot.lane.b32.xlu1 %v4800_v30, %s7094_s21 }
0x306b   :  { %v4832_v32 = vpop.permute.xlu1 %4831 }
0x306c   :  { %4834 = vst.msk [vmem:[#allocation5 + $0x2] sm:$0x3] %vm1618_vm9, %v4832_v32  ;;  %6175 = vmatmul.mubr.msk.f32.vlgmr.msra.gmra.mrb[58].mxu1 %vm1400_vm8, %v4832_v32 }
0x306f   :  { %v4827_v7 = vpop.permute.xlu1 %4826 }
0x3070   :  { %4829 = vst.msk [vmem:[#allocation4 + $0x1e] sm:$0x3] %vm1618_vm9, %v4827_v7  ;;  %6164 = vmatmul.mubr.msk.f32.vlgmr.msra.gmra.mrb[42].mxu0 %vm1400_vm8, %v4827_v7 }
0x3071   :  { %6193 = vmatprep.mubr.msk.f32.mxu0 %vm7090_vm0, %v7091_v1  ;;  %6691 = vmatpush3.bf16.msra.mxu0 %v6690_v18 }
0x3072   :  { %6692 = vmatprep.subr.bf16.mxu0 %v7089_v0 }
0x3075   :  { %6694 = vmatpush3.bf16.msra.mxu0 %v6693_v21 }
0x3076   :  { %6695 = vmatprep.subr.bf16.mxu0 %v7089_v0 }
0x313f   :  { %v4986_v11 = vpop.f32.mrb[58].mxu1 }
0x3140   :  { %v4990_v36 = vadd.f32 %v4986_v11, %v4913_v35  ;;  %v6176_v37 = vpop.f32.mrb[59].mxu1 }
0x3142   :  { %6989 = vtanh.f32 %v4990_v36  ;;  %v5337_v50 = vmul.f32 -1.442695, %v4990_v36 }
0x3143   :  { %v4908_v17 = vpop.f32.mrb[42].mxu0 }
0x3144   :  { %v4912_v42 = vadd.f32 %v4908_v17, %v4835_v39  ;;  %v6165_v43 = vpop.f32.mrb[43].mxu0 }
0x3146   :  { %6991 = vtanh.f32 %v4912_v42  ;;  %v5336_v47 = vmul.f32 -1.442695, %v4912_v42 }
0x3147   :  { %6993 = vpow2.f32 %v5337_v50  ;;  %v215_v50 = vmul.f32 %v7326_v41, %v7326_v41 }
0x3148   :  { %6995 = vpow2.f32 %v5336_v47 }
0x314c   :  { %v6990_v44 = vpop.eup %6989 }
0x314d   :  { %5024 = vrot.lane.b32.xlu0 %v6990_v44, %s7093_s28 }
0x3150   :  { %v6992_v46 = vpop.eup %6991 }
0x3151   :  { %5000 = vrot.lane.b32.xlu0 %v6992_v46, %s7093_s28  ;;  %v6994_v51 = vpop.eup %6993 }
0x3152   :  { %v5018_v52 = vadd.f32 1.0, %v6994_v51  ;;  %v6996_v54 = vpop.eup %6995  ;;  %v5049_v51 = vld [vmem:[#allocation4] sm:$0xff] }
0x3153   :  { %v4994_v55 = vadd.f32 1.0, %v6996_v54  ;;  %v5050_v54 = vld [vmem:[#allocation4 + $0x8] sm:$0xff] }
0x3154   :  { %6997 = vrcp.f32 %v5018_v52 }
0x3155   :  { %6999 = vrcp.f32 %v4994_v55 }
0x315e   :  { %v6998_v56 = vpop.eup %6997 }
0x315f   :  { %v8539_v58 = vpop.eup %6999  ;;  %v5022_v61 = vmul.f32 %v6998_v56, %v4818_v23  ;;  %v5089_v23 = vld [vmem:[%s8659_s10 + $0x28] sm:$0xff] }
0x3160   :  { %v4998_v63 = vmul.f32 %v8539_v58, %v4794_v25  ;;  %v6696_v28 = vpack.c.bf16 %v5089_v23, %v5088_v22  ;;  %v5090_v25 = vld [vmem:[%s8659_s10 + $0x30] sm:$0xff] }
0x3161   :  { %v6699_v9 = vpack.c.bf16 %v5091_v8, %v5090_v25 }
0x3162   :  { %6697 = vmatpush3.bf16.msra.mxu0 %v6696_v28 }
0x3163   :  { %6698 = vmatprep.subr.bf16.mxu0 %v7089_v0 }
0x3166   :  { %6700 = vmatpush3.bf16.msra.mxu0 %v6699_v9 }
0x31bf   :  { %v5025_v14 = vpop.permute.xlu0 %5024 }
0x31c0   :  { %v5027_v57 = vmul.f32 %v6998_v56, %v5025_v14  ;;  %v5051_v14 = vld [vmem:[#allocation4 + $0x10] sm:$0xff] }
0x31c2   :  { %5029 = vrot.lane.b32.xlu1 %v5027_v57, %s7094_s21 }
0x31c3   :  { %v5001_v59 = vpop.permute.xlu0 %5000 }
0x31c4   :  { %v5003_v60 = vmul.f32 %v8539_v58, %v5001_v59  ;;  %v5052_v59 = vld [vmem:[#allocation4 + $0x18] sm:$0xff] }
0x31c6   :  { %5005 = vrot.lane.b32.xlu0 %v5003_v60, %s7094_s21 }
0x3234   :  { %v5030_v62 = vpop.permute.xlu1 %5029 }
0x3235   :  { %v5032_v49 = vadd.f32 %v5030_v62, %v5022_v61 }
0x3237   :  { %7001 = vtanh.f32 %v5032_v49 }
0x3238   :  { %v5006_v24 = vpop.permute.xlu0 %5005 }
0x3239   :  { %v5008_v2 = vadd.f32 %v5006_v24, %v4998_v63 }
0x323b   :  { %7003 = vtanh.f32 %v5008_v2 }
0x3241   :  { %v7002_v3 = vpop.eup %7001 }
0x3242   :  { %5035 = vrot.lane.b32.xlu1 %v7002_v3, %s7093_s28 }
0x3245   :  { %v7004_v33 = vpop.eup %7003 }
0x3246   :  { %5011 = vrot.lane.b32.xlu0 %v7004_v33, %s7093_s28 }
0x324a   :  { %5066 = vrot.lane.b32.xlu0 %v5055_v31, %s7094_s21 }
0x324e   :  { %5068 = vrot.lane.b32.xlu0 %v5056_v53, %s7094_s21  ;;  %v5338_v53 = vld [vmem:[%s8660_s11] ss:$0 sm:$0xff] }
0x3252   :  { %5072 = vrot.lane.b32.xlu0 %v5058_v4, %s7094_s21 }
0x3271   :  { %219 = vadd.xlane.f32.xlu0 %v213_v5 }
0x3275   :  { %221 = vadd.xlane.f32.xlu0 %v214_v40 }
0x3279   :  { %225 = vadd.xlane.f32.xlu0 %v216_v38 }
0x32b4   :  { %v5036_v45 = vpop.permute.xlu1 %5035 }
0x32b5   :  { %v5038_v12 = vmul.f32 %v6998_v56, %v5036_v45 }
0x32b7   :  { %5045 = vrot.lane.b32.xlu1 %v5038_v12, %s7094_s21 }
0x32b8   :  { %v5012_v26 = vpop.permute.xlu0 %5011 }
0x32b9   :  { %v5014_v46 = vmul.f32 %v8539_v58, %v5012_v26 }
0x32bc   :  { %v5067_v6 = vpop.permute.xlu0 %5066 }
0x32bd   :  { %v5080_v56 = vsel %vm1400_vm8, %v5050_v54, %v5067_v6 }
0x32c0   :  { %v5069_v10 = vpop.permute.xlu0 %5068 }
0x32c1   :  { %v5081_v57 = vsel %vm1400_vm8, %v5051_v14, %v5069_v10 }
0x32c4   :  { %v5073_v29 = vpop.permute.xlu0 %5072 }
0x32fe   :  { %v220_v30 = vpop.xlane.xlu0 %219 }
0x32ff   :  { %v228_v32 = vadd.f32 1e-24, %v220_v30 }
0x3301   :  { %7005 = vrsqrt.f32 %v228_v32 }
0x3302   :  { %v222_v7 = vpop.xlane.xlu0 %221 }
0x3303   :  { %v229_v35 = vadd.f32 1e-24, %v222_v7 }
0x3305   :  { %7007 = vrsqrt.f32 %v229_v35 }
0x3306   :  { %v226_v11 = vpop.xlane.xlu0 %225 }
0x3307   :  { %v231_v36 = vadd.f32 1e-24, %v226_v11 }
0x3309   :  { %7009 = vrsqrt.f32 %v231_v36 }
0x330b   :  { %v7006_v37 = vpop.eup %7005 }
0x330c   :  { %v238_v39 = vmul.f32 %v7006_v37, %v7306_v27 }
0x330e   :  { %243 = vst [vmem:[%s8669_s20 + $0x8] sm:$0xff] %v238_v39 }
0x330f   :  { %v7008_v0 = vpop.eup %7007 }
0x3310   :  { %v239_v17 = vmul.f32 %v7008_v0, %v7316_v34  ;;  %v5057_v34 = vld [vmem:[#allocation5 + $0x18] sm:$0xff] }
0x3312   :  { %244 = vst [vmem:[%s8669_s20 + $0x10] sm:$0xff] %v239_v17 }
0x3313   :  { %v7010_v42 = vpop.eup %7009 }
0x3314   :  { %v241_v43 = vmul.f32 %v7010_v42, %v7336_v48  ;;  %v212_v48 = vmul.f32 %v7296_v20, %v7296_v20 }
0x3316   :  { %246 = vst [vmem:[%s8669_s20 + $0x20] sm:$0xff] %v241_v43 }
0x3329   :  { %v5046_v44 = vpop.permute.xlu1 %5045 }
0x332a   :  { %5048 = vst.msk [vmem:[#allocation5] sm:$0x3] %vm1618_vm9, %v5046_v44 }
0x3331   :  { %v5054_v27 = vld [vmem:[#allocation5] sm:$0xff] }
0x3332   :  { %5064 = vrot.lane.b32.xlu1 %v5054_v27, %s7094_s21 }
0x3336   :  { %5040 = vrot.lane.b32.xlu1 %v5014_v46, %s7094_s21 }
0x333a   :  { %5070 = vrot.lane.b32.xlu1 %v5057_v34, %s7094_s21 }
0x335e   :  { %217 = vadd.xlane.f32.xlu1 %v212_v48 }
0x3362   :  { %223 = vadd.xlane.f32.xlu1 %v215_v50 }
0x33a4   :  { %v5065_v47 = vpop.permute.xlu1 %5064 }
0x33a5   :  { %v5079_v52 = vsel %vm1400_vm8, %v5049_v51, %v5065_v47 }
0x33a6   :  { %6194 = vmatmul.mubr.msk.f32.vlgmr.msra.gmra.mrb[44].mxu0 %vm5099_vm10, %v5079_v52 }
0x33a7   :  { %6196 = vmatprep.mubr.msk.f32.mxu0 %vm7090_vm0, %v7091_v1 }
0x33a8   :  { %v5041_v55 = vpop.permute.xlu1 %5040 }
0x33a9   :  { %5043 = vst.msk [vmem:[#allocation4 + $0x20] sm:$0x3] %vm1618_vm9, %v5041_v55 }
0x33aa   :  { %6197 = vmatmul.mubr.msk.f32.gmra.mrb[46].mxu0 %vm5099_vm10, %v5080_v56 }
0x33ab   :  { %6199 = vmatprep.mubr.msk.f32.mxu0 %vm7090_vm0, %v7091_v1 }
0x33ac   :  { %v5071_v58 = vpop.permute.xlu1 %5070 }
0x33ad   :  { %v5082_v60 = vsel %vm1400_vm8, %v5052_v59, %v5071_v58 }
0x33ae   :  { %6200 = vmatmul.mubr.msk.f32.gmra.mrb[48].mxu0 %vm5099_vm10, %v5081_v57 }
0x33af   :  { %6202 = vmatprep.mubr.msk.f32.mxu0 %vm7090_vm0, %v7091_v1 }
0x33b0   :  { %v5053_v61 = vld [vmem:[#allocation4 + $0x20] sm:$0xff] }
0x33b1   :  { %v5083_v62 = vsel %vm1400_vm8, %v5053_v61, %v5073_v29 }
0x33b2   :  { %6203 = vmatmul.mubr.msk.f32.gmra.mrb[50].mxu0 %vm5099_vm10, %v5082_v60 }
0x33b3   :  { %6205 = vmatprep.mubr.msk.f32.mxu0 %vm7090_vm0, %v7091_v1 }
0x33b6   :  { %6206 = vmatmul.mubr.msk.f32.gmra.mrb[52].mxu0 %vm5099_vm10, %v5083_v62 }
0x33eb   :  { %v218_v49 = vpop.xlane.xlu1 %217 }
0x33ec   :  { %v227_v63 = vadd.f32 1e-24, %v218_v49 }
0x33ee   :  { %7011 = vrsqrt.f32 %v227_v63 }
0x33ef   :  { %v224_v24 = vpop.xlane.xlu1 %223 }
0x33f0   :  { %v230_v2 = vadd.f32 1e-24, %v224_v24 }
0x33f2   :  { %7013 = vrsqrt.f32 %v230_v2 }
0x33f8   :  { %v7012_v3 = vpop.eup %7011 }
0x33f9   :  { %v237_v33 = vmul.f32 %v7012_v3, %v7296_v20 }
0x33fb   :  { %242 = vst [vmem:[%s8669_s20] sm:$0xff] %v237_v33 }
0x33fc   :  { %v7014_v31 = vpop.eup %7013 }
0x33fd   :  { %v240_v1 = vmul.f32 %v7014_v31, %v7326_v41 }
0x33ff   :  { %245 = vst [vmem:[%s8669_s20 + $0x18] sm:$0xff] %v240_v1 }
0x3479   :  { %v5181_v4 = vpop.f32.mrb[44].mxu0 }
0x347a   :  { %v5182_v5 = vadd.f32 %v5338_v53, %v5181_v4  ;;  %v6195_v40 = vpop.f32.mrb[45].mxu0 }
0x347c   :  { %v5344_v38 = vmul.f32 -1.442695, %v5182_v5 }
0x347d   :  { %v5186_v20 = vpop.f32.mrb[46].mxu0 }
0x347e   :  { %7015 = vpow2.f32 %v5344_v38  ;;  %v5187_v45 = vadd.f32 %v5338_v53, %v5186_v20  ;;  %v6198_v12 = vpop.f32.mrb[47].mxu0 }
0x3480   :  { %v5345_v13 = vmul.f32 -1.442695, %v5187_v45 }
0x3481   :  { %v5191_v15 = vpop.f32.mrb[48].mxu0 }
0x3482   :  { %7017 = vpow2.f32 %v5345_v13  ;;  %v5192_v41 = vadd.f32 %v5338_v53, %v5191_v15  ;;  %v6201_v16 = vpop.f32.mrb[49].mxu0 }
0x3484   :  { %v5346_v18 = vmul.f32 -1.442695, %v5192_v41 }
0x3485   :  { %v5196_v19 = vpop.f32.mrb[50].mxu0 }
0x3486   :  { %7019 = vpow2.f32 %v5346_v18  ;;  %v5197_v21 = vadd.f32 %v5338_v53, %v5196_v19  ;;  %v6204_v22 = vpop.f32.mrb[51].mxu0 }
0x3488   :  { %v7016_v23 = vpop.eup %7015  ;;  %v5347_v26 = vmul.f32 -1.442695, %v5197_v21 }
0x3489   :  { %v5220_v28 = vadd.f32 1.0, %v7016_v23  ;;  %v5201_v25 = vpop.f32.mrb[52].mxu0 }
0x348a   :  { %7021 = vpow2.f32 %v5347_v26  ;;  %v5202_v8 = vadd.f32 %v5338_v53, %v5201_v25  ;;  %v6207_v9 = vpop.f32.mrb[53].mxu0 }
0x348b   :  { %7023 = vrcp.f32 %v5220_v28 }
0x348c   :  { %v7018_v6 = vpop.eup %7017  ;;  %v5348_v10 = vmul.f32 -1.442695, %v5202_v8 }
0x348d   :  { %v5221_v29 = vadd.f32 1.0, %v7018_v6 }
0x348e   :  { %7025 = vpow2.f32 %v5348_v10 }
0x348f   :  { %7027 = vrcp.f32 %v5221_v29 }
0x3490   :  { %v7020_v30 = vpop.eup %7019 }
0x3491   :  { %v5222_v32 = vadd.f32 1.0, %v7020_v30 }
0x3493   :  { %7029 = vrcp.f32 %v5222_v32 }
0x3494   :  { %v7022_v7 = vpop.eup %7021 }
0x3495   :  { %v7024_v35 = vpop.eup %7023  ;;  %v5223_v11 = vadd.f32 1.0, %v7022_v7 }
0x3496   :  { %5235 = vst [vmem:[%s8671_s22] sm:$0xff] %v7024_v35 }
0x3497   :  { %7031 = vrcp.f32 %v5223_v11 }
0x3498   :  { %v7026_v36 = vpop.eup %7025 }
0x3499   :  { %v7028_v37 = vpop.eup %7027  ;;  %v5224_v39 = vadd.f32 1.0, %v7026_v36 }
0x349a   :  { %5236 = vst [vmem:[%s8671_s22 + $0x8] sm:$0xff] %v7028_v37 }
0x349b   :  { %7033 = vrcp.f32 %v5224_v39 }
0x349d   :  { %v7030_v0 = vpop.eup %7029 }
0x349e   :  { %5237 = vst [vmem:[%s8671_s22 + $0x10] sm:$0xff] %v7030_v0 }
0x34a1   :  { %v7032_v17 = vpop.eup %7031 }
0x34a2   :  { %5238 = vst [vmem:[%s8671_s22 + $0x18] sm:$0xff] %v7032_v17 }
0x34a5   :  { %v7034_v42 = vpop.eup %7033 }
0x34a6   :  { %5239 = vst [vmem:[%s8671_s22 + $0x20] sm:$0xff] %v7034_v42 }
0x34a7   :  { %5256 = vsyncpa [#allocation7], 1 }
0x34a8   :  { %5257 = vsyncpa [#allocation9], 1 }

</bundles_post_ra>
